<compile_context>
chip_gen: v5e
topology: v5e:2x2
jax: 0.10.0
libtpu: 0.0.40
codegen_flags: <defaults>
</compile_context>

<pallas_src>
import functools
import numpy as np
import jax
import jax.numpy as jnp
from jax.experimental import pallas as pl
from jax.experimental.pallas import tpu as pltpu

# ---------------------------------------------------------------------------
# Model configuration (mirrors M5MLPLSTMModel.__init__)
# ---------------------------------------------------------------------------
IS_CATS   = [True, False, True, False]       # 2 categorical + 2 numeric features
CAT_DIMS  = [10, 8]
EMB_DIMS  = [3, 2]
N_HIDDEN  = 32
USE_TE    = True
N_INPUT   = (len(IS_CATS) - sum(IS_CATS)) + sum(EMB_DIMS)   # = 7
N_HEADS   = 7
OUT_STEPS = 28                                              # 4 weeks * 7 days

BATCH = 2
SEQ1  = 8      # encoder sequence length (x1 / y1)
SEQ2  = 28     # decoder sequence length (x2); forward uses steps 0..27


# ---------------------------------------------------------------------------
# Pallas kernel
# ---------------------------------------------------------------------------
def m5_kernel(x1m_ref, x2m_ref,
              wih1_ref, whh1_ref, b1_ref,
              wih2_ref, whh2_ref, b2_ref,
              wheads_ref,
              out_ref,
              xp1_ref, xp2_ref, hslab_ref,
              *, Bp, T1, T2, H, n_out):
    # Encoder input projection: one MXU matmul (bias folded once). Step 0 needs
    # its first rows anyway, so this sits at the head of the chain by design.
    xp1_ref[...] = (jnp.dot(x1m_ref[...], wih1_ref[...],
                            preferred_element_type=jnp.float32)
                    + b1_ref[...])                          # (T1*Bp, 4H)

    w_hh1 = whh1_ref[...]            # bf16, loaded once, resident for the loop
    w_hh2 = whh2_ref[...]            # bf16
    w_ih2 = wih2_ref[...]            # f32
    b2    = b2_ref[...]              # f32

    def cell(xp_t, h, c, w_hh):
        # Gate order [f, i, g, o] (permuted in the wrapper); the g columns of
        # all weights/biases were pre-scaled by 2, so tanh(g_pre) comes from
        # the single full-width sigmoid as 2*sigmoid(2*g_pre) - 1.
        # -> 2 EUP pushes per step (sigmoid + tanh(c)) instead of 3.
        g = xp_t + jnp.dot(h.astype(jnp.bfloat16), w_hh,
                           preferred_element_type=jnp.float32)
        s = jax.nn.sigmoid(g)
        g_g = 2.0 * s[:, 2 * H:3 * H] - 1.0
        c_new = s[:, 0:H] * c + s[:, H:2 * H] * g_g
        h_new = s[:, 3 * H:4 * H] * jnp.tanh(c_new)
        return h_new, c_new

    h = jnp.zeros((Bp, H), jnp.float32)
    c = jnp.zeros((Bp, H), jnp.float32)

    # Decoder input projection is computed in 32-row chunks interleaved with
    # the encoder steps, so its MXU work overlaps the encoder's EUP/VPU tail
    # instead of sitting as one big drain ahead of the serial chain.
    rows2 = T2 * Bp
    CH = 4 * Bp
    n_chunks = (rows2 + CH - 1) // CH

    for t in range(max(T1, n_chunks)):
        if t < T1:
            h, c = cell(xp1_ref[pl.ds(t * Bp, Bp), :], h, c, w_hh1)
        if t < n_chunks:
            r0 = t * CH
            r1 = min(r0 + CH, rows2)
            xp2_ref[r0:r1, :] = (jnp.dot(x2m_ref[r0:r1, :], w_ih2,
                                         preferred_element_type=jnp.float32)
                                 + b2)

    # Decoder recurrence; record hidden states, keep head math off the chain.
    for t in range(T2):
        h, c = cell(xp2_ref[pl.ds(t * Bp, Bp), :], h, c, w_hh2)
        if t < n_out:
            hslab_ref[pl.ds(t * Bp, Bp), :] = h

    # One MXU dot for all 7 heads over all decoder steps; output is padded to
    # 128 lanes so this store (the only HBM writeback) is lane-dense/unmasked.
    out_ref[...] = jnp.dot(hslab_ref[...], wheads_ref[...],
                           preferred_element_type=jnp.float32)


# ---------------------------------------------------------------------------
# Plain-JAX glue (jit-fused): embeddings, padding, weight prep, head selection
# ---------------------------------------------------------------------------
def _embed(x, emb_tables):
    # x: (B, T, n_feat) float32; categorical columns hold integer codes.
    parts = []
    counter = 0
    for i, is_cat in enumerate(IS_CATS):
        if is_cat:
            idx = x[:, :, i].astype(jnp.int32)
            parts.append(jnp.take(emb_tables[counter], idx, axis=0))
            counter += 1
        else:
            parts.append(x[:, :, i:i + 1])
    return jnp.concatenate(parts, axis=2)


def _prep_gate_cols(w):
    # Reorder gate columns [i, f, g, o] -> [f, i, g, o] and pre-scale the g
    # block by 2 (tanh-from-sigmoid trick). Free: done once, fused by XLA.
    H = N_HIDDEN
    i, f, g, o = (w[..., 0:H], w[..., H:2 * H],
                  w[..., 2 * H:3 * H], w[..., 3 * H:4 * H])
    return jnp.concatenate([f, i, 2.0 * g, o], axis=-1)


@jax.jit
def m5_forward(params, x1, y1, x2, te):
    B, T1 = x1.shape[0], x1.shape[1]
    T2 = x2.shape[1]
    assert T2 >= OUT_STEPS, "decoder sequence must cover all 28 output steps"
    H = N_HIDDEN
    Bp = ((B + 7) // 8) * 8                     # pad batch to a sublane multiple

    # Embedding gathers + concat (dropout1/2/3 are identity in eval mode).
    x1e = jnp.concatenate([_embed(x1, params['emb']), y1[..., None]], axis=2)  # (B,T1,8)
    x2e = _embed(x2, params['emb'])                                            # (B,T2,7)

    def to_kernel_layout(xe, feat_pad):
        # (B, T, F) -> zero-pad batch to Bp and features to 8 -> (T*Bp, 8)
        xe = jnp.pad(xe.astype(jnp.float32),
                     ((0, Bp - B), (0, 0), (0, feat_pad)))
        return jnp.transpose(xe, (1, 0, 2)).reshape(-1, xe.shape[2])

    x1m = to_kernel_layout(x1e, 0)                            # (T1*Bp, 8)
    x2m = to_kernel_layout(x2e, 1)                            # (T2*Bp, 8), K 7->8

    # Gate-column permutation + 2x g-block pre-scale; recurrent weights cast to
    # bf16 so the per-step MXU matmul is a single pass (accumulation stays f32).
    w_ih1 = _prep_gate_cols(params['w_ih1'])
    w_hh1 = _prep_gate_cols(params['w_hh1']).astype(jnp.bfloat16)
    b1    = _prep_gate_cols(params['b1'])
    w_ih2 = jnp.pad(_prep_gate_cols(params['w_ih2']), ((0, 1), (0, 0)))   # K 7->8
    w_hh2 = _prep_gate_cols(params['w_hh2']).astype(jnp.bfloat16)
    b2    = _prep_gate_cols(params['b2'])

    # Block-stacked head weights (H, 14): column 2*i+k = head i, output k.
    # Zero-pad to a full 128-lane width for a lane-dense kernel output store.
    w_heads = jnp.transpose(params['w_mlp_h'], (1, 0, 2)).reshape(H, 2 * N_HEADS)
    w_heads = jnp.pad(w_heads, ((0, 0), (0, 128 - 2 * N_HEADS)))

    kernel = functools.partial(m5_kernel, Bp=Bp, T1=T1, T2=T2, H=H,
                               n_out=OUT_STEPS)
    vmem = functools.partial(pl.BlockSpec, memory_space=pltpu.MemorySpace.VMEM)
    inputs = (x1m, x2m,
              w_ih1, w_hh1, b1,
              w_ih2, w_hh2, b2,
              w_heads)
    y_heads = pl.pallas_call(
        kernel,
        out_shape=jax.ShapeDtypeStruct((OUT_STEPS * Bp, 128), jnp.float32),
        in_specs=[vmem() for _ in inputs],
        out_specs=vmem(),
        scratch_shapes=[pltpu.VMEM((T1 * Bp, 4 * H), jnp.float32),       # xp1
                        pltpu.VMEM((T2 * Bp, 4 * H), jnp.float32),       # xp2
                        pltpu.VMEM((OUT_STEPS * Bp, H), jnp.float32)],   # h slab
    )(*inputs)

    # te / bias terms + per-day head-column selection (elementwise, jit-fused).
    yh = y_heads[:, :2 * N_HEADS].reshape(OUT_STEPS, Bp, N_HEADS, 2)[:, :B]  # (28,B,7,2)
    te_add = (te.astype(jnp.float32)[:, :, None] * params['w_mlp_te'][:, 0, :][None]
              + params['b_mlp'][:, 0, :][None])                              # (B,7,2)
    yh = yh + te_add[None]
    day = (jnp.arange(OUT_STEPS) % N_HEADS).reshape(OUT_STEPS, 1, 1, 1)
    out = jnp.take_along_axis(yh, day, axis=2)[:, :, 0, :]                   # (28,B,2)
    return jnp.transpose(out, (1, 0, 2))                                     # (B,28,2)


# ---------------------------------------------------------------------------
# Deterministic parameter initialization (synthetic, not a checkpoint load)
# ---------------------------------------------------------------------------
def init_params(key):
    keys = iter(jax.random.split(key, 16))
    H, F1, F2 = N_HIDDEN, N_INPUT + 1, N_INPUT

    emb = [jax.random.normal(next(keys), (cd, ed), jnp.float32) * 0.5
           for cd, ed in zip(CAT_DIMS, EMB_DIMS)]

    def lstm_params(in_dim):
        s = 1.0 / np.sqrt(H)
        w_ih = jax.random.uniform(next(keys), (in_dim, 4 * H), jnp.float32, -s, s)
        w_hh = jax.random.uniform(next(keys), (H, 4 * H), jnp.float32, -s, s)
        b_ih = jax.random.uniform(next(keys), (1, 4 * H), jnp.float32, -s, s)
        b_hh = jax.random.uniform(next(keys), (1, 4 * H), jnp.float32, -s, s)
        return w_ih, w_hh, b_ih + b_hh        # PyTorch adds b_ih + b_hh

    w_ih1, w_hh1, b1 = lstm_params(F1)
    w_ih2, w_hh2, b2 = lstm_params(F2)

    n_mlp_in = H + 1 if USE_TE else H
    s = 1.0 / np.sqrt(n_mlp_in)
    w_mlp = jax.random.uniform(next(keys), (N_HEADS, n_mlp_in, 2), jnp.float32, -s, s)
    b_mlp = jax.random.uniform(next(keys), (N_HEADS, 1, 2), jnp.float32, -s, s)

    return dict(emb=emb,
                w_ih1=w_ih1, w_hh1=w_hh1, b1=b1,
                w_ih2=w_ih2, w_hh2=w_hh2, b2=b2,
                w_mlp_h=w_mlp[:, :H, :],
                w_mlp_te=w_mlp[:, H:H + 1, :],
                b_mlp=b_mlp)


# ---------------------------------------------------------------------------
# float64 NumPy reference (same math as the PyTorch forward, eval mode).
# Uses the ORIGINAL [i,f,g,o] gate order and a real tanh, so it also validates
# the kernel-side gate reordering / 2*sigmoid(2x)-1 rewrite.
# ---------------------------------------------------------------------------
def numpy_reference(params, x1, y1, x2, te):
    f64 = lambda a: np.asarray(a, dtype=np.float64)
    emb = [f64(t) for t in params['emb']]

    def embed_np(x):
        parts, counter = [], 0
        x = np.asarray(x)
        for i, is_cat in enumerate(IS_CATS):
            if is_cat:
                parts.append(emb[counter][x[:, :, i].astype(np.int64)])
                counter += 1
            else:
                parts.append(f64(x[:, :, i:i + 1]))
        return np.concatenate(parts, axis=2)

    H = N_HIDDEN
    x1t = np.transpose(np.concatenate([embed_np(x1), f64(y1)[..., None]], axis=2), (1, 0, 2))
    x2t = np.transpose(embed_np(x2), (1, 0, 2))
    w_ih1, w_hh1, b1 = f64(params['w_ih1']), f64(params['w_hh1']), f64(params['b1'])
    w_ih2, w_hh2, b2 = f64(params['w_ih2']), f64(params['w_hh2']), f64(params['b2'])
    wmh, wmt, bm = f64(params['w_mlp_h']), f64(params['w_mlp_te']), f64(params['b_mlp'])
    te = f64(te)

    def cell(x_t, h, c, w_ih, w_hh, b):
        g = x_t @ w_ih + h @ w_hh + b
        sig = lambda z: 1.0 / (1.0 + np.exp(-z))
        i_g, f_g = sig(g[:, :H]), sig(g[:, H:2 * H])
        g_g, o_g = np.tanh(g[:, 2 * H:3 * H]), sig(g[:, 3 * H:4 * H])
        c = f_g * c + i_g * g_g
        return o_g * np.tanh(c), c

    h = np.zeros((x1t.shape[1], H)); c = np.zeros_like(h)
    for t in range(x1t.shape[0]):
        h, c = cell(x1t[t], h, c, w_ih1, w_hh1, b1)
    outs = []
    for t in range(OUT_STEPS):
        h, c = cell(x2t[t], h, c, w_ih2, w_hh2, b2)
        i = t % N_HEADS
        outs.append((h @ wmh[i] + te[:, i:i + 1] * wmt[i] + bm[i])[:, None, :])
    return np.concatenate(outs, axis=1)


# ---------------------------------------------------------------------------
if __name__ == "__main__":
    key = jax.random.PRNGKey(0)
    kp, kx1, ky1, kx2, kte, kc1, kc2 = jax.random.split(key, 7)
    params = init_params(kp)

    x1 = jax.random.normal(kx1, (BATCH, SEQ1, len(IS_CATS)), jnp.float32)
    x2 = jax.random.normal(kx2, (BATCH, SEQ2, len(IS_CATS)), jnp.float32)
    cat_cols = [i for i, f in enumerate(IS_CATS) if f]
    kc = jax.random.split(kc1, len(cat_cols))
    kd = jax.random.split(kc2, len(cat_cols))
    for j, col in enumerate(cat_cols):
        x1 = x1.at[:, :, col].set(
            jax.random.randint(kc[j], (BATCH, SEQ1), 0, CAT_DIMS[j]).astype(jnp.float32))
        x2 = x2.at[:, :, col].set(
            jax.random.randint(kd[j], (BATCH, SEQ2), 0, CAT_DIMS[j]).astype(jnp.float32))
    y1 = jax.random.normal(ky1, (BATCH, SEQ1), jnp.float32)
    te = jax.random.normal(kte, (BATCH, N_HEADS), jnp.float32)

    out = jax.block_until_ready(m5_forward(params, x1, y1, x2, te))
    assert out.shape == (BATCH, OUT_STEPS, 2), out.shape

    # Tolerance vs the float64 reference: the bf16 recurrent-matmul operands
    # (perf-review item) add a few e-3 of error accumulated over the 36-step
    # serial chain on top of the MXU's reduced-precision f32 behavior, so the
    # budget is 2e-2 (outputs are O(0.1-1)); everything else in the rewrite
    # (gate reorder, 2x g-scale + 2*sigmoid-1, chunked xp2, padded heads) is
    # mathematically exact.
    ref = numpy_reference(params, x1, y1, x2, te)
    np.testing.assert_allclose(np.asarray(out), ref, rtol=2e-2, atol=2e-2)
    print("KERNEL_OK")
</pallas_src>

<mosaic_0001>
module attributes {stable_mosaic.version = 11 : i64} {
  func.func @m5_kernel(%arg0: memref<64x8xf32, #tpu.memory_space<vmem>>, %arg1: memref<224x8xf32, #tpu.memory_space<vmem>>, %arg2: memref<8x128xf32, #tpu.memory_space<vmem>>, %arg3: memref<32x128xbf16, #tpu.memory_space<vmem>>, %arg4: memref<1x128xf32, #tpu.memory_space<vmem>>, %arg5: memref<8x128xf32, #tpu.memory_space<vmem>>, %arg6: memref<32x128xbf16, #tpu.memory_space<vmem>>, %arg7: memref<1x128xf32, #tpu.memory_space<vmem>>, %arg8: memref<32x128xf32, #tpu.memory_space<vmem>>, %arg9: memref<224x128xf32, #tpu.memory_space<vmem>>, %arg10: memref<64x128xf32, #tpu.memory_space<vmem>>, %arg11: memref<224x128xf32, #tpu.memory_space<vmem>>, %arg12: memref<224x32xf32, #tpu.memory_space<vmem>>) attributes {dimension_semantics = [], scalar_prefetch = 0 : i64, scratch_operands = 3 : i64, tpu.core_type = #tpu.core_type<tc>} {
    %c0 = arith.constant 0 : index
    %c0_0 = arith.constant 0 : index
    %0 = vector.load %arg0[%c0, %c0_0] : memref<64x8xf32, #tpu.memory_space<vmem>>, vector<64x8xf32>
    %c0_1 = arith.constant 0 : index
    %c0_2 = arith.constant 0 : index
    %1 = vector.load %arg2[%c0_1, %c0_2] : memref<8x128xf32, #tpu.memory_space<vmem>>, vector<8x128xf32>
    %cst = arith.constant dense<0.000000e+00> : vector<64x128xf32>
    %2 = tpu.matmul %0, %1, %cst {dimension_numbers = #tpu.dot_dimension_numbers<[1], [0], [0], [1], [0, 0, 1, 1], [], []>} : vector<64x8xf32>, vector<8x128xf32>, vector<64x128xf32> -> vector<64x128xf32>
    %c0_3 = arith.constant 0 : index
    %c0_4 = arith.constant 0 : index
    %3 = vector.load %arg4[%c0_3, %c0_4] : memref<1x128xf32, #tpu.memory_space<vmem>>, vector<1x128xf32>
    %4 = vector.broadcast %3 : vector<1x128xf32> to vector<64x128xf32>
    %5 = arith.addf %2, %4 : vector<64x128xf32>
    %c0_5 = arith.constant 0 : index
    %c0_6 = arith.constant 0 : index
    %6 = vector.load %arg10[%c0_5, %c0_6] : memref<64x128xf32, #tpu.memory_space<vmem>>, vector<64x128xf32>
    tpu.vector_store %arg10[%c0_5, %c0_6], %5 {strides = array<i32>} : memref<64x128xf32, #tpu.memory_space<vmem>>, vector<64x128xf32>,
    %c0_7 = arith.constant 0 : index
    %c0_8 = arith.constant 0 : index
    %7 = vector.load %arg3[%c0_7, %c0_8] : memref<32x128xbf16, #tpu.memory_space<vmem>>, vector<32x128xbf16>
    %c0_9 = arith.constant 0 : index
    %c0_10 = arith.constant 0 : index
    %8 = vector.load %arg6[%c0_9, %c0_10] : memref<32x128xbf16, #tpu.memory_space<vmem>>, vector<32x128xbf16>
    %c0_11 = arith.constant 0 : index
    %c0_12 = arith.constant 0 : index
    %9 = vector.load %arg5[%c0_11, %c0_12] : memref<8x128xf32, #tpu.memory_space<vmem>>, vector<8x128xf32>
    %c0_13 = arith.constant 0 : index
    %c0_14 = arith.constant 0 : index
    %10 = vector.load %arg7[%c0_13, %c0_14] : memref<1x128xf32, #tpu.memory_space<vmem>>, vector<1x128xf32>
    %cst_15 = arith.constant 0.000000e+00 : f32
    %11 = vector.broadcast %cst_15 : f32 to vector<8x32xf32>
    %cst_16 = arith.constant 0.000000e+00 : f32
    %12 = vector.broadcast %cst_16 : f32 to vector<8x32xf32>
    %c0_17 = arith.constant 0 : index
    %c0_18 = arith.constant 0 : index
    %13 = vector.load %arg10[%c0_17, %c0_18] : memref<64x128xf32, #tpu.memory_space<vmem>>, vector<8x128xf32>
    %14 = arith.truncf %11 : vector<8x32xf32> to vector<8x32xbf16>
    %cst_19 = arith.constant dense<0.000000e+00> : vector<8x128xf32>
    %15 = tpu.matmul %14, %7, %cst_19 {dimension_numbers = #tpu.dot_dimension_numbers<[1], [0], [0], [1], [0, 0, 1, 1], [], []>} : vector<8x32xbf16>, vector<32x128xbf16>, vector<8x128xf32> -> vector<8x128xf32>
    %16 = arith.addf %13, %15 : vector<8x128xf32>
    %17 = arith.negf %16 : vector<8x128xf32>
    %18 = math.exp %17 : vector<8x128xf32>
    %cst_20 = arith.constant 1.000000e+00 : f32
    %19 = vector.broadcast %cst_20 : f32 to vector<8x128xf32>
    %20 = arith.addf %19, %18 : vector<8x128xf32>
    %21 = arith.divf %19, %20 : vector<8x128xf32>
    %22 = vector.extract_strided_slice %21 {offsets = [0, 64], sizes = [8, 32], strides = [1, 1]} : vector<8x128xf32> to vector<8x32xf32>
    %cst_21 = arith.constant 2.000000e+00 : f32
    %23 = vector.broadcast %cst_21 : f32 to vector<8x32xf32>
    %24 = arith.mulf %23, %22 : vector<8x32xf32>
    %cst_22 = arith.constant 1.000000e+00 : f32
    %25 = vector.broadcast %cst_22 : f32 to vector<8x32xf32>
    %26 = arith.subf %24, %25 : vector<8x32xf32>
    %27 = vector.extract_strided_slice %21 {offsets = [0, 0], sizes = [8, 32], strides = [1, 1]} : vector<8x128xf32> to vector<8x32xf32>
    %28 = arith.mulf %27, %12 : vector<8x32xf32>
    %29 = vector.extract_strided_slice %21 {offsets = [0, 32], sizes = [8, 32], strides = [1, 1]} : vector<8x128xf32> to vector<8x32xf32>
    %30 = arith.mulf %29, %26 : vector<8x32xf32>
    %31 = arith.addf %28, %30 : vector<8x32xf32>
    %32 = vector.extract_strided_slice %21 {offsets = [0, 96], sizes = [8, 32], strides = [1, 1]} : vector<8x128xf32> to vector<8x32xf32>
    %33 = math.tanh %31 : vector<8x32xf32>
    %34 = arith.mulf %32, %33 : vector<8x32xf32>
    %c0_23 = arith.constant 0 : index
    %c0_24 = arith.constant 0 : index
    %35 = vector.load %arg1[%c0_23, %c0_24] : memref<224x8xf32, #tpu.memory_space<vmem>>, vector<32x8xf32>
    %cst_25 = arith.constant dense<0.000000e+00> : vector<32x128xf32>
    %36 = tpu.matmul %35, %9, %cst_25 {dimension_numbers = #tpu.dot_dimension_numbers<[1], [0], [0], [1], [0, 0, 1, 1], [], []>} : vector<32x8xf32>, vector<8x128xf32>, vector<32x128xf32> -> vector<32x128xf32>
    %37 = vector.broadcast %10 : vector<1x128xf32> to vector<32x128xf32>
    %38 = arith.addf %36, %37 : vector<32x128xf32>
    %c0_26 = arith.constant 0 : index
    %c0_27 = arith.constant 0 : index
    %39 = vector.load %arg11[%c0_26, %c0_27] : memref<224x128xf32, #tpu.memory_space<vmem>>, vector<32x128xf32>
    tpu.vector_store %arg11[%c0_26, %c0_27], %38 {strides = array<i32>} : memref<224x128xf32, #tpu.memory_space<vmem>>, vector<32x128xf32>,
    %c8 = arith.constant 8 : index
    %c0_28 = arith.constant 0 : index
    %40 = vector.load %arg10[%c8, %c0_28] : memref<64x128xf32, #tpu.memory_space<vmem>>, vector<8x128xf32>
    %41 = arith.truncf %34 : vector<8x32xf32> to vector<8x32xbf16>
    %cst_29 = arith.constant dense<0.000000e+00> : vector<8x128xf32>
    %42 = tpu.matmul %41, %7, %cst_29 {dimension_numbers = #tpu.dot_dimension_numbers<[1], [0], [0], [1], [0, 0, 1, 1], [], []>} : vector<8x32xbf16>, vector<32x128xbf16>, vector<8x128xf32> -> vector<8x128xf32>
    %43 = arith.addf %40, %42 : vector<8x128xf32>
    %44 = arith.negf %43 : vector<8x128xf32>
    %45 = math.exp %44 : vector<8x128xf32>
    %cst_30 = arith.constant 1.000000e+00 : f32
    %46 = vector.broadcast %cst_30 : f32 to vector<8x128xf32>
    %47 = arith.addf %46, %45 : vector<8x128xf32>
    %48 = arith.divf %46, %47 : vector<8x128xf32>
    %49 = vector.extract_strided_slice %48 {offsets = [0, 64], sizes = [8, 32], strides = [1, 1]} : vector<8x128xf32> to vector<8x32xf32>
    %cst_31 = arith.constant 2.000000e+00 : f32
    %50 = vector.broadcast %cst_31 : f32 to vector<8x32xf32>
    %51 = arith.mulf %50, %49 : vector<8x32xf32>
    %cst_32 = arith.constant 1.000000e+00 : f32
    %52 = vector.broadcast %cst_32 : f32 to vector<8x32xf32>
    %53 = arith.subf %51, %52 : vector<8x32xf32>
    %54 = vector.extract_strided_slice %48 {offsets = [0, 0], sizes = [8, 32], strides = [1, 1]} : vector<8x128xf32> to vector<8x32xf32>
    %55 = arith.mulf %54, %31 : vector<8x32xf32>
    %56 = vector.extract_strided_slice %48 {offsets = [0, 32], sizes = [8, 32], strides = [1, 1]} : vector<8x128xf32> to vector<8x32xf32>
    %57 = arith.mulf %56, %53 : vector<8x32xf32>
    %58 = arith.addf %55, %57 : vector<8x32xf32>
    %59 = vector.extract_strided_slice %48 {offsets = [0, 96], sizes = [8, 32], strides = [1, 1]} : vector<8x128xf32> to vector<8x32xf32>
    %60 = math.tanh %58 : vector<8x32xf32>
    %61 = arith.mulf %59, %60 : vector<8x32xf32>
    %c32 = arith.constant 32 : index
    %c0_33 = arith.constant 0 : index
    %62 = vector.load %arg1[%c32, %c0_33] : memref<224x8xf32, #tpu.memory_space<vmem>>, vector<32x8xf32>
    %cst_34 = arith.constant dense<0.000000e+00> : vector<32x128xf32>
    %63 = tpu.matmul %62, %9, %cst_34 {dimension_numbers = #tpu.dot_dimension_numbers<[1], [0], [0], [1], [0, 0, 1, 1], [], []>} : vector<32x8xf32>, vector<8x128xf32>, vector<32x128xf32> -> vector<32x128xf32>
    %64 = vector.broadcast %10 : vector<1x128xf32> to vector<32x128xf32>
    %65 = arith.addf %63, %64 : vector<32x128xf32>
    %c32_35 = arith.constant 32 : index
    %c0_36 = arith.constant 0 : index
    %66 = vector.load %arg11[%c32_35, %c0_36] : memref<224x128xf32, #tpu.memory_space<vmem>>, vector<32x128xf32>
    tpu.vector_store %arg11[%c32_35, %c0_36], %65 {strides = array<i32>} : memref<224x128xf32, #tpu.memory_space<vmem>>, vector<32x128xf32>,
    %c16 = arith.constant 16 : index
    %c0_37 = arith.constant 0 : index
    %67 = vector.load %arg10[%c16, %c0_37] : memref<64x128xf32, #tpu.memory_space<vmem>>, vector<8x128xf32>
    %68 = arith.truncf %61 : vector<8x32xf32> to vector<8x32xbf16>
    %cst_38 = arith.constant dense<0.000000e+00> : vector<8x128xf32>
    %69 = tpu.matmul %68, %7, %cst_38 {dimension_numbers = #tpu.dot_dimension_numbers<[1], [0], [0], [1], [0, 0, 1, 1], [], []>} : vector<8x32xbf16>, vector<32x128xbf16>, vector<8x128xf32> -> vector<8x128xf32>
    %70 = arith.addf %67, %69 : vector<8x128xf32>
    %71 = arith.negf %70 : vector<8x128xf32>
    %72 = math.exp %71 : vector<8x128xf32>
    %cst_39 = arith.constant 1.000000e+00 : f32
    %73 = vector.broadcast %cst_39 : f32 to vector<8x128xf32>
    %74 = arith.addf %73, %72 : vector<8x128xf32>
    %75 = arith.divf %73, %74 : vector<8x128xf32>
    %76 = vector.extract_strided_slice %75 {offsets = [0, 64], sizes = [8, 32], strides = [1, 1]} : vector<8x128xf32> to vector<8x32xf32>
    %cst_40 = arith.constant 2.000000e+00 : f32
    %77 = vector.broadcast %cst_40 : f32 to vector<8x32xf32>
    %78 = arith.mulf %77, %76 : vector<8x32xf32>
    %cst_41 = arith.constant 1.000000e+00 : f32
    %79 = vector.broadcast %cst_41 : f32 to vector<8x32xf32>
    %80 = arith.subf %78, %79 : vector<8x32xf32>
    %81 = vector.extract_strided_slice %75 {offsets = [0, 0], sizes = [8, 32], strides = [1, 1]} : vector<8x128xf32> to vector<8x32xf32>
    %82 = arith.mulf %81, %58 : vector<8x32xf32>
    %83 = vector.extract_strided_slice %75 {offsets = [0, 32], sizes = [8, 32], strides = [1, 1]} : vector<8x128xf32> to vector<8x32xf32>
    %84 = arith.mulf %83, %80 : vector<8x32xf32>
    %85 = arith.addf %82, %84 : vector<8x32xf32>
    %86 = vector.extract_strided_slice %75 {offsets = [0, 96], sizes = [8, 32], strides = [1, 1]} : vector<8x128xf32> to vector<8x32xf32>
    %87 = math.tanh %85 : vector<8x32xf32>
    %88 = arith.mulf %86, %87 : vector<8x32xf32>
    %c64 = arith.constant 64 : index
    %c0_42 = arith.constant 0 : index
    %89 = vector.load %arg1[%c64, %c0_42] : memref<224x8xf32, #tpu.memory_space<vmem>>, vector<32x8xf32>
    %cst_43 = arith.constant dense<0.000000e+00> : vector<32x128xf32>
    %90 = tpu.matmul %89, %9, %cst_43 {dimension_numbers = #tpu.dot_dimension_numbers<[1], [0], [0], [1], [0, 0, 1, 1], [], []>} : vector<32x8xf32>, vector<8x128xf32>, vector<32x128xf32> -> vector<32x128xf32>
    %91 = vector.broadcast %10 : vector<1x128xf32> to vector<32x128xf32>
    %92 = arith.addf %90, %91 : vector<32x128xf32>
    %c64_44 = arith.constant 64 : index
    %c0_45 = arith.constant 0 : index
    %93 = vector.load %arg11[%c64_44, %c0_45] : memref<224x128xf32, #tpu.memory_space<vmem>>, vector<32x128xf32>
    tpu.vector_store %arg11[%c64_44, %c0_45], %92 {strides = array<i32>} : memref<224x128xf32, #tpu.memory_space<vmem>>, vector<32x128xf32>,
    %c24 = arith.constant 24 : index
    %c0_46 = arith.constant 0 : index
    %94 = vector.load %arg10[%c24, %c0_46] : memref<64x128xf32, #tpu.memory_space<vmem>>, vector<8x128xf32>
    %95 = arith.truncf %88 : vector<8x32xf32> to vector<8x32xbf16>
    %cst_47 = arith.constant dense<0.000000e+00> : vector<8x128xf32>
    %96 = tpu.matmul %95, %7, %cst_47 {dimension_numbers = #tpu.dot_dimension_numbers<[1], [0], [0], [1], [0, 0, 1, 1], [], []>} : vector<8x32xbf16>, vector<32x128xbf16>, vector<8x128xf32> -> vector<8x128xf32>
    %97 = arith.addf %94, %96 : vector<8x128xf32>
    %98 = arith.negf %97 : vector<8x128xf32>
    %99 = math.exp %98 : vector<8x128xf32>
    %cst_48 = arith.constant 1.000000e+00 : f32
    %100 = vector.broadcast %cst_48 : f32 to vector<8x128xf32>
    %101 = arith.addf %100, %99 : vector<8x128xf32>
    %102 = arith.divf %100, %101 : vector<8x128xf32>
    %103 = vector.extract_strided_slice %102 {offsets = [0, 64], sizes = [8, 32], strides = [1, 1]} : vector<8x128xf32> to vector<8x32xf32>
    %cst_49 = arith.constant 2.000000e+00 : f32
    %104 = vector.broadcast %cst_49 : f32 to vector<8x32xf32>
    %105 = arith.mulf %104, %103 : vector<8x32xf32>
    %cst_50 = arith.constant 1.000000e+00 : f32
    %106 = vector.broadcast %cst_50 : f32 to vector<8x32xf32>
    %107 = arith.subf %105, %106 : vector<8x32xf32>
    %108 = vector.extract_strided_slice %102 {offsets = [0, 0], sizes = [8, 32], strides = [1, 1]} : vector<8x128xf32> to vector<8x32xf32>
    %109 = arith.mulf %108, %85 : vector<8x32xf32>
    %110 = vector.extract_strided_slice %102 {offsets = [0, 32], sizes = [8, 32], strides = [1, 1]} : vector<8x128xf32> to vector<8x32xf32>
    %111 = arith.mulf %110, %107 : vector<8x32xf32>
    %112 = arith.addf %109, %111 : vector<8x32xf32>
    %113 = vector.extract_strided_slice %102 {offsets = [0, 96], sizes = [8, 32], strides = [1, 1]} : vector<8x128xf32> to vector<8x32xf32>
    %114 = math.tanh %112 : vector<8x32xf32>
    %115 = arith.mulf %113, %114 : vector<8x32xf32>
    %c96 = arith.constant 96 : index
    %c0_51 = arith.constant 0 : index
    %116 = vector.load %arg1[%c96, %c0_51] : memref<224x8xf32, #tpu.memory_space<vmem>>, vector<32x8xf32>
    %cst_52 = arith.constant dense<0.000000e+00> : vector<32x128xf32>
    %117 = tpu.matmul %116, %9, %cst_52 {dimension_numbers = #tpu.dot_dimension_numbers<[1], [0], [0], [1], [0, 0, 1, 1], [], []>} : vector<32x8xf32>, vector<8x128xf32>, vector<32x128xf32> -> vector<32x128xf32>
    %118 = vector.broadcast %10 : vector<1x128xf32> to vector<32x128xf32>
    %119 = arith.addf %117, %118 : vector<32x128xf32>
    %c96_53 = arith.constant 96 : index
    %c0_54 = arith.constant 0 : index
    %120 = vector.load %arg11[%c96_53, %c0_54] : memref<224x128xf32, #tpu.memory_space<vmem>>, vector<32x128xf32>
    tpu.vector_store %arg11[%c96_53, %c0_54], %119 {strides = array<i32>} : memref<224x128xf32, #tpu.memory_space<vmem>>, vector<32x128xf32>,
    %c32_55 = arith.constant 32 : index
    %c0_56 = arith.constant 0 : index
    %121 = vector.load %arg10[%c32_55, %c0_56] : memref<64x128xf32, #tpu.memory_space<vmem>>, vector<8x128xf32>
    %122 = arith.truncf %115 : vector<8x32xf32> to vector<8x32xbf16>
    %cst_57 = arith.constant dense<0.000000e+00> : vector<8x128xf32>
    %123 = tpu.matmul %122, %7, %cst_57 {dimension_numbers = #tpu.dot_dimension_numbers<[1], [0], [0], [1], [0, 0, 1, 1], [], []>} : vector<8x32xbf16>, vector<32x128xbf16>, vector<8x128xf32> -> vector<8x128xf32>
    %124 = arith.addf %121, %123 : vector<8x128xf32>
    %125 = arith.negf %124 : vector<8x128xf32>
    %126 = math.exp %125 : vector<8x128xf32>
    %cst_58 = arith.constant 1.000000e+00 : f32
    %127 = vector.broadcast %cst_58 : f32 to vector<8x128xf32>
    %128 = arith.addf %127, %126 : vector<8x128xf32>
    %129 = arith.divf %127, %128 : vector<8x128xf32>
    %130 = vector.extract_strided_slice %129 {offsets = [0, 64], sizes = [8, 32], strides = [1, 1]} : vector<8x128xf32> to vector<8x32xf32>
    %cst_59 = arith.constant 2.000000e+00 : f32
    %131 = vector.broadcast %cst_59 : f32 to vector<8x32xf32>
    %132 = arith.mulf %131, %130 : vector<8x32xf32>
    %cst_60 = arith.constant 1.000000e+00 : f32
    %133 = vector.broadcast %cst_60 : f32 to vector<8x32xf32>
    %134 = arith.subf %132, %133 : vector<8x32xf32>
    %135 = vector.extract_strided_slice %129 {offsets = [0, 0], sizes = [8, 32], strides = [1, 1]} : vector<8x128xf32> to vector<8x32xf32>
    %136 = arith.mulf %135, %112 : vector<8x32xf32>
    %137 = vector.extract_strided_slice %129 {offsets = [0, 32], sizes = [8, 32], strides = [1, 1]} : vector<8x128xf32> to vector<8x32xf32>
    %138 = arith.mulf %137, %134 : vector<8x32xf32>
    %139 = arith.addf %136, %138 : vector<8x32xf32>
    %140 = vector.extract_strided_slice %129 {offsets = [0, 96], sizes = [8, 32], strides = [1, 1]} : vector<8x128xf32> to vector<8x32xf32>
    %141 = math.tanh %139 : vector<8x32xf32>
    %142 = arith.mulf %140, %141 : vector<8x32xf32>
    %c128 = arith.constant 128 : index
    %c0_61 = arith.constant 0 : index
    %143 = vector.load %arg1[%c128, %c0_61] : memref<224x8xf32, #tpu.memory_space<vmem>>, vector<32x8xf32>
    %cst_62 = arith.constant dense<0.000000e+00> : vector<32x128xf32>
    %144 = tpu.matmul %143, %9, %cst_62 {dimension_numbers = #tpu.dot_dimension_numbers<[1], [0], [0], [1], [0, 0, 1, 1], [], []>} : vector<32x8xf32>, vector<8x128xf32>, vector<32x128xf32> -> vector<32x128xf32>
    %145 = vector.broadcast %10 : vector<1x128xf32> to vector<32x128xf32>
    %146 = arith.addf %144, %145 : vector<32x128xf32>
    %c128_63 = arith.constant 128 : index
    %c0_64 = arith.constant 0 : index
    %147 = vector.load %arg11[%c128_63, %c0_64] : memref<224x128xf32, #tpu.memory_space<vmem>>, vector<32x128xf32>
    tpu.vector_store %arg11[%c128_63, %c0_64], %146 {strides = array<i32>} : memref<224x128xf32, #tpu.memory_space<vmem>>, vector<32x128xf32>,
    %c40 = arith.constant 40 : index
    %c0_65 = arith.constant 0 : index
    %148 = vector.load %arg10[%c40, %c0_65] : memref<64x128xf32, #tpu.memory_space<vmem>>, vector<8x128xf32>
    %149 = arith.truncf %142 : vector<8x32xf32> to vector<8x32xbf16>
    %cst_66 = arith.constant dense<0.000000e+00> : vector<8x128xf32>
    %150 = tpu.matmul %149, %7, %cst_66 {dimension_numbers = #tpu.dot_dimension_numbers<[1], [0], [0], [1], [0, 0, 1, 1], [], []>} : vector<8x32xbf16>, vector<32x128xbf16>, vector<8x128xf32> -> vector<8x128xf32>
    %151 = arith.addf %148, %150 : vector<8x128xf32>
    %152 = arith.negf %151 : vector<8x128xf32>
    %153 = math.exp %152 : vector<8x128xf32>
    %cst_67 = arith.constant 1.000000e+00 : f32
    %154 = vector.broadcast %cst_67 : f32 to vector<8x128xf32>
    %155 = arith.addf %154, %153 : vector<8x128xf32>
    %156 = arith.divf %154, %155 : vector<8x128xf32>
    %157 = vector.extract_strided_slice %156 {offsets = [0, 64], sizes = [8, 32], strides = [1, 1]} : vector<8x128xf32> to vector<8x32xf32>
    %cst_68 = arith.constant 2.000000e+00 : f32
    %158 = vector.broadcast %cst_68 : f32 to vector<8x32xf32>
    %159 = arith.mulf %158, %157 : vector<8x32xf32>
    %cst_69 = arith.constant 1.000000e+00 : f32
    %160 = vector.broadcast %cst_69 : f32 to vector<8x32xf32>
    %161 = arith.subf %159, %160 : vector<8x32xf32>
    %162 = vector.extract_strided_slice %156 {offsets = [0, 0], sizes = [8, 32], strides = [1, 1]} : vector<8x128xf32> to vector<8x32xf32>
    %163 = arith.mulf %162, %139 : vector<8x32xf32>
    %164 = vector.extract_strided_slice %156 {offsets = [0, 32], sizes = [8, 32], strides = [1, 1]} : vector<8x128xf32> to vector<8x32xf32>
    %165 = arith.mulf %164, %161 : vector<8x32xf32>
    %166 = arith.addf %163, %165 : vector<8x32xf32>
    %167 = vector.extract_strided_slice %156 {offsets = [0, 96], sizes = [8, 32], strides = [1, 1]} : vector<8x128xf32> to vector<8x32xf32>
    %168 = math.tanh %166 : vector<8x32xf32>
    %169 = arith.mulf %167, %168 : vector<8x32xf32>
    %c160 = arith.constant 160 : index
    %c0_70 = arith.constant 0 : index
    %170 = vector.load %arg1[%c160, %c0_70] : memref<224x8xf32, #tpu.memory_space<vmem>>, vector<32x8xf32>
    %cst_71 = arith.constant dense<0.000000e+00> : vector<32x128xf32>
    %171 = tpu.matmul %170, %9, %cst_71 {dimension_numbers = #tpu.dot_dimension_numbers<[1], [0], [0], [1], [0, 0, 1, 1], [], []>} : vector<32x8xf32>, vector<8x128xf32>, vector<32x128xf32> -> vector<32x128xf32>
    %172 = vector.broadcast %10 : vector<1x128xf32> to vector<32x128xf32>
    %173 = arith.addf %171, %172 : vector<32x128xf32>
    %c160_72 = arith.constant 160 : index
    %c0_73 = arith.constant 0 : index
    %174 = vector.load %arg11[%c160_72, %c0_73] : memref<224x128xf32, #tpu.memory_space<vmem>>, vector<32x128xf32>
    tpu.vector_store %arg11[%c160_72, %c0_73], %173 {strides = array<i32>} : memref<224x128xf32, #tpu.memory_space<vmem>>, vector<32x128xf32>,
    %c48 = arith.constant 48 : index
    %c0_74 = arith.constant 0 : index
    %175 = vector.load %arg10[%c48, %c0_74] : memref<64x128xf32, #tpu.memory_space<vmem>>, vector<8x128xf32>
    %176 = arith.truncf %169 : vector<8x32xf32> to vector<8x32xbf16>
    %cst_75 = arith.constant dense<0.000000e+00> : vector<8x128xf32>
    %177 = tpu.matmul %176, %7, %cst_75 {dimension_numbers = #tpu.dot_dimension_numbers<[1], [0], [0], [1], [0, 0, 1, 1], [], []>} : vector<8x32xbf16>, vector<32x128xbf16>, vector<8x128xf32> -> vector<8x128xf32>
    %178 = arith.addf %175, %177 : vector<8x128xf32>
    %179 = arith.negf %178 : vector<8x128xf32>
    %180 = math.exp %179 : vector<8x128xf32>
    %cst_76 = arith.constant 1.000000e+00 : f32
    %181 = vector.broadcast %cst_76 : f32 to vector<8x128xf32>
    %182 = arith.addf %181, %180 : vector<8x128xf32>
    %183 = arith.divf %181, %182 : vector<8x128xf32>
    %184 = vector.extract_strided_slice %183 {offsets = [0, 64], sizes = [8, 32], strides = [1, 1]} : vector<8x128xf32> to vector<8x32xf32>
    %cst_77 = arith.constant 2.000000e+00 : f32
    %185 = vector.broadcast %cst_77 : f32 to vector<8x32xf32>
    %186 = arith.mulf %185, %184 : vector<8x32xf32>
    %cst_78 = arith.constant 1.000000e+00 : f32
    %187 = vector.broadcast %cst_78 : f32 to vector<8x32xf32>
    %188 = arith.subf %186, %187 : vector<8x32xf32>
    %189 = vector.extract_strided_slice %183 {offsets = [0, 0], sizes = [8, 32], strides = [1, 1]} : vector<8x128xf32> to vector<8x32xf32>
    %190 = arith.mulf %189, %166 : vector<8x32xf32>
    %191 = vector.extract_strided_slice %183 {offsets = [0, 32], sizes = [8, 32], strides = [1, 1]} : vector<8x128xf32> to vector<8x32xf32>
    %192 = arith.mulf %191, %188 : vector<8x32xf32>
    %193 = arith.addf %190, %192 : vector<8x32xf32>
    %194 = vector.extract_strided_slice %183 {offsets = [0, 96], sizes = [8, 32], strides = [1, 1]} : vector<8x128xf32> to vector<8x32xf32>
    %195 = math.tanh %193 : vector<8x32xf32>
    %196 = arith.mulf %194, %195 : vector<8x32xf32>
    %c192 = arith.constant 192 : index
    %c0_79 = arith.constant 0 : index
    %197 = vector.load %arg1[%c192, %c0_79] : memref<224x8xf32, #tpu.memory_space<vmem>>, vector<32x8xf32>
    %cst_80 = arith.constant dense<0.000000e+00> : vector<32x128xf32>
    %198 = tpu.matmul %197, %9, %cst_80 {dimension_numbers = #tpu.dot_dimension_numbers<[1], [0], [0], [1], [0, 0, 1, 1], [], []>} : vector<32x8xf32>, vector<8x128xf32>, vector<32x128xf32> -> vector<32x128xf32>
    %199 = vector.broadcast %10 : vector<1x128xf32> to vector<32x128xf32>
    %200 = arith.addf %198, %199 : vector<32x128xf32>
    %c192_81 = arith.constant 192 : index
    %c0_82 = arith.constant 0 : index
    %201 = vector.load %arg11[%c192_81, %c0_82] : memref<224x128xf32, #tpu.memory_space<vmem>>, vector<32x128xf32>
    tpu.vector_store %arg11[%c192_81, %c0_82], %200 {strides = array<i32>} : memref<224x128xf32, #tpu.memory_space<vmem>>, vector<32x128xf32>,
    %c56 = arith.constant 56 : index
    %c0_83 = arith.constant 0 : index
    %202 = vector.load %arg10[%c56, %c0_83] : memref<64x128xf32, #tpu.memory_space<vmem>>, vector<8x128xf32>
    %203 = arith.truncf %196 : vector<8x32xf32> to vector<8x32xbf16>
    %cst_84 = arith.constant dense<0.000000e+00> : vector<8x128xf32>
    %204 = tpu.matmul %203, %7, %cst_84 {dimension_numbers = #tpu.dot_dimension_numbers<[1], [0], [0], [1], [0, 0, 1, 1], [], []>} : vector<8x32xbf16>, vector<32x128xbf16>, vector<8x128xf32> -> vector<8x128xf32>
    %205 = arith.addf %202, %204 : vector<8x128xf32>
    %206 = arith.negf %205 : vector<8x128xf32>
    %207 = math.exp %206 : vector<8x128xf32>
    %cst_85 = arith.constant 1.000000e+00 : f32
    %208 = vector.broadcast %cst_85 : f32 to vector<8x128xf32>
    %209 = arith.addf %208, %207 : vector<8x128xf32>
    %210 = arith.divf %208, %209 : vector<8x128xf32>
    %211 = vector.extract_strided_slice %210 {offsets = [0, 64], sizes = [8, 32], strides = [1, 1]} : vector<8x128xf32> to vector<8x32xf32>
    %cst_86 = arith.constant 2.000000e+00 : f32
    %212 = vector.broadcast %cst_86 : f32 to vector<8x32xf32>
    %213 = arith.mulf %212, %211 : vector<8x32xf32>
    %cst_87 = arith.constant 1.000000e+00 : f32
    %214 = vector.broadcast %cst_87 : f32 to vector<8x32xf32>
    %215 = arith.subf %213, %214 : vector<8x32xf32>
    %216 = vector.extract_strided_slice %210 {offsets = [0, 0], sizes = [8, 32], strides = [1, 1]} : vector<8x128xf32> to vector<8x32xf32>
    %217 = arith.mulf %216, %193 : vector<8x32xf32>
    %218 = vector.extract_strided_slice %210 {offsets = [0, 32], sizes = [8, 32], strides = [1, 1]} : vector<8x128xf32> to vector<8x32xf32>
    %219 = arith.mulf %218, %215 : vector<8x32xf32>
    %220 = arith.addf %217, %219 : vector<8x32xf32>
    %221 = vector.extract_strided_slice %210 {offsets = [0, 96], sizes = [8, 32], strides = [1, 1]} : vector<8x128xf32> to vector<8x32xf32>
    %222 = math.tanh %220 : vector<8x32xf32>
    %223 = arith.mulf %221, %222 : vector<8x32xf32>
    %c0_88 = arith.constant 0 : index
    %c0_89 = arith.constant 0 : index
    %224 = vector.load %arg11[%c0_88, %c0_89] : memref<224x128xf32, #tpu.memory_space<vmem>>, vector<8x128xf32>
    %225 = arith.truncf %223 : vector<8x32xf32> to vector<8x32xbf16>
    %cst_90 = arith.constant dense<0.000000e+00> : vector<8x128xf32>
    %226 = tpu.matmul %225, %8, %cst_90 {dimension_numbers = #tpu.dot_dimension_numbers<[1], [0], [0], [1], [0, 0, 1, 1], [], []>} : vector<8x32xbf16>, vector<32x128xbf16>, vector<8x128xf32> -> vector<8x128xf32>
    %227 = arith.addf %224, %226 : vector<8x128xf32>
    %228 = arith.negf %227 : vector<8x128xf32>
    %229 = math.exp %228 : vector<8x128xf32>
    %cst_91 = arith.constant 1.000000e+00 : f32
    %230 = vector.broadcast %cst_91 : f32 to vector<8x128xf32>
    %231 = arith.addf %230, %229 : vector<8x128xf32>
    %232 = arith.divf %230, %231 : vector<8x128xf32>
    %233 = vector.extract_strided_slice %232 {offsets = [0, 64], sizes = [8, 32], strides = [1, 1]} : vector<8x128xf32> to vector<8x32xf32>
    %cst_92 = arith.constant 2.000000e+00 : f32
    %234 = vector.broadcast %cst_92 : f32 to vector<8x32xf32>
    %235 = arith.mulf %234, %233 : vector<8x32xf32>
    %cst_93 = arith.constant 1.000000e+00 : f32
    %236 = vector.broadcast %cst_93 : f32 to vector<8x32xf32>
    %237 = arith.subf %235, %236 : vector<8x32xf32>
    %238 = vector.extract_strided_slice %232 {offsets = [0, 0], sizes = [8, 32], strides = [1, 1]} : vector<8x128xf32> to vector<8x32xf32>
    %239 = arith.mulf %238, %220 : vector<8x32xf32>
    %240 = vector.extract_strided_slice %232 {offsets = [0, 32], sizes = [8, 32], strides = [1, 1]} : vector<8x128xf32> to vector<8x32xf32>
    %241 = arith.mulf %240, %237 : vector<8x32xf32>
    %242 = arith.addf %239, %241 : vector<8x32xf32>
    %243 = vector.extract_strided_slice %232 {offsets = [0, 96], sizes = [8, 32], strides = [1, 1]} : vector<8x128xf32> to vector<8x32xf32>
    %244 = math.tanh %242 : vector<8x32xf32>
    %245 = arith.mulf %243, %244 : vector<8x32xf32>
    %c0_94 = arith.constant 0 : index
    %c0_95 = arith.constant 0 : index
    %246 = vector.load %arg12[%c0_94, %c0_95] : memref<224x32xf32, #tpu.memory_space<vmem>>, vector<8x32xf32>
    tpu.vector_store %arg12[%c0_94, %c0_95], %245 {strides = array<i32>} : memref<224x32xf32, #tpu.memory_space<vmem>>, vector<8x32xf32>,
    %c8_96 = arith.constant 8 : index
    %c0_97 = arith.constant 0 : index
    %247 = vector.load %arg11[%c8_96, %c0_97] : memref<224x128xf32, #tpu.memory_space<vmem>>, vector<8x128xf32>
    %248 = arith.truncf %245 : vector<8x32xf32> to vector<8x32xbf16>
    %cst_98 = arith.constant dense<0.000000e+00> : vector<8x128xf32>
    %249 = tpu.matmul %248, %8, %cst_98 {dimension_numbers = #tpu.dot_dimension_numbers<[1], [0], [0], [1], [0, 0, 1, 1], [], []>} : vector<8x32xbf16>, vector<32x128xbf16>, vector<8x128xf32> -> vector<8x128xf32>
    %250 = arith.addf %247, %249 : vector<8x128xf32>
    %251 = arith.negf %250 : vector<8x128xf32>
    %252 = math.exp %251 : vector<8x128xf32>
    %cst_99 = arith.constant 1.000000e+00 : f32
    %253 = vector.broadcast %cst_99 : f32 to vector<8x128xf32>
    %254 = arith.addf %253, %252 : vector<8x128xf32>
    %255 = arith.divf %253, %254 : vector<8x128xf32>
    %256 = vector.extract_strided_slice %255 {offsets = [0, 64], sizes = [8, 32], strides = [1, 1]} : vector<8x128xf32> to vector<8x32xf32>
    %cst_100 = arith.constant 2.000000e+00 : f32
    %257 = vector.broadcast %cst_100 : f32 to vector<8x32xf32>
    %258 = arith.mulf %257, %256 : vector<8x32xf32>
    %cst_101 = arith.constant 1.000000e+00 : f32
    %259 = vector.broadcast %cst_101 : f32 to vector<8x32xf32>
    %260 = arith.subf %258, %259 : vector<8x32xf32>
    %261 = vector.extract_strided_slice %255 {offsets = [0, 0], sizes = [8, 32], strides = [1, 1]} : vector<8x128xf32> to vector<8x32xf32>
    %262 = arith.mulf %261, %242 : vector<8x32xf32>
    %263 = vector.extract_strided_slice %255 {offsets = [0, 32], sizes = [8, 32], strides = [1, 1]} : vector<8x128xf32> to vector<8x32xf32>
    %264 = arith.mulf %263, %260 : vector<8x32xf32>
    %265 = arith.addf %262, %264 : vector<8x32xf32>
    %266 = vector.extract_strided_slice %255 {offsets = [0, 96], sizes = [8, 32], strides = [1, 1]} : vector<8x128xf32> to vector<8x32xf32>
    %267 = math.tanh %265 : vector<8x32xf32>
    %268 = arith.mulf %266, %267 : vector<8x32xf32>
    %c8_102 = arith.constant 8 : index
    %c0_103 = arith.constant 0 : index
    %269 = vector.load %arg12[%c8_102, %c0_103] : memref<224x32xf32, #tpu.memory_space<vmem>>, vector<8x32xf32>
    tpu.vector_store %arg12[%c8_102, %c0_103], %268 {strides = array<i32>} : memref<224x32xf32, #tpu.memory_space<vmem>>, vector<8x32xf32>,
    %c16_104 = arith.constant 16 : index
    %c0_105 = arith.constant 0 : index
    %270 = vector.load %arg11[%c16_104, %c0_105] : memref<224x128xf32, #tpu.memory_space<vmem>>, vector<8x128xf32>
    %271 = arith.truncf %268 : vector<8x32xf32> to vector<8x32xbf16>
    %cst_106 = arith.constant dense<0.000000e+00> : vector<8x128xf32>
    %272 = tpu.matmul %271, %8, %cst_106 {dimension_numbers = #tpu.dot_dimension_numbers<[1], [0], [0], [1], [0, 0, 1, 1], [], []>} : vector<8x32xbf16>, vector<32x128xbf16>, vector<8x128xf32> -> vector<8x128xf32>
    %273 = arith.addf %270, %272 : vector<8x128xf32>
    %274 = arith.negf %273 : vector<8x128xf32>
    %275 = math.exp %274 : vector<8x128xf32>
    %cst_107 = arith.constant 1.000000e+00 : f32
    %276 = vector.broadcast %cst_107 : f32 to vector<8x128xf32>
    %277 = arith.addf %276, %275 : vector<8x128xf32>
    %278 = arith.divf %276, %277 : vector<8x128xf32>
    %279 = vector.extract_strided_slice %278 {offsets = [0, 64], sizes = [8, 32], strides = [1, 1]} : vector<8x128xf32> to vector<8x32xf32>
    %cst_108 = arith.constant 2.000000e+00 : f32
    %280 = vector.broadcast %cst_108 : f32 to vector<8x32xf32>
    %281 = arith.mulf %280, %279 : vector<8x32xf32>
    %cst_109 = arith.constant 1.000000e+00 : f32
    %282 = vector.broadcast %cst_109 : f32 to vector<8x32xf32>
    %283 = arith.subf %281, %282 : vector<8x32xf32>
    %284 = vector.extract_strided_slice %278 {offsets = [0, 0], sizes = [8, 32], strides = [1, 1]} : vector<8x128xf32> to vector<8x32xf32>
    %285 = arith.mulf %284, %265 : vector<8x32xf32>
    %286 = vector.extract_strided_slice %278 {offsets = [0, 32], sizes = [8, 32], strides = [1, 1]} : vector<8x128xf32> to vector<8x32xf32>
    %287 = arith.mulf %286, %283 : vector<8x32xf32>
    %288 = arith.addf %285, %287 : vector<8x32xf32>
    %289 = vector.extract_strided_slice %278 {offsets = [0, 96], sizes = [8, 32], strides = [1, 1]} : vector<8x128xf32> to vector<8x32xf32>
    %290 = math.tanh %288 : vector<8x32xf32>
    %291 = arith.mulf %289, %290 : vector<8x32xf32>
    %c16_110 = arith.constant 16 : index
    %c0_111 = arith.constant 0 : index
    %292 = vector.load %arg12[%c16_110, %c0_111] : memref<224x32xf32, #tpu.memory_space<vmem>>, vector<8x32xf32>
    tpu.vector_store %arg12[%c16_110, %c0_111], %291 {strides = array<i32>} : memref<224x32xf32, #tpu.memory_space<vmem>>, vector<8x32xf32>,
    %c24_112 = arith.constant 24 : index
    %c0_113 = arith.constant 0 : index
    %293 = vector.load %arg11[%c24_112, %c0_113] : memref<224x128xf32, #tpu.memory_space<vmem>>, vector<8x128xf32>
    %294 = arith.truncf %291 : vector<8x32xf32> to vector<8x32xbf16>
    %cst_114 = arith.constant dense<0.000000e+00> : vector<8x128xf32>
    %295 = tpu.matmul %294, %8, %cst_114 {dimension_numbers = #tpu.dot_dimension_numbers<[1], [0], [0], [1], [0, 0, 1, 1], [], []>} : vector<8x32xbf16>, vector<32x128xbf16>, vector<8x128xf32> -> vector<8x128xf32>
    %296 = arith.addf %293, %295 : vector<8x128xf32>
    %297 = arith.negf %296 : vector<8x128xf32>
    %298 = math.exp %297 : vector<8x128xf32>
    %cst_115 = arith.constant 1.000000e+00 : f32
    %299 = vector.broadcast %cst_115 : f32 to vector<8x128xf32>
    %300 = arith.addf %299, %298 : vector<8x128xf32>
    %301 = arith.divf %299, %300 : vector<8x128xf32>
    %302 = vector.extract_strided_slice %301 {offsets = [0, 64], sizes = [8, 32], strides = [1, 1]} : vector<8x128xf32> to vector<8x32xf32>
    %cst_116 = arith.constant 2.000000e+00 : f32
    %303 = vector.broadcast %cst_116 : f32 to vector<8x32xf32>
    %304 = arith.mulf %303, %302 : vector<8x32xf32>
    %cst_117 = arith.constant 1.000000e+00 : f32
    %305 = vector.broadcast %cst_117 : f32 to vector<8x32xf32>
    %306 = arith.subf %304, %305 : vector<8x32xf32>
    %307 = vector.extract_strided_slice %301 {offsets = [0, 0], sizes = [8, 32], strides = [1, 1]} : vector<8x128xf32> to vector<8x32xf32>
    %308 = arith.mulf %307, %288 : vector<8x32xf32>
    %309 = vector.extract_strided_slice %301 {offsets = [0, 32], sizes = [8, 32], strides = [1, 1]} : vector<8x128xf32> to vector<8x32xf32>
    %310 = arith.mulf %309, %306 : vector<8x32xf32>
    %311 = arith.addf %308, %310 : vector<8x32xf32>
    %312 = vector.extract_strided_slice %301 {offsets = [0, 96], sizes = [8, 32], strides = [1, 1]} : vector<8x128xf32> to vector<8x32xf32>
    %313 = math.tanh %311 : vector<8x32xf32>
    %314 = arith.mulf %312, %313 : vector<8x32xf32>
    %c24_118 = arith.constant 24 : index
    %c0_119 = arith.constant 0 : index
    %315 = vector.load %arg12[%c24_118, %c0_119] : memref<224x32xf32, #tpu.memory_space<vmem>>, vector<8x32xf32>
    tpu.vector_store %arg12[%c24_118, %c0_119], %314 {strides = array<i32>} : memref<224x32xf32, #tpu.memory_space<vmem>>, vector<8x32xf32>,
    %c32_120 = arith.constant 32 : index
    %c0_121 = arith.constant 0 : index
    %316 = vector.load %arg11[%c32_120, %c0_121] : memref<224x128xf32, #tpu.memory_space<vmem>>, vector<8x128xf32>
    %317 = arith.truncf %314 : vector<8x32xf32> to vector<8x32xbf16>
    %cst_122 = arith.constant dense<0.000000e+00> : vector<8x128xf32>
    %318 = tpu.matmul %317, %8, %cst_122 {dimension_numbers = #tpu.dot_dimension_numbers<[1], [0], [0], [1], [0, 0, 1, 1], [], []>} : vector<8x32xbf16>, vector<32x128xbf16>, vector<8x128xf32> -> vector<8x128xf32>
    %319 = arith.addf %316, %318 : vector<8x128xf32>
    %320 = arith.negf %319 : vector<8x128xf32>
    %321 = math.exp %320 : vector<8x128xf32>
    %cst_123 = arith.constant 1.000000e+00 : f32
    %322 = vector.broadcast %cst_123 : f32 to vector<8x128xf32>
    %323 = arith.addf %322, %321 : vector<8x128xf32>
    %324 = arith.divf %322, %323 : vector<8x128xf32>
    %325 = vector.extract_strided_slice %324 {offsets = [0, 64], sizes = [8, 32], strides = [1, 1]} : vector<8x128xf32> to vector<8x32xf32>
    %cst_124 = arith.constant 2.000000e+00 : f32
    %326 = vector.broadcast %cst_124 : f32 to vector<8x32xf32>
    %327 = arith.mulf %326, %325 : vector<8x32xf32>
    %cst_125 = arith.constant 1.000000e+00 : f32
    %328 = vector.broadcast %cst_125 : f32 to vector<8x32xf32>
    %329 = arith.subf %327, %328 : vector<8x32xf32>
    %330 = vector.extract_strided_slice %324 {offsets = [0, 0], sizes = [8, 32], strides = [1, 1]} : vector<8x128xf32> to vector<8x32xf32>
    %331 = arith.mulf %330, %311 : vector<8x32xf32>
    %332 = vector.extract_strided_slice %324 {offsets = [0, 32], sizes = [8, 32], strides = [1, 1]} : vector<8x128xf32> to vector<8x32xf32>
    %333 = arith.mulf %332, %329 : vector<8x32xf32>
    %334 = arith.addf %331, %333 : vector<8x32xf32>
    %335 = vector.extract_strided_slice %324 {offsets = [0, 96], sizes = [8, 32], strides = [1, 1]} : vector<8x128xf32> to vector<8x32xf32>
    %336 = math.tanh %334 : vector<8x32xf32>
    %337 = arith.mulf %335, %336 : vector<8x32xf32>
    %c32_126 = arith.constant 32 : index
    %c0_127 = arith.constant 0 : index
    %338 = vector.load %arg12[%c32_126, %c0_127] : memref<224x32xf32, #tpu.memory_space<vmem>>, vector<8x32xf32>
    tpu.vector_store %arg12[%c32_126, %c0_127], %337 {strides = array<i32>} : memref<224x32xf32, #tpu.memory_space<vmem>>, vector<8x32xf32>,
    %c40_128 = arith.constant 40 : index
    %c0_129 = arith.constant 0 : index
    %339 = vector.load %arg11[%c40_128, %c0_129] : memref<224x128xf32, #tpu.memory_space<vmem>>, vector<8x128xf32>
    %340 = arith.truncf %337 : vector<8x32xf32> to vector<8x32xbf16>
    %cst_130 = arith.constant dense<0.000000e+00> : vector<8x128xf32>
    %341 = tpu.matmul %340, %8, %cst_130 {dimension_numbers = #tpu.dot_dimension_numbers<[1], [0], [0], [1], [0, 0, 1, 1], [], []>} : vector<8x32xbf16>, vector<32x128xbf16>, vector<8x128xf32> -> vector<8x128xf32>
    %342 = arith.addf %339, %341 : vector<8x128xf32>
    %343 = arith.negf %342 : vector<8x128xf32>
    %344 = math.exp %343 : vector<8x128xf32>
    %cst_131 = arith.constant 1.000000e+00 : f32
    %345 = vector.broadcast %cst_131 : f32 to vector<8x128xf32>
    %346 = arith.addf %345, %344 : vector<8x128xf32>
    %347 = arith.divf %345, %346 : vector<8x128xf32>
    %348 = vector.extract_strided_slice %347 {offsets = [0, 64], sizes = [8, 32], strides = [1, 1]} : vector<8x128xf32> to vector<8x32xf32>
    %cst_132 = arith.constant 2.000000e+00 : f32
    %349 = vector.broadcast %cst_132 : f32 to vector<8x32xf32>
    %350 = arith.mulf %349, %348 : vector<8x32xf32>
    %cst_133 = arith.constant 1.000000e+00 : f32
    %351 = vector.broadcast %cst_133 : f32 to vector<8x32xf32>
    %352 = arith.subf %350, %351 : vector<8x32xf32>
    %353 = vector.extract_strided_slice %347 {offsets = [0, 0], sizes = [8, 32], strides = [1, 1]} : vector<8x128xf32> to vector<8x32xf32>
    %354 = arith.mulf %353, %334 : vector<8x32xf32>
    %355 = vector.extract_strided_slice %347 {offsets = [0, 32], sizes = [8, 32], strides = [1, 1]} : vector<8x128xf32> to vector<8x32xf32>
    %356 = arith.mulf %355, %352 : vector<8x32xf32>
    %357 = arith.addf %354, %356 : vector<8x32xf32>
    %358 = vector.extract_strided_slice %347 {offsets = [0, 96], sizes = [8, 32], strides = [1, 1]} : vector<8x128xf32> to vector<8x32xf32>
    %359 = math.tanh %357 : vector<8x32xf32>
    %360 = arith.mulf %358, %359 : vector<8x32xf32>
    %c40_134 = arith.constant 40 : index
    %c0_135 = arith.constant 0 : index
    %361 = vector.load %arg12[%c40_134, %c0_135] : memref<224x32xf32, #tpu.memory_space<vmem>>, vector<8x32xf32>
    tpu.vector_store %arg12[%c40_134, %c0_135], %360 {strides = array<i32>} : memref<224x32xf32, #tpu.memory_space<vmem>>, vector<8x32xf32>,
    %c48_136 = arith.constant 48 : index
    %c0_137 = arith.constant 0 : index
    %362 = vector.load %arg11[%c48_136, %c0_137] : memref<224x128xf32, #tpu.memory_space<vmem>>, vector<8x128xf32>
    %363 = arith.truncf %360 : vector<8x32xf32> to vector<8x32xbf16>
    %cst_138 = arith.constant dense<0.000000e+00> : vector<8x128xf32>
    %364 = tpu.matmul %363, %8, %cst_138 {dimension_numbers = #tpu.dot_dimension_numbers<[1], [0], [0], [1], [0, 0, 1, 1], [], []>} : vector<8x32xbf16>, vector<32x128xbf16>, vector<8x128xf32> -> vector<8x128xf32>
    %365 = arith.addf %362, %364 : vector<8x128xf32>
    %366 = arith.negf %365 : vector<8x128xf32>
    %367 = math.exp %366 : vector<8x128xf32>
    %cst_139 = arith.constant 1.000000e+00 : f32
    %368 = vector.broadcast %cst_139 : f32 to vector<8x128xf32>
    %369 = arith.addf %368, %367 : vector<8x128xf32>
    %370 = arith.divf %368, %369 : vector<8x128xf32>
    %371 = vector.extract_strided_slice %370 {offsets = [0, 64], sizes = [8, 32], strides = [1, 1]} : vector<8x128xf32> to vector<8x32xf32>
    %cst_140 = arith.constant 2.000000e+00 : f32
    %372 = vector.broadcast %cst_140 : f32 to vector<8x32xf32>
    %373 = arith.mulf %372, %371 : vector<8x32xf32>
    %cst_141 = arith.constant 1.000000e+00 : f32
    %374 = vector.broadcast %cst_141 : f32 to vector<8x32xf32>
    %375 = arith.subf %373, %374 : vector<8x32xf32>
    %376 = vector.extract_strided_slice %370 {offsets = [0, 0], sizes = [8, 32], strides = [1, 1]} : vector<8x128xf32> to vector<8x32xf32>
    %377 = arith.mulf %376, %357 : vector<8x32xf32>
    %378 = vector.extract_strided_slice %370 {offsets = [0, 32], sizes = [8, 32], strides = [1, 1]} : vector<8x128xf32> to vector<8x32xf32>
    %379 = arith.mulf %378, %375 : vector<8x32xf32>
    %380 = arith.addf %377, %379 : vector<8x32xf32>
    %381 = vector.extract_strided_slice %370 {offsets = [0, 96], sizes = [8, 32], strides = [1, 1]} : vector<8x128xf32> to vector<8x32xf32>
    %382 = math.tanh %380 : vector<8x32xf32>
    %383 = arith.mulf %381, %382 : vector<8x32xf32>
    %c48_142 = arith.constant 48 : index
    %c0_143 = arith.constant 0 : index
    %384 = vector.load %arg12[%c48_142, %c0_143] : memref<224x32xf32, #tpu.memory_space<vmem>>, vector<8x32xf32>
    tpu.vector_store %arg12[%c48_142, %c0_143], %383 {strides = array<i32>} : memref<224x32xf32, #tpu.memory_space<vmem>>, vector<8x32xf32>,
    %c56_144 = arith.constant 56 : index
    %c0_145 = arith.constant 0 : index
    %385 = vector.load %arg11[%c56_144, %c0_145] : memref<224x128xf32, #tpu.memory_space<vmem>>, vector<8x128xf32>
    %386 = arith.truncf %383 : vector<8x32xf32> to vector<8x32xbf16>
    %cst_146 = arith.constant dense<0.000000e+00> : vector<8x128xf32>
    %387 = tpu.matmul %386, %8, %cst_146 {dimension_numbers = #tpu.dot_dimension_numbers<[1], [0], [0], [1], [0, 0, 1, 1], [], []>} : vector<8x32xbf16>, vector<32x128xbf16>, vector<8x128xf32> -> vector<8x128xf32>
    %388 = arith.addf %385, %387 : vector<8x128xf32>
    %389 = arith.negf %388 : vector<8x128xf32>
    %390 = math.exp %389 : vector<8x128xf32>
    %cst_147 = arith.constant 1.000000e+00 : f32
    %391 = vector.broadcast %cst_147 : f32 to vector<8x128xf32>
    %392 = arith.addf %391, %390 : vector<8x128xf32>
    %393 = arith.divf %391, %392 : vector<8x128xf32>
    %394 = vector.extract_strided_slice %393 {offsets = [0, 64], sizes = [8, 32], strides = [1, 1]} : vector<8x128xf32> to vector<8x32xf32>
    %cst_148 = arith.constant 2.000000e+00 : f32
    %395 = vector.broadcast %cst_148 : f32 to vector<8x32xf32>
    %396 = arith.mulf %395, %394 : vector<8x32xf32>
    %cst_149 = arith.constant 1.000000e+00 : f32
    %397 = vector.broadcast %cst_149 : f32 to vector<8x32xf32>
    %398 = arith.subf %396, %397 : vector<8x32xf32>
    %399 = vector.extract_strided_slice %393 {offsets = [0, 0], sizes = [8, 32], strides = [1, 1]} : vector<8x128xf32> to vector<8x32xf32>
    %400 = arith.mulf %399, %380 : vector<8x32xf32>
    %401 = vector.extract_strided_slice %393 {offsets = [0, 32], sizes = [8, 32], strides = [1, 1]} : vector<8x128xf32> to vector<8x32xf32>
    %402 = arith.mulf %401, %398 : vector<8x32xf32>
    %403 = arith.addf %400, %402 : vector<8x32xf32>
    %404 = vector.extract_strided_slice %393 {offsets = [0, 96], sizes = [8, 32], strides = [1, 1]} : vector<8x128xf32> to vector<8x32xf32>
    %405 = math.tanh %403 : vector<8x32xf32>
    %406 = arith.mulf %404, %405 : vector<8x32xf32>
    %c56_150 = arith.constant 56 : index
    %c0_151 = arith.constant 0 : index
    %407 = vector.load %arg12[%c56_150, %c0_151] : memref<224x32xf32, #tpu.memory_space<vmem>>, vector<8x32xf32>
    tpu.vector_store %arg12[%c56_150, %c0_151], %406 {strides = array<i32>} : memref<224x32xf32, #tpu.memory_space<vmem>>, vector<8x32xf32>,
    %c64_152 = arith.constant 64 : index
    %c0_153 = arith.constant 0 : index
    %408 = vector.load %arg11[%c64_152, %c0_153] : memref<224x128xf32, #tpu.memory_space<vmem>>, vector<8x128xf32>
    %409 = arith.truncf %406 : vector<8x32xf32> to vector<8x32xbf16>
    %cst_154 = arith.constant dense<0.000000e+00> : vector<8x128xf32>
    %410 = tpu.matmul %409, %8, %cst_154 {dimension_numbers = #tpu.dot_dimension_numbers<[1], [0], [0], [1], [0, 0, 1, 1], [], []>} : vector<8x32xbf16>, vector<32x128xbf16>, vector<8x128xf32> -> vector<8x128xf32>
    %411 = arith.addf %408, %410 : vector<8x128xf32>
    %412 = arith.negf %411 : vector<8x128xf32>
    %413 = math.exp %412 : vector<8x128xf32>
    %cst_155 = arith.constant 1.000000e+00 : f32
    %414 = vector.broadcast %cst_155 : f32 to vector<8x128xf32>
    %415 = arith.addf %414, %413 : vector<8x128xf32>
    %416 = arith.divf %414, %415 : vector<8x128xf32>
    %417 = vector.extract_strided_slice %416 {offsets = [0, 64], sizes = [8, 32], strides = [1, 1]} : vector<8x128xf32> to vector<8x32xf32>
    %cst_156 = arith.constant 2.000000e+00 : f32
    %418 = vector.broadcast %cst_156 : f32 to vector<8x32xf32>
    %419 = arith.mulf %418, %417 : vector<8x32xf32>
    %cst_157 = arith.constant 1.000000e+00 : f32
    %420 = vector.broadcast %cst_157 : f32 to vector<8x32xf32>
    %421 = arith.subf %419, %420 : vector<8x32xf32>
    %422 = vector.extract_strided_slice %416 {offsets = [0, 0], sizes = [8, 32], strides = [1, 1]} : vector<8x128xf32> to vector<8x32xf32>
    %423 = arith.mulf %422, %403 : vector<8x32xf32>
    %424 = vector.extract_strided_slice %416 {offsets = [0, 32], sizes = [8, 32], strides = [1, 1]} : vector<8x128xf32> to vector<8x32xf32>
    %425 = arith.mulf %424, %421 : vector<8x32xf32>
    %426 = arith.addf %423, %425 : vector<8x32xf32>
    %427 = vector.extract_strided_slice %416 {offsets = [0, 96], sizes = [8, 32], strides = [1, 1]} : vector<8x128xf32> to vector<8x32xf32>
    %428 = math.tanh %426 : vector<8x32xf32>
    %429 = arith.mulf %427, %428 : vector<8x32xf32>
    %c64_158 = arith.constant 64 : index
    %c0_159 = arith.constant 0 : index
    %430 = vector.load %arg12[%c64_158, %c0_159] : memref<224x32xf32, #tpu.memory_space<vmem>>, vector<8x32xf32>
    tpu.vector_store %arg12[%c64_158, %c0_159], %429 {strides = array<i32>} : memref<224x32xf32, #tpu.memory_space<vmem>>, vector<8x32xf32>,
    %c72 = arith.constant 72 : index
    %c0_160 = arith.constant 0 : index
    %431 = vector.load %arg11[%c72, %c0_160] : memref<224x128xf32, #tpu.memory_space<vmem>>, vector<8x128xf32>
    %432 = arith.truncf %429 : vector<8x32xf32> to vector<8x32xbf16>
    %cst_161 = arith.constant dense<0.000000e+00> : vector<8x128xf32>
    %433 = tpu.matmul %432, %8, %cst_161 {dimension_numbers = #tpu.dot_dimension_numbers<[1], [0], [0], [1], [0, 0, 1, 1], [], []>} : vector<8x32xbf16>, vector<32x128xbf16>, vector<8x128xf32> -> vector<8x128xf32>
    %434 = arith.addf %431, %433 : vector<8x128xf32>
    %435 = arith.negf %434 : vector<8x128xf32>
    %436 = math.exp %435 : vector<8x128xf32>
    %cst_162 = arith.constant 1.000000e+00 : f32
    %437 = vector.broadcast %cst_162 : f32 to vector<8x128xf32>
    %438 = arith.addf %437, %436 : vector<8x128xf32>
    %439 = arith.divf %437, %438 : vector<8x128xf32>
    %440 = vector.extract_strided_slice %439 {offsets = [0, 64], sizes = [8, 32], strides = [1, 1]} : vector<8x128xf32> to vector<8x32xf32>
    %cst_163 = arith.constant 2.000000e+00 : f32
    %441 = vector.broadcast %cst_163 : f32 to vector<8x32xf32>
    %442 = arith.mulf %441, %440 : vector<8x32xf32>
    %cst_164 = arith.constant 1.000000e+00 : f32
    %443 = vector.broadcast %cst_164 : f32 to vector<8x32xf32>
    %444 = arith.subf %442, %443 : vector<8x32xf32>
    %445 = vector.extract_strided_slice %439 {offsets = [0, 0], sizes = [8, 32], strides = [1, 1]} : vector<8x128xf32> to vector<8x32xf32>
    %446 = arith.mulf %445, %426 : vector<8x32xf32>
    %447 = vector.extract_strided_slice %439 {offsets = [0, 32], sizes = [8, 32], strides = [1, 1]} : vector<8x128xf32> to vector<8x32xf32>
    %448 = arith.mulf %447, %444 : vector<8x32xf32>
    %449 = arith.addf %446, %448 : vector<8x32xf32>
    %450 = vector.extract_strided_slice %439 {offsets = [0, 96], sizes = [8, 32], strides = [1, 1]} : vector<8x128xf32> to vector<8x32xf32>
    %451 = math.tanh %449 : vector<8x32xf32>
    %452 = arith.mulf %450, %451 : vector<8x32xf32>
    %c72_165 = arith.constant 72 : index
    %c0_166 = arith.constant 0 : index
    %453 = vector.load %arg12[%c72_165, %c0_166] : memref<224x32xf32, #tpu.memory_space<vmem>>, vector<8x32xf32>
    tpu.vector_store %arg12[%c72_165, %c0_166], %452 {strides = array<i32>} : memref<224x32xf32, #tpu.memory_space<vmem>>, vector<8x32xf32>,
    %c80 = arith.constant 80 : index
    %c0_167 = arith.constant 0 : index
    %454 = vector.load %arg11[%c80, %c0_167] : memref<224x128xf32, #tpu.memory_space<vmem>>, vector<8x128xf32>
    %455 = arith.truncf %452 : vector<8x32xf32> to vector<8x32xbf16>
    %cst_168 = arith.constant dense<0.000000e+00> : vector<8x128xf32>
    %456 = tpu.matmul %455, %8, %cst_168 {dimension_numbers = #tpu.dot_dimension_numbers<[1], [0], [0], [1], [0, 0, 1, 1], [], []>} : vector<8x32xbf16>, vector<32x128xbf16>, vector<8x128xf32> -> vector<8x128xf32>
    %457 = arith.addf %454, %456 : vector<8x128xf32>
    %458 = arith.negf %457 : vector<8x128xf32>
    %459 = math.exp %458 : vector<8x128xf32>
    %cst_169 = arith.constant 1.000000e+00 : f32
    %460 = vector.broadcast %cst_169 : f32 to vector<8x128xf32>
    %461 = arith.addf %460, %459 : vector<8x128xf32>
    %462 = arith.divf %460, %461 : vector<8x128xf32>
    %463 = vector.extract_strided_slice %462 {offsets = [0, 64], sizes = [8, 32], strides = [1, 1]} : vector<8x128xf32> to vector<8x32xf32>
    %cst_170 = arith.constant 2.000000e+00 : f32
    %464 = vector.broadcast %cst_170 : f32 to vector<8x32xf32>
    %465 = arith.mulf %464, %463 : vector<8x32xf32>
    %cst_171 = arith.constant 1.000000e+00 : f32
    %466 = vector.broadcast %cst_171 : f32 to vector<8x32xf32>
    %467 = arith.subf %465, %466 : vector<8x32xf32>
    %468 = vector.extract_strided_slice %462 {offsets = [0, 0], sizes = [8, 32], strides = [1, 1]} : vector<8x128xf32> to vector<8x32xf32>
    %469 = arith.mulf %468, %449 : vector<8x32xf32>
    %470 = vector.extract_strided_slice %462 {offsets = [0, 32], sizes = [8, 32], strides = [1, 1]} : vector<8x128xf32> to vector<8x32xf32>
    %471 = arith.mulf %470, %467 : vector<8x32xf32>
    %472 = arith.addf %469, %471 : vector<8x32xf32>
    %473 = vector.extract_strided_slice %462 {offsets = [0, 96], sizes = [8, 32], strides = [1, 1]} : vector<8x128xf32> to vector<8x32xf32>
    %474 = math.tanh %472 : vector<8x32xf32>
    %475 = arith.mulf %473, %474 : vector<8x32xf32>
    %c80_172 = arith.constant 80 : index
    %c0_173 = arith.constant 0 : index
    %476 = vector.load %arg12[%c80_172, %c0_173] : memref<224x32xf32, #tpu.memory_space<vmem>>, vector<8x32xf32>
    tpu.vector_store %arg12[%c80_172, %c0_173], %475 {strides = array<i32>} : memref<224x32xf32, #tpu.memory_space<vmem>>, vector<8x32xf32>,
    %c88 = arith.constant 88 : index
    %c0_174 = arith.constant 0 : index
    %477 = vector.load %arg11[%c88, %c0_174] : memref<224x128xf32, #tpu.memory_space<vmem>>, vector<8x128xf32>
    %478 = arith.truncf %475 : vector<8x32xf32> to vector<8x32xbf16>
    %cst_175 = arith.constant dense<0.000000e+00> : vector<8x128xf32>
    %479 = tpu.matmul %478, %8, %cst_175 {dimension_numbers = #tpu.dot_dimension_numbers<[1], [0], [0], [1], [0, 0, 1, 1], [], []>} : vector<8x32xbf16>, vector<32x128xbf16>, vector<8x128xf32> -> vector<8x128xf32>
    %480 = arith.addf %477, %479 : vector<8x128xf32>
    %481 = arith.negf %480 : vector<8x128xf32>
    %482 = math.exp %481 : vector<8x128xf32>
    %cst_176 = arith.constant 1.000000e+00 : f32
    %483 = vector.broadcast %cst_176 : f32 to vector<8x128xf32>
    %484 = arith.addf %483, %482 : vector<8x128xf32>
    %485 = arith.divf %483, %484 : vector<8x128xf32>
    %486 = vector.extract_strided_slice %485 {offsets = [0, 64], sizes = [8, 32], strides = [1, 1]} : vector<8x128xf32> to vector<8x32xf32>
    %cst_177 = arith.constant 2.000000e+00 : f32
    %487 = vector.broadcast %cst_177 : f32 to vector<8x32xf32>
    %488 = arith.mulf %487, %486 : vector<8x32xf32>
    %cst_178 = arith.constant 1.000000e+00 : f32
    %489 = vector.broadcast %cst_178 : f32 to vector<8x32xf32>
    %490 = arith.subf %488, %489 : vector<8x32xf32>
    %491 = vector.extract_strided_slice %485 {offsets = [0, 0], sizes = [8, 32], strides = [1, 1]} : vector<8x128xf32> to vector<8x32xf32>
    %492 = arith.mulf %491, %472 : vector<8x32xf32>
    %493 = vector.extract_strided_slice %485 {offsets = [0, 32], sizes = [8, 32], strides = [1, 1]} : vector<8x128xf32> to vector<8x32xf32>
    %494 = arith.mulf %493, %490 : vector<8x32xf32>
    %495 = arith.addf %492, %494 : vector<8x32xf32>
    %496 = vector.extract_strided_slice %485 {offsets = [0, 96], sizes = [8, 32], strides = [1, 1]} : vector<8x128xf32> to vector<8x32xf32>
    %497 = math.tanh %495 : vector<8x32xf32>
    %498 = arith.mulf %496, %497 : vector<8x32xf32>
    %c88_179 = arith.constant 88 : index
    %c0_180 = arith.constant 0 : index
    %499 = vector.load %arg12[%c88_179, %c0_180] : memref<224x32xf32, #tpu.memory_space<vmem>>, vector<8x32xf32>
    tpu.vector_store %arg12[%c88_179, %c0_180], %498 {strides = array<i32>} : memref<224x32xf32, #tpu.memory_space<vmem>>, vector<8x32xf32>,
    %c96_181 = arith.constant 96 : index
    %c0_182 = arith.constant 0 : index
    %500 = vector.load %arg11[%c96_181, %c0_182] : memref<224x128xf32, #tpu.memory_space<vmem>>, vector<8x128xf32>
    %501 = arith.truncf %498 : vector<8x32xf32> to vector<8x32xbf16>
    %cst_183 = arith.constant dense<0.000000e+00> : vector<8x128xf32>
    %502 = tpu.matmul %501, %8, %cst_183 {dimension_numbers = #tpu.dot_dimension_numbers<[1], [0], [0], [1], [0, 0, 1, 1], [], []>} : vector<8x32xbf16>, vector<32x128xbf16>, vector<8x128xf32> -> vector<8x128xf32>
    %503 = arith.addf %500, %502 : vector<8x128xf32>
    %504 = arith.negf %503 : vector<8x128xf32>
    %505 = math.exp %504 : vector<8x128xf32>
    %cst_184 = arith.constant 1.000000e+00 : f32
    %506 = vector.broadcast %cst_184 : f32 to vector<8x128xf32>
    %507 = arith.addf %506, %505 : vector<8x128xf32>
    %508 = arith.divf %506, %507 : vector<8x128xf32>
    %509 = vector.extract_strided_slice %508 {offsets = [0, 64], sizes = [8, 32], strides = [1, 1]} : vector<8x128xf32> to vector<8x32xf32>
    %cst_185 = arith.constant 2.000000e+00 : f32
    %510 = vector.broadcast %cst_185 : f32 to vector<8x32xf32>
    %511 = arith.mulf %510, %509 : vector<8x32xf32>
    %cst_186 = arith.constant 1.000000e+00 : f32
    %512 = vector.broadcast %cst_186 : f32 to vector<8x32xf32>
    %513 = arith.subf %511, %512 : vector<8x32xf32>
    %514 = vector.extract_strided_slice %508 {offsets = [0, 0], sizes = [8, 32], strides = [1, 1]} : vector<8x128xf32> to vector<8x32xf32>
    %515 = arith.mulf %514, %495 : vector<8x32xf32>
    %516 = vector.extract_strided_slice %508 {offsets = [0, 32], sizes = [8, 32], strides = [1, 1]} : vector<8x128xf32> to vector<8x32xf32>
    %517 = arith.mulf %516, %513 : vector<8x32xf32>
    %518 = arith.addf %515, %517 : vector<8x32xf32>
    %519 = vector.extract_strided_slice %508 {offsets = [0, 96], sizes = [8, 32], strides = [1, 1]} : vector<8x128xf32> to vector<8x32xf32>
    %520 = math.tanh %518 : vector<8x32xf32>
    %521 = arith.mulf %519, %520 : vector<8x32xf32>
    %c96_187 = arith.constant 96 : index
    %c0_188 = arith.constant 0 : index
    %522 = vector.load %arg12[%c96_187, %c0_188] : memref<224x32xf32, #tpu.memory_space<vmem>>, vector<8x32xf32>
    tpu.vector_store %arg12[%c96_187, %c0_188], %521 {strides = array<i32>} : memref<224x32xf32, #tpu.memory_space<vmem>>, vector<8x32xf32>,
    %c104 = arith.constant 104 : index
    %c0_189 = arith.constant 0 : index
    %523 = vector.load %arg11[%c104, %c0_189] : memref<224x128xf32, #tpu.memory_space<vmem>>, vector<8x128xf32>
    %524 = arith.truncf %521 : vector<8x32xf32> to vector<8x32xbf16>
    %cst_190 = arith.constant dense<0.000000e+00> : vector<8x128xf32>
    %525 = tpu.matmul %524, %8, %cst_190 {dimension_numbers = #tpu.dot_dimension_numbers<[1], [0], [0], [1], [0, 0, 1, 1], [], []>} : vector<8x32xbf16>, vector<32x128xbf16>, vector<8x128xf32> -> vector<8x128xf32>
    %526 = arith.addf %523, %525 : vector<8x128xf32>
    %527 = arith.negf %526 : vector<8x128xf32>
    %528 = math.exp %527 : vector<8x128xf32>
    %cst_191 = arith.constant 1.000000e+00 : f32
    %529 = vector.broadcast %cst_191 : f32 to vector<8x128xf32>
    %530 = arith.addf %529, %528 : vector<8x128xf32>
    %531 = arith.divf %529, %530 : vector<8x128xf32>
    %532 = vector.extract_strided_slice %531 {offsets = [0, 64], sizes = [8, 32], strides = [1, 1]} : vector<8x128xf32> to vector<8x32xf32>
    %cst_192 = arith.constant 2.000000e+00 : f32
    %533 = vector.broadcast %cst_192 : f32 to vector<8x32xf32>
    %534 = arith.mulf %533, %532 : vector<8x32xf32>
    %cst_193 = arith.constant 1.000000e+00 : f32
    %535 = vector.broadcast %cst_193 : f32 to vector<8x32xf32>
    %536 = arith.subf %534, %535 : vector<8x32xf32>
    %537 = vector.extract_strided_slice %531 {offsets = [0, 0], sizes = [8, 32], strides = [1, 1]} : vector<8x128xf32> to vector<8x32xf32>
    %538 = arith.mulf %537, %518 : vector<8x32xf32>
    %539 = vector.extract_strided_slice %531 {offsets = [0, 32], sizes = [8, 32], strides = [1, 1]} : vector<8x128xf32> to vector<8x32xf32>
    %540 = arith.mulf %539, %536 : vector<8x32xf32>
    %541 = arith.addf %538, %540 : vector<8x32xf32>
    %542 = vector.extract_strided_slice %531 {offsets = [0, 96], sizes = [8, 32], strides = [1, 1]} : vector<8x128xf32> to vector<8x32xf32>
    %543 = math.tanh %541 : vector<8x32xf32>
    %544 = arith.mulf %542, %543 : vector<8x32xf32>
    %c104_194 = arith.constant 104 : index
    %c0_195 = arith.constant 0 : index
    %545 = vector.load %arg12[%c104_194, %c0_195] : memref<224x32xf32, #tpu.memory_space<vmem>>, vector<8x32xf32>
    tpu.vector_store %arg12[%c104_194, %c0_195], %544 {strides = array<i32>} : memref<224x32xf32, #tpu.memory_space<vmem>>, vector<8x32xf32>,
    %c112 = arith.constant 112 : index
    %c0_196 = arith.constant 0 : index
    %546 = vector.load %arg11[%c112, %c0_196] : memref<224x128xf32, #tpu.memory_space<vmem>>, vector<8x128xf32>
    %547 = arith.truncf %544 : vector<8x32xf32> to vector<8x32xbf16>
    %cst_197 = arith.constant dense<0.000000e+00> : vector<8x128xf32>
    %548 = tpu.matmul %547, %8, %cst_197 {dimension_numbers = #tpu.dot_dimension_numbers<[1], [0], [0], [1], [0, 0, 1, 1], [], []>} : vector<8x32xbf16>, vector<32x128xbf16>, vector<8x128xf32> -> vector<8x128xf32>
    %549 = arith.addf %546, %548 : vector<8x128xf32>
    %550 = arith.negf %549 : vector<8x128xf32>
    %551 = math.exp %550 : vector<8x128xf32>
    %cst_198 = arith.constant 1.000000e+00 : f32
    %552 = vector.broadcast %cst_198 : f32 to vector<8x128xf32>
    %553 = arith.addf %552, %551 : vector<8x128xf32>
    %554 = arith.divf %552, %553 : vector<8x128xf32>
    %555 = vector.extract_strided_slice %554 {offsets = [0, 64], sizes = [8, 32], strides = [1, 1]} : vector<8x128xf32> to vector<8x32xf32>
    %cst_199 = arith.constant 2.000000e+00 : f32
    %556 = vector.broadcast %cst_199 : f32 to vector<8x32xf32>
    %557 = arith.mulf %556, %555 : vector<8x32xf32>
    %cst_200 = arith.constant 1.000000e+00 : f32
    %558 = vector.broadcast %cst_200 : f32 to vector<8x32xf32>
    %559 = arith.subf %557, %558 : vector<8x32xf32>
    %560 = vector.extract_strided_slice %554 {offsets = [0, 0], sizes = [8, 32], strides = [1, 1]} : vector<8x128xf32> to vector<8x32xf32>
    %561 = arith.mulf %560, %541 : vector<8x32xf32>
    %562 = vector.extract_strided_slice %554 {offsets = [0, 32], sizes = [8, 32], strides = [1, 1]} : vector<8x128xf32> to vector<8x32xf32>
    %563 = arith.mulf %562, %559 : vector<8x32xf32>
    %564 = arith.addf %561, %563 : vector<8x32xf32>
    %565 = vector.extract_strided_slice %554 {offsets = [0, 96], sizes = [8, 32], strides = [1, 1]} : vector<8x128xf32> to vector<8x32xf32>
    %566 = math.tanh %564 : vector<8x32xf32>
    %567 = arith.mulf %565, %566 : vector<8x32xf32>
    %c112_201 = arith.constant 112 : index
    %c0_202 = arith.constant 0 : index
    %568 = vector.load %arg12[%c112_201, %c0_202] : memref<224x32xf32, #tpu.memory_space<vmem>>, vector<8x32xf32>
    tpu.vector_store %arg12[%c112_201, %c0_202], %567 {strides = array<i32>} : memref<224x32xf32, #tpu.memory_space<vmem>>, vector<8x32xf32>,
    %c120 = arith.constant 120 : index
    %c0_203 = arith.constant 0 : index
    %569 = vector.load %arg11[%c120, %c0_203] : memref<224x128xf32, #tpu.memory_space<vmem>>, vector<8x128xf32>
    %570 = arith.truncf %567 : vector<8x32xf32> to vector<8x32xbf16>
    %cst_204 = arith.constant dense<0.000000e+00> : vector<8x128xf32>
    %571 = tpu.matmul %570, %8, %cst_204 {dimension_numbers = #tpu.dot_dimension_numbers<[1], [0], [0], [1], [0, 0, 1, 1], [], []>} : vector<8x32xbf16>, vector<32x128xbf16>, vector<8x128xf32> -> vector<8x128xf32>
    %572 = arith.addf %569, %571 : vector<8x128xf32>
    %573 = arith.negf %572 : vector<8x128xf32>
    %574 = math.exp %573 : vector<8x128xf32>
    %cst_205 = arith.constant 1.000000e+00 : f32
    %575 = vector.broadcast %cst_205 : f32 to vector<8x128xf32>
    %576 = arith.addf %575, %574 : vector<8x128xf32>
    %577 = arith.divf %575, %576 : vector<8x128xf32>
    %578 = vector.extract_strided_slice %577 {offsets = [0, 64], sizes = [8, 32], strides = [1, 1]} : vector<8x128xf32> to vector<8x32xf32>
    %cst_206 = arith.constant 2.000000e+00 : f32
    %579 = vector.broadcast %cst_206 : f32 to vector<8x32xf32>
    %580 = arith.mulf %579, %578 : vector<8x32xf32>
    %cst_207 = arith.constant 1.000000e+00 : f32
    %581 = vector.broadcast %cst_207 : f32 to vector<8x32xf32>
    %582 = arith.subf %580, %581 : vector<8x32xf32>
    %583 = vector.extract_strided_slice %577 {offsets = [0, 0], sizes = [8, 32], strides = [1, 1]} : vector<8x128xf32> to vector<8x32xf32>
    %584 = arith.mulf %583, %564 : vector<8x32xf32>
    %585 = vector.extract_strided_slice %577 {offsets = [0, 32], sizes = [8, 32], strides = [1, 1]} : vector<8x128xf32> to vector<8x32xf32>
    %586 = arith.mulf %585, %582 : vector<8x32xf32>
    %587 = arith.addf %584, %586 : vector<8x32xf32>
    %588 = vector.extract_strided_slice %577 {offsets = [0, 96], sizes = [8, 32], strides = [1, 1]} : vector<8x128xf32> to vector<8x32xf32>
    %589 = math.tanh %587 : vector<8x32xf32>
    %590 = arith.mulf %588, %589 : vector<8x32xf32>
    %c120_208 = arith.constant 120 : index
    %c0_209 = arith.constant 0 : index
    %591 = vector.load %arg12[%c120_208, %c0_209] : memref<224x32xf32, #tpu.memory_space<vmem>>, vector<8x32xf32>
    tpu.vector_store %arg12[%c120_208, %c0_209], %590 {strides = array<i32>} : memref<224x32xf32, #tpu.memory_space<vmem>>, vector<8x32xf32>,
    %c128_210 = arith.constant 128 : index
    %c0_211 = arith.constant 0 : index
    %592 = vector.load %arg11[%c128_210, %c0_211] : memref<224x128xf32, #tpu.memory_space<vmem>>, vector<8x128xf32>
    %593 = arith.truncf %590 : vector<8x32xf32> to vector<8x32xbf16>
    %cst_212 = arith.constant dense<0.000000e+00> : vector<8x128xf32>
    %594 = tpu.matmul %593, %8, %cst_212 {dimension_numbers = #tpu.dot_dimension_numbers<[1], [0], [0], [1], [0, 0, 1, 1], [], []>} : vector<8x32xbf16>, vector<32x128xbf16>, vector<8x128xf32> -> vector<8x128xf32>
    %595 = arith.addf %592, %594 : vector<8x128xf32>
    %596 = arith.negf %595 : vector<8x128xf32>
    %597 = math.exp %596 : vector<8x128xf32>
    %cst_213 = arith.constant 1.000000e+00 : f32
    %598 = vector.broadcast %cst_213 : f32 to vector<8x128xf32>
    %599 = arith.addf %598, %597 : vector<8x128xf32>
    %600 = arith.divf %598, %599 : vector<8x128xf32>
    %601 = vector.extract_strided_slice %600 {offsets = [0, 64], sizes = [8, 32], strides = [1, 1]} : vector<8x128xf32> to vector<8x32xf32>
    %cst_214 = arith.constant 2.000000e+00 : f32
    %602 = vector.broadcast %cst_214 : f32 to vector<8x32xf32>
    %603 = arith.mulf %602, %601 : vector<8x32xf32>
    %cst_215 = arith.constant 1.000000e+00 : f32
    %604 = vector.broadcast %cst_215 : f32 to vector<8x32xf32>
    %605 = arith.subf %603, %604 : vector<8x32xf32>
    %606 = vector.extract_strided_slice %600 {offsets = [0, 0], sizes = [8, 32], strides = [1, 1]} : vector<8x128xf32> to vector<8x32xf32>
    %607 = arith.mulf %606, %587 : vector<8x32xf32>
    %608 = vector.extract_strided_slice %600 {offsets = [0, 32], sizes = [8, 32], strides = [1, 1]} : vector<8x128xf32> to vector<8x32xf32>
    %609 = arith.mulf %608, %605 : vector<8x32xf32>
    %610 = arith.addf %607, %609 : vector<8x32xf32>
    %611 = vector.extract_strided_slice %600 {offsets = [0, 96], sizes = [8, 32], strides = [1, 1]} : vector<8x128xf32> to vector<8x32xf32>
    %612 = math.tanh %610 : vector<8x32xf32>
    %613 = arith.mulf %611, %612 : vector<8x32xf32>
    %c128_216 = arith.constant 128 : index
    %c0_217 = arith.constant 0 : index
    %614 = vector.load %arg12[%c128_216, %c0_217] : memref<224x32xf32, #tpu.memory_space<vmem>>, vector<8x32xf32>
    tpu.vector_store %arg12[%c128_216, %c0_217], %613 {strides = array<i32>} : memref<224x32xf32, #tpu.memory_space<vmem>>, vector<8x32xf32>,
    %c136 = arith.constant 136 : index
    %c0_218 = arith.constant 0 : index
    %615 = vector.load %arg11[%c136, %c0_218] : memref<224x128xf32, #tpu.memory_space<vmem>>, vector<8x128xf32>
    %616 = arith.truncf %613 : vector<8x32xf32> to vector<8x32xbf16>
    %cst_219 = arith.constant dense<0.000000e+00> : vector<8x128xf32>
    %617 = tpu.matmul %616, %8, %cst_219 {dimension_numbers = #tpu.dot_dimension_numbers<[1], [0], [0], [1], [0, 0, 1, 1], [], []>} : vector<8x32xbf16>, vector<32x128xbf16>, vector<8x128xf32> -> vector<8x128xf32>
    %618 = arith.addf %615, %617 : vector<8x128xf32>
    %619 = arith.negf %618 : vector<8x128xf32>
    %620 = math.exp %619 : vector<8x128xf32>
    %cst_220 = arith.constant 1.000000e+00 : f32
    %621 = vector.broadcast %cst_220 : f32 to vector<8x128xf32>
    %622 = arith.addf %621, %620 : vector<8x128xf32>
    %623 = arith.divf %621, %622 : vector<8x128xf32>
    %624 = vector.extract_strided_slice %623 {offsets = [0, 64], sizes = [8, 32], strides = [1, 1]} : vector<8x128xf32> to vector<8x32xf32>
    %cst_221 = arith.constant 2.000000e+00 : f32
    %625 = vector.broadcast %cst_221 : f32 to vector<8x32xf32>
    %626 = arith.mulf %625, %624 : vector<8x32xf32>
    %cst_222 = arith.constant 1.000000e+00 : f32
    %627 = vector.broadcast %cst_222 : f32 to vector<8x32xf32>
    %628 = arith.subf %626, %627 : vector<8x32xf32>
    %629 = vector.extract_strided_slice %623 {offsets = [0, 0], sizes = [8, 32], strides = [1, 1]} : vector<8x128xf32> to vector<8x32xf32>
    %630 = arith.mulf %629, %610 : vector<8x32xf32>
    %631 = vector.extract_strided_slice %623 {offsets = [0, 32], sizes = [8, 32], strides = [1, 1]} : vector<8x128xf32> to vector<8x32xf32>
    %632 = arith.mulf %631, %628 : vector<8x32xf32>
    %633 = arith.addf %630, %632 : vector<8x32xf32>
    %634 = vector.extract_strided_slice %623 {offsets = [0, 96], sizes = [8, 32], strides = [1, 1]} : vector<8x128xf32> to vector<8x32xf32>
    %635 = math.tanh %633 : vector<8x32xf32>
    %636 = arith.mulf %634, %635 : vector<8x32xf32>
    %c136_223 = arith.constant 136 : index
    %c0_224 = arith.constant 0 : index
    %637 = vector.load %arg12[%c136_223, %c0_224] : memref<224x32xf32, #tpu.memory_space<vmem>>, vector<8x32xf32>
    tpu.vector_store %arg12[%c136_223, %c0_224], %636 {strides = array<i32>} : memref<224x32xf32, #tpu.memory_space<vmem>>, vector<8x32xf32>,
    %c144 = arith.constant 144 : index
    %c0_225 = arith.constant 0 : index
    %638 = vector.load %arg11[%c144, %c0_225] : memref<224x128xf32, #tpu.memory_space<vmem>>, vector<8x128xf32>
    %639 = arith.truncf %636 : vector<8x32xf32> to vector<8x32xbf16>
    %cst_226 = arith.constant dense<0.000000e+00> : vector<8x128xf32>
    %640 = tpu.matmul %639, %8, %cst_226 {dimension_numbers = #tpu.dot_dimension_numbers<[1], [0], [0], [1], [0, 0, 1, 1], [], []>} : vector<8x32xbf16>, vector<32x128xbf16>, vector<8x128xf32> -> vector<8x128xf32>
    %641 = arith.addf %638, %640 : vector<8x128xf32>
    %642 = arith.negf %641 : vector<8x128xf32>
    %643 = math.exp %642 : vector<8x128xf32>
    %cst_227 = arith.constant 1.000000e+00 : f32
    %644 = vector.broadcast %cst_227 : f32 to vector<8x128xf32>
    %645 = arith.addf %644, %643 : vector<8x128xf32>
    %646 = arith.divf %644, %645 : vector<8x128xf32>
    %647 = vector.extract_strided_slice %646 {offsets = [0, 64], sizes = [8, 32], strides = [1, 1]} : vector<8x128xf32> to vector<8x32xf32>
    %cst_228 = arith.constant 2.000000e+00 : f32
    %648 = vector.broadcast %cst_228 : f32 to vector<8x32xf32>
    %649 = arith.mulf %648, %647 : vector<8x32xf32>
    %cst_229 = arith.constant 1.000000e+00 : f32
    %650 = vector.broadcast %cst_229 : f32 to vector<8x32xf32>
    %651 = arith.subf %649, %650 : vector<8x32xf32>
    %652 = vector.extract_strided_slice %646 {offsets = [0, 0], sizes = [8, 32], strides = [1, 1]} : vector<8x128xf32> to vector<8x32xf32>
    %653 = arith.mulf %652, %633 : vector<8x32xf32>
    %654 = vector.extract_strided_slice %646 {offsets = [0, 32], sizes = [8, 32], strides = [1, 1]} : vector<8x128xf32> to vector<8x32xf32>
    %655 = arith.mulf %654, %651 : vector<8x32xf32>
    %656 = arith.addf %653, %655 : vector<8x32xf32>
    %657 = vector.extract_strided_slice %646 {offsets = [0, 96], sizes = [8, 32], strides = [1, 1]} : vector<8x128xf32> to vector<8x32xf32>
    %658 = math.tanh %656 : vector<8x32xf32>
    %659 = arith.mulf %657, %658 : vector<8x32xf32>
    %c144_230 = arith.constant 144 : index
    %c0_231 = arith.constant 0 : index
    %660 = vector.load %arg12[%c144_230, %c0_231] : memref<224x32xf32, #tpu.memory_space<vmem>>, vector<8x32xf32>
    tpu.vector_store %arg12[%c144_230, %c0_231], %659 {strides = array<i32>} : memref<224x32xf32, #tpu.memory_space<vmem>>, vector<8x32xf32>,
    %c152 = arith.constant 152 : index
    %c0_232 = arith.constant 0 : index
    %661 = vector.load %arg11[%c152, %c0_232] : memref<224x128xf32, #tpu.memory_space<vmem>>, vector<8x128xf32>
    %662 = arith.truncf %659 : vector<8x32xf32> to vector<8x32xbf16>
    %cst_233 = arith.constant dense<0.000000e+00> : vector<8x128xf32>
    %663 = tpu.matmul %662, %8, %cst_233 {dimension_numbers = #tpu.dot_dimension_numbers<[1], [0], [0], [1], [0, 0, 1, 1], [], []>} : vector<8x32xbf16>, vector<32x128xbf16>, vector<8x128xf32> -> vector<8x128xf32>
    %664 = arith.addf %661, %663 : vector<8x128xf32>
    %665 = arith.negf %664 : vector<8x128xf32>
    %666 = math.exp %665 : vector<8x128xf32>
    %cst_234 = arith.constant 1.000000e+00 : f32
    %667 = vector.broadcast %cst_234 : f32 to vector<8x128xf32>
    %668 = arith.addf %667, %666 : vector<8x128xf32>
    %669 = arith.divf %667, %668 : vector<8x128xf32>
    %670 = vector.extract_strided_slice %669 {offsets = [0, 64], sizes = [8, 32], strides = [1, 1]} : vector<8x128xf32> to vector<8x32xf32>
    %cst_235 = arith.constant 2.000000e+00 : f32
    %671 = vector.broadcast %cst_235 : f32 to vector<8x32xf32>
    %672 = arith.mulf %671, %670 : vector<8x32xf32>
    %cst_236 = arith.constant 1.000000e+00 : f32
    %673 = vector.broadcast %cst_236 : f32 to vector<8x32xf32>
    %674 = arith.subf %672, %673 : vector<8x32xf32>
    %675 = vector.extract_strided_slice %669 {offsets = [0, 0], sizes = [8, 32], strides = [1, 1]} : vector<8x128xf32> to vector<8x32xf32>
    %676 = arith.mulf %675, %656 : vector<8x32xf32>
    %677 = vector.extract_strided_slice %669 {offsets = [0, 32], sizes = [8, 32], strides = [1, 1]} : vector<8x128xf32> to vector<8x32xf32>
    %678 = arith.mulf %677, %674 : vector<8x32xf32>
    %679 = arith.addf %676, %678 : vector<8x32xf32>
    %680 = vector.extract_strided_slice %669 {offsets = [0, 96], sizes = [8, 32], strides = [1, 1]} : vector<8x128xf32> to vector<8x32xf32>
    %681 = math.tanh %679 : vector<8x32xf32>
    %682 = arith.mulf %680, %681 : vector<8x32xf32>
    %c152_237 = arith.constant 152 : index
    %c0_238 = arith.constant 0 : index
    %683 = vector.load %arg12[%c152_237, %c0_238] : memref<224x32xf32, #tpu.memory_space<vmem>>, vector<8x32xf32>
    tpu.vector_store %arg12[%c152_237, %c0_238], %682 {strides = array<i32>} : memref<224x32xf32, #tpu.memory_space<vmem>>, vector<8x32xf32>,
    %c160_239 = arith.constant 160 : index
    %c0_240 = arith.constant 0 : index
    %684 = vector.load %arg11[%c160_239, %c0_240] : memref<224x128xf32, #tpu.memory_space<vmem>>, vector<8x128xf32>
    %685 = arith.truncf %682 : vector<8x32xf32> to vector<8x32xbf16>
    %cst_241 = arith.constant dense<0.000000e+00> : vector<8x128xf32>
    %686 = tpu.matmul %685, %8, %cst_241 {dimension_numbers = #tpu.dot_dimension_numbers<[1], [0], [0], [1], [0, 0, 1, 1], [], []>} : vector<8x32xbf16>, vector<32x128xbf16>, vector<8x128xf32> -> vector<8x128xf32>
    %687 = arith.addf %684, %686 : vector<8x128xf32>
    %688 = arith.negf %687 : vector<8x128xf32>
    %689 = math.exp %688 : vector<8x128xf32>
    %cst_242 = arith.constant 1.000000e+00 : f32
    %690 = vector.broadcast %cst_242 : f32 to vector<8x128xf32>
    %691 = arith.addf %690, %689 : vector<8x128xf32>
    %692 = arith.divf %690, %691 : vector<8x128xf32>
    %693 = vector.extract_strided_slice %692 {offsets = [0, 64], sizes = [8, 32], strides = [1, 1]} : vector<8x128xf32> to vector<8x32xf32>
    %cst_243 = arith.constant 2.000000e+00 : f32
    %694 = vector.broadcast %cst_243 : f32 to vector<8x32xf32>
    %695 = arith.mulf %694, %693 : vector<8x32xf32>
    %cst_244 = arith.constant 1.000000e+00 : f32
    %696 = vector.broadcast %cst_244 : f32 to vector<8x32xf32>
    %697 = arith.subf %695, %696 : vector<8x32xf32>
    %698 = vector.extract_strided_slice %692 {offsets = [0, 0], sizes = [8, 32], strides = [1, 1]} : vector<8x128xf32> to vector<8x32xf32>
    %699 = arith.mulf %698, %679 : vector<8x32xf32>
    %700 = vector.extract_strided_slice %692 {offsets = [0, 32], sizes = [8, 32], strides = [1, 1]} : vector<8x128xf32> to vector<8x32xf32>
    %701 = arith.mulf %700, %697 : vector<8x32xf32>
    %702 = arith.addf %699, %701 : vector<8x32xf32>
    %703 = vector.extract_strided_slice %692 {offsets = [0, 96], sizes = [8, 32], strides = [1, 1]} : vector<8x128xf32> to vector<8x32xf32>
    %704 = math.tanh %702 : vector<8x32xf32>
    %705 = arith.mulf %703, %704 : vector<8x32xf32>
    %c160_245 = arith.constant 160 : index
    %c0_246 = arith.constant 0 : index
    %706 = vector.load %arg12[%c160_245, %c0_246] : memref<224x32xf32, #tpu.memory_space<vmem>>, vector<8x32xf32>
    tpu.vector_store %arg12[%c160_245, %c0_246], %705 {strides = array<i32>} : memref<224x32xf32, #tpu.memory_space<vmem>>, vector<8x32xf32>,
    %c168 = arith.constant 168 : index
    %c0_247 = arith.constant 0 : index
    %707 = vector.load %arg11[%c168, %c0_247] : memref<224x128xf32, #tpu.memory_space<vmem>>, vector<8x128xf32>
    %708 = arith.truncf %705 : vector<8x32xf32> to vector<8x32xbf16>
    %cst_248 = arith.constant dense<0.000000e+00> : vector<8x128xf32>
    %709 = tpu.matmul %708, %8, %cst_248 {dimension_numbers = #tpu.dot_dimension_numbers<[1], [0], [0], [1], [0, 0, 1, 1], [], []>} : vector<8x32xbf16>, vector<32x128xbf16>, vector<8x128xf32> -> vector<8x128xf32>
    %710 = arith.addf %707, %709 : vector<8x128xf32>
    %711 = arith.negf %710 : vector<8x128xf32>
    %712 = math.exp %711 : vector<8x128xf32>
    %cst_249 = arith.constant 1.000000e+00 : f32
    %713 = vector.broadcast %cst_249 : f32 to vector<8x128xf32>
    %714 = arith.addf %713, %712 : vector<8x128xf32>
    %715 = arith.divf %713, %714 : vector<8x128xf32>
    %716 = vector.extract_strided_slice %715 {offsets = [0, 64], sizes = [8, 32], strides = [1, 1]} : vector<8x128xf32> to vector<8x32xf32>
    %cst_250 = arith.constant 2.000000e+00 : f32
    %717 = vector.broadcast %cst_250 : f32 to vector<8x32xf32>
    %718 = arith.mulf %717, %716 : vector<8x32xf32>
    %cst_251 = arith.constant 1.000000e+00 : f32
    %719 = vector.broadcast %cst_251 : f32 to vector<8x32xf32>
    %720 = arith.subf %718, %719 : vector<8x32xf32>
    %721 = vector.extract_strided_slice %715 {offsets = [0, 0], sizes = [8, 32], strides = [1, 1]} : vector<8x128xf32> to vector<8x32xf32>
    %722 = arith.mulf %721, %702 : vector<8x32xf32>
    %723 = vector.extract_strided_slice %715 {offsets = [0, 32], sizes = [8, 32], strides = [1, 1]} : vector<8x128xf32> to vector<8x32xf32>
    %724 = arith.mulf %723, %720 : vector<8x32xf32>
    %725 = arith.addf %722, %724 : vector<8x32xf32>
    %726 = vector.extract_strided_slice %715 {offsets = [0, 96], sizes = [8, 32], strides = [1, 1]} : vector<8x128xf32> to vector<8x32xf32>
    %727 = math.tanh %725 : vector<8x32xf32>
    %728 = arith.mulf %726, %727 : vector<8x32xf32>
    %c168_252 = arith.constant 168 : index
    %c0_253 = arith.constant 0 : index
    %729 = vector.load %arg12[%c168_252, %c0_253] : memref<224x32xf32, #tpu.memory_space<vmem>>, vector<8x32xf32>
    tpu.vector_store %arg12[%c168_252, %c0_253], %728 {strides = array<i32>} : memref<224x32xf32, #tpu.memory_space<vmem>>, vector<8x32xf32>,
    %c176 = arith.constant 176 : index
    %c0_254 = arith.constant 0 : index
    %730 = vector.load %arg11[%c176, %c0_254] : memref<224x128xf32, #tpu.memory_space<vmem>>, vector<8x128xf32>
    %731 = arith.truncf %728 : vector<8x32xf32> to vector<8x32xbf16>
    %cst_255 = arith.constant dense<0.000000e+00> : vector<8x128xf32>
    %732 = tpu.matmul %731, %8, %cst_255 {dimension_numbers = #tpu.dot_dimension_numbers<[1], [0], [0], [1], [0, 0, 1, 1], [], []>} : vector<8x32xbf16>, vector<32x128xbf16>, vector<8x128xf32> -> vector<8x128xf32>
    %733 = arith.addf %730, %732 : vector<8x128xf32>
    %734 = arith.negf %733 : vector<8x128xf32>
    %735 = math.exp %734 : vector<8x128xf32>
    %cst_256 = arith.constant 1.000000e+00 : f32
    %736 = vector.broadcast %cst_256 : f32 to vector<8x128xf32>
    %737 = arith.addf %736, %735 : vector<8x128xf32>
    %738 = arith.divf %736, %737 : vector<8x128xf32>
    %739 = vector.extract_strided_slice %738 {offsets = [0, 64], sizes = [8, 32], strides = [1, 1]} : vector<8x128xf32> to vector<8x32xf32>
    %cst_257 = arith.constant 2.000000e+00 : f32
    %740 = vector.broadcast %cst_257 : f32 to vector<8x32xf32>
    %741 = arith.mulf %740, %739 : vector<8x32xf32>
    %cst_258 = arith.constant 1.000000e+00 : f32
    %742 = vector.broadcast %cst_258 : f32 to vector<8x32xf32>
    %743 = arith.subf %741, %742 : vector<8x32xf32>
    %744 = vector.extract_strided_slice %738 {offsets = [0, 0], sizes = [8, 32], strides = [1, 1]} : vector<8x128xf32> to vector<8x32xf32>
    %745 = arith.mulf %744, %725 : vector<8x32xf32>
    %746 = vector.extract_strided_slice %738 {offsets = [0, 32], sizes = [8, 32], strides = [1, 1]} : vector<8x128xf32> to vector<8x32xf32>
    %747 = arith.mulf %746, %743 : vector<8x32xf32>
    %748 = arith.addf %745, %747 : vector<8x32xf32>
    %749 = vector.extract_strided_slice %738 {offsets = [0, 96], sizes = [8, 32], strides = [1, 1]} : vector<8x128xf32> to vector<8x32xf32>
    %750 = math.tanh %748 : vector<8x32xf32>
    %751 = arith.mulf %749, %750 : vector<8x32xf32>
    %c176_259 = arith.constant 176 : index
    %c0_260 = arith.constant 0 : index
    %752 = vector.load %arg12[%c176_259, %c0_260] : memref<224x32xf32, #tpu.memory_space<vmem>>, vector<8x32xf32>
    tpu.vector_store %arg12[%c176_259, %c0_260], %751 {strides = array<i32>} : memref<224x32xf32, #tpu.memory_space<vmem>>, vector<8x32xf32>,
    %c184 = arith.constant 184 : index
    %c0_261 = arith.constant 0 : index
    %753 = vector.load %arg11[%c184, %c0_261] : memref<224x128xf32, #tpu.memory_space<vmem>>, vector<8x128xf32>
    %754 = arith.truncf %751 : vector<8x32xf32> to vector<8x32xbf16>
    %cst_262 = arith.constant dense<0.000000e+00> : vector<8x128xf32>
    %755 = tpu.matmul %754, %8, %cst_262 {dimension_numbers = #tpu.dot_dimension_numbers<[1], [0], [0], [1], [0, 0, 1, 1], [], []>} : vector<8x32xbf16>, vector<32x128xbf16>, vector<8x128xf32> -> vector<8x128xf32>
    %756 = arith.addf %753, %755 : vector<8x128xf32>
    %757 = arith.negf %756 : vector<8x128xf32>
    %758 = math.exp %757 : vector<8x128xf32>
    %cst_263 = arith.constant 1.000000e+00 : f32
    %759 = vector.broadcast %cst_263 : f32 to vector<8x128xf32>
    %760 = arith.addf %759, %758 : vector<8x128xf32>
    %761 = arith.divf %759, %760 : vector<8x128xf32>
    %762 = vector.extract_strided_slice %761 {offsets = [0, 64], sizes = [8, 32], strides = [1, 1]} : vector<8x128xf32> to vector<8x32xf32>
    %cst_264 = arith.constant 2.000000e+00 : f32
    %763 = vector.broadcast %cst_264 : f32 to vector<8x32xf32>
    %764 = arith.mulf %763, %762 : vector<8x32xf32>
    %cst_265 = arith.constant 1.000000e+00 : f32
    %765 = vector.broadcast %cst_265 : f32 to vector<8x32xf32>
    %766 = arith.subf %764, %765 : vector<8x32xf32>
    %767 = vector.extract_strided_slice %761 {offsets = [0, 0], sizes = [8, 32], strides = [1, 1]} : vector<8x128xf32> to vector<8x32xf32>
    %768 = arith.mulf %767, %748 : vector<8x32xf32>
    %769 = vector.extract_strided_slice %761 {offsets = [0, 32], sizes = [8, 32], strides = [1, 1]} : vector<8x128xf32> to vector<8x32xf32>
    %770 = arith.mulf %769, %766 : vector<8x32xf32>
    %771 = arith.addf %768, %770 : vector<8x32xf32>
    %772 = vector.extract_strided_slice %761 {offsets = [0, 96], sizes = [8, 32], strides = [1, 1]} : vector<8x128xf32> to vector<8x32xf32>
    %773 = math.tanh %771 : vector<8x32xf32>
    %774 = arith.mulf %772, %773 : vector<8x32xf32>
    %c184_266 = arith.constant 184 : index
    %c0_267 = arith.constant 0 : index
    %775 = vector.load %arg12[%c184_266, %c0_267] : memref<224x32xf32, #tpu.memory_space<vmem>>, vector<8x32xf32>
    tpu.vector_store %arg12[%c184_266, %c0_267], %774 {strides = array<i32>} : memref<224x32xf32, #tpu.memory_space<vmem>>, vector<8x32xf32>,
    %c192_268 = arith.constant 192 : index
    %c0_269 = arith.constant 0 : index
    %776 = vector.load %arg11[%c192_268, %c0_269] : memref<224x128xf32, #tpu.memory_space<vmem>>, vector<8x128xf32>
    %777 = arith.truncf %774 : vector<8x32xf32> to vector<8x32xbf16>
    %cst_270 = arith.constant dense<0.000000e+00> : vector<8x128xf32>
    %778 = tpu.matmul %777, %8, %cst_270 {dimension_numbers = #tpu.dot_dimension_numbers<[1], [0], [0], [1], [0, 0, 1, 1], [], []>} : vector<8x32xbf16>, vector<32x128xbf16>, vector<8x128xf32> -> vector<8x128xf32>
    %779 = arith.addf %776, %778 : vector<8x128xf32>
    %780 = arith.negf %779 : vector<8x128xf32>
    %781 = math.exp %780 : vector<8x128xf32>
    %cst_271 = arith.constant 1.000000e+00 : f32
    %782 = vector.broadcast %cst_271 : f32 to vector<8x128xf32>
    %783 = arith.addf %782, %781 : vector<8x128xf32>
    %784 = arith.divf %782, %783 : vector<8x128xf32>
    %785 = vector.extract_strided_slice %784 {offsets = [0, 64], sizes = [8, 32], strides = [1, 1]} : vector<8x128xf32> to vector<8x32xf32>
    %cst_272 = arith.constant 2.000000e+00 : f32
    %786 = vector.broadcast %cst_272 : f32 to vector<8x32xf32>
    %787 = arith.mulf %786, %785 : vector<8x32xf32>
    %cst_273 = arith.constant 1.000000e+00 : f32
    %788 = vector.broadcast %cst_273 : f32 to vector<8x32xf32>
    %789 = arith.subf %787, %788 : vector<8x32xf32>
    %790 = vector.extract_strided_slice %784 {offsets = [0, 0], sizes = [8, 32], strides = [1, 1]} : vector<8x128xf32> to vector<8x32xf32>
    %791 = arith.mulf %790, %771 : vector<8x32xf32>
    %792 = vector.extract_strided_slice %784 {offsets = [0, 32], sizes = [8, 32], strides = [1, 1]} : vector<8x128xf32> to vector<8x32xf32>
    %793 = arith.mulf %792, %789 : vector<8x32xf32>
    %794 = arith.addf %791, %793 : vector<8x32xf32>
    %795 = vector.extract_strided_slice %784 {offsets = [0, 96], sizes = [8, 32], strides = [1, 1]} : vector<8x128xf32> to vector<8x32xf32>
    %796 = math.tanh %794 : vector<8x32xf32>
    %797 = arith.mulf %795, %796 : vector<8x32xf32>
    %c192_274 = arith.constant 192 : index
    %c0_275 = arith.constant 0 : index
    %798 = vector.load %arg12[%c192_274, %c0_275] : memref<224x32xf32, #tpu.memory_space<vmem>>, vector<8x32xf32>
    tpu.vector_store %arg12[%c192_274, %c0_275], %797 {strides = array<i32>} : memref<224x32xf32, #tpu.memory_space<vmem>>, vector<8x32xf32>,
    %c200 = arith.constant 200 : index
    %c0_276 = arith.constant 0 : index
    %799 = vector.load %arg11[%c200, %c0_276] : memref<224x128xf32, #tpu.memory_space<vmem>>, vector<8x128xf32>
    %800 = arith.truncf %797 : vector<8x32xf32> to vector<8x32xbf16>
    %cst_277 = arith.constant dense<0.000000e+00> : vector<8x128xf32>
    %801 = tpu.matmul %800, %8, %cst_277 {dimension_numbers = #tpu.dot_dimension_numbers<[1], [0], [0], [1], [0, 0, 1, 1], [], []>} : vector<8x32xbf16>, vector<32x128xbf16>, vector<8x128xf32> -> vector<8x128xf32>
    %802 = arith.addf %799, %801 : vector<8x128xf32>
    %803 = arith.negf %802 : vector<8x128xf32>
    %804 = math.exp %803 : vector<8x128xf32>
    %cst_278 = arith.constant 1.000000e+00 : f32
    %805 = vector.broadcast %cst_278 : f32 to vector<8x128xf32>
    %806 = arith.addf %805, %804 : vector<8x128xf32>
    %807 = arith.divf %805, %806 : vector<8x128xf32>
    %808 = vector.extract_strided_slice %807 {offsets = [0, 64], sizes = [8, 32], strides = [1, 1]} : vector<8x128xf32> to vector<8x32xf32>
    %cst_279 = arith.constant 2.000000e+00 : f32
    %809 = vector.broadcast %cst_279 : f32 to vector<8x32xf32>
    %810 = arith.mulf %809, %808 : vector<8x32xf32>
    %cst_280 = arith.constant 1.000000e+00 : f32
    %811 = vector.broadcast %cst_280 : f32 to vector<8x32xf32>
    %812 = arith.subf %810, %811 : vector<8x32xf32>
    %813 = vector.extract_strided_slice %807 {offsets = [0, 0], sizes = [8, 32], strides = [1, 1]} : vector<8x128xf32> to vector<8x32xf32>
    %814 = arith.mulf %813, %794 : vector<8x32xf32>
    %815 = vector.extract_strided_slice %807 {offsets = [0, 32], sizes = [8, 32], strides = [1, 1]} : vector<8x128xf32> to vector<8x32xf32>
    %816 = arith.mulf %815, %812 : vector<8x32xf32>
    %817 = arith.addf %814, %816 : vector<8x32xf32>
    %818 = vector.extract_strided_slice %807 {offsets = [0, 96], sizes = [8, 32], strides = [1, 1]} : vector<8x128xf32> to vector<8x32xf32>
    %819 = math.tanh %817 : vector<8x32xf32>
    %820 = arith.mulf %818, %819 : vector<8x32xf32>
    %c200_281 = arith.constant 200 : index
    %c0_282 = arith.constant 0 : index
    %821 = vector.load %arg12[%c200_281, %c0_282] : memref<224x32xf32, #tpu.memory_space<vmem>>, vector<8x32xf32>
    tpu.vector_store %arg12[%c200_281, %c0_282], %820 {strides = array<i32>} : memref<224x32xf32, #tpu.memory_space<vmem>>, vector<8x32xf32>,
    %c208 = arith.constant 208 : index
    %c0_283 = arith.constant 0 : index
    %822 = vector.load %arg11[%c208, %c0_283] : memref<224x128xf32, #tpu.memory_space<vmem>>, vector<8x128xf32>
    %823 = arith.truncf %820 : vector<8x32xf32> to vector<8x32xbf16>
    %cst_284 = arith.constant dense<0.000000e+00> : vector<8x128xf32>
    %824 = tpu.matmul %823, %8, %cst_284 {dimension_numbers = #tpu.dot_dimension_numbers<[1], [0], [0], [1], [0, 0, 1, 1], [], []>} : vector<8x32xbf16>, vector<32x128xbf16>, vector<8x128xf32> -> vector<8x128xf32>
    %825 = arith.addf %822, %824 : vector<8x128xf32>
    %826 = arith.negf %825 : vector<8x128xf32>
    %827 = math.exp %826 : vector<8x128xf32>
    %cst_285 = arith.constant 1.000000e+00 : f32
    %828 = vector.broadcast %cst_285 : f32 to vector<8x128xf32>
    %829 = arith.addf %828, %827 : vector<8x128xf32>
    %830 = arith.divf %828, %829 : vector<8x128xf32>
    %831 = vector.extract_strided_slice %830 {offsets = [0, 64], sizes = [8, 32], strides = [1, 1]} : vector<8x128xf32> to vector<8x32xf32>
    %cst_286 = arith.constant 2.000000e+00 : f32
    %832 = vector.broadcast %cst_286 : f32 to vector<8x32xf32>
    %833 = arith.mulf %832, %831 : vector<8x32xf32>
    %cst_287 = arith.constant 1.000000e+00 : f32
    %834 = vector.broadcast %cst_287 : f32 to vector<8x32xf32>
    %835 = arith.subf %833, %834 : vector<8x32xf32>
    %836 = vector.extract_strided_slice %830 {offsets = [0, 0], sizes = [8, 32], strides = [1, 1]} : vector<8x128xf32> to vector<8x32xf32>
    %837 = arith.mulf %836, %817 : vector<8x32xf32>
    %838 = vector.extract_strided_slice %830 {offsets = [0, 32], sizes = [8, 32], strides = [1, 1]} : vector<8x128xf32> to vector<8x32xf32>
    %839 = arith.mulf %838, %835 : vector<8x32xf32>
    %840 = arith.addf %837, %839 : vector<8x32xf32>
    %841 = vector.extract_strided_slice %830 {offsets = [0, 96], sizes = [8, 32], strides = [1, 1]} : vector<8x128xf32> to vector<8x32xf32>
    %842 = math.tanh %840 : vector<8x32xf32>
    %843 = arith.mulf %841, %842 : vector<8x32xf32>
    %c208_288 = arith.constant 208 : index
    %c0_289 = arith.constant 0 : index
    %844 = vector.load %arg12[%c208_288, %c0_289] : memref<224x32xf32, #tpu.memory_space<vmem>>, vector<8x32xf32>
    tpu.vector_store %arg12[%c208_288, %c0_289], %843 {strides = array<i32>} : memref<224x32xf32, #tpu.memory_space<vmem>>, vector<8x32xf32>,
    %c216 = arith.constant 216 : index
    %c0_290 = arith.constant 0 : index
    %845 = vector.load %arg11[%c216, %c0_290] : memref<224x128xf32, #tpu.memory_space<vmem>>, vector<8x128xf32>
    %846 = arith.truncf %843 : vector<8x32xf32> to vector<8x32xbf16>
    %cst_291 = arith.constant dense<0.000000e+00> : vector<8x128xf32>
    %847 = tpu.matmul %846, %8, %cst_291 {dimension_numbers = #tpu.dot_dimension_numbers<[1], [0], [0], [1], [0, 0, 1, 1], [], []>} : vector<8x32xbf16>, vector<32x128xbf16>, vector<8x128xf32> -> vector<8x128xf32>
    %848 = arith.addf %845, %847 : vector<8x128xf32>
    %849 = arith.negf %848 : vector<8x128xf32>
    %850 = math.exp %849 : vector<8x128xf32>
    %cst_292 = arith.constant 1.000000e+00 : f32
    %851 = vector.broadcast %cst_292 : f32 to vector<8x128xf32>
    %852 = arith.addf %851, %850 : vector<8x128xf32>
    %853 = arith.divf %851, %852 : vector<8x128xf32>
    %854 = vector.extract_strided_slice %853 {offsets = [0, 64], sizes = [8, 32], strides = [1, 1]} : vector<8x128xf32> to vector<8x32xf32>
    %cst_293 = arith.constant 2.000000e+00 : f32
    %855 = vector.broadcast %cst_293 : f32 to vector<8x32xf32>
    %856 = arith.mulf %855, %854 : vector<8x32xf32>
    %cst_294 = arith.constant 1.000000e+00 : f32
    %857 = vector.broadcast %cst_294 : f32 to vector<8x32xf32>
    %858 = arith.subf %856, %857 : vector<8x32xf32>
    %859 = vector.extract_strided_slice %853 {offsets = [0, 0], sizes = [8, 32], strides = [1, 1]} : vector<8x128xf32> to vector<8x32xf32>
    %860 = arith.mulf %859, %840 : vector<8x32xf32>
    %861 = vector.extract_strided_slice %853 {offsets = [0, 32], sizes = [8, 32], strides = [1, 1]} : vector<8x128xf32> to vector<8x32xf32>
    %862 = arith.mulf %861, %858 : vector<8x32xf32>
    %863 = arith.addf %860, %862 : vector<8x32xf32>
    %864 = vector.extract_strided_slice %853 {offsets = [0, 96], sizes = [8, 32], strides = [1, 1]} : vector<8x128xf32> to vector<8x32xf32>
    %865 = math.tanh %863 : vector<8x32xf32>
    %866 = arith.mulf %864, %865 : vector<8x32xf32>
    %c216_295 = arith.constant 216 : index
    %c0_296 = arith.constant 0 : index
    %867 = vector.load %arg12[%c216_295, %c0_296] : memref<224x32xf32, #tpu.memory_space<vmem>>, vector<8x32xf32>
    tpu.vector_store %arg12[%c216_295, %c0_296], %866 {strides = array<i32>} : memref<224x32xf32, #tpu.memory_space<vmem>>, vector<8x32xf32>,
    %c0_297 = arith.constant 0 : index
    %c0_298 = arith.constant 0 : index
    %868 = vector.load %arg12[%c0_297, %c0_298] : memref<224x32xf32, #tpu.memory_space<vmem>>, vector<224x32xf32>
    %c0_299 = arith.constant 0 : index
    %c0_300 = arith.constant 0 : index
    %869 = vector.load %arg8[%c0_299, %c0_300] : memref<32x128xf32, #tpu.memory_space<vmem>>, vector<32x128xf32>
    %cst_301 = arith.constant dense<0.000000e+00> : vector<224x128xf32>
    %870 = tpu.matmul %868, %869, %cst_301 {dimension_numbers = #tpu.dot_dimension_numbers<[1], [0], [0], [1], [0, 0, 1, 1], [], []>} : vector<224x32xf32>, vector<32x128xf32>, vector<224x128xf32> -> vector<224x128xf32>
    %c0_302 = arith.constant 0 : index
    %c0_303 = arith.constant 0 : index
    %871 = vector.load %arg9[%c0_302, %c0_303] : memref<224x128xf32, #tpu.memory_space<vmem>>, vector<224x128xf32>
    tpu.vector_store %arg9[%c0_302, %c0_303], %870 {strides = array<i32>} : memref<224x128xf32, #tpu.memory_space<vmem>>, vector<224x128xf32>,
    return
  }
}

</mosaic_0001>

<bundles_post_ra>
// kernel: m5_forward.1
= control target key start
LH: loop header
LB: loop body
LE: loop exit
PB: predicated region body
PF: predicated region fallthrough
CT: control target
= control target key end

     0   :  { %vm46_vm0 = vcmask 64512   ;;  %v3471_v4 = vmov 0   ;;  %s3473_s19 = smov 32   ;;  %vm143_vm5 = vcmask 261120   ;;  %s4433_s3 = inlined_call_operand.vmem [shape: bf16[32,128], index: 3, kind: input, shape index: {}]   ;;  %s4434_s2 = inlined_call_operand.vmem [shape: f32[8,128], index: 2, kind: input, shape index: {}]   ;;  %s4435_s0 = inlined_call_operand.vmem [shape: f32[64,8], index: 0, kind: input, shape index: {}]   ;;  %s4436_s4 = inlined_call_operand.vmem [shape: f32[1,128], index: 4, kind: input, shape index: {}]   ;;  %s4437_s5 = inlined_call_operand.vmem [shape: f32[8,128], index: 5, kind: input, shape index: {}]   ;;  %s4438_s1 = inlined_call_operand.vmem [shape: f32[224,8], index: 1, kind: input, shape index: {}]   ;;  %s4439_s7 = inlined_call_operand.vmem [shape: f32[1,128], index: 7, kind: input, shape index: {}]   ;;  %s4440_s6 = inlined_call_operand.vmem [shape: bf16[32,128], index: 6, kind: input, shape index: {}]   ;;  %s4441_s8 = inlined_call_operand.vmem [shape: f32[32,128], index: 8, kind: input, shape index: {}]   ;;  %s4442_s9 = inlined_call_operand.vmem [shape: f32[224,128], index: 9, kind: output, shape index: {}]  }
   0x1   :  { %v3527_v0 = vld [vmem:[%s4433_s3 + $0x8] sm:$0xff]  ;;  %v41_v1 = vld [vmem:[%s4434_s2] sm:$0xff]  ;;  %v35_v63 = vld [vmem:[%s4435_s0 + $0x10] sm:$0xff] }
   0x2   :  { %86 = vmatpush.msra.mxu0 %v41_v1  ;;  %v33_v2 = vld [vmem:[%s4435_s0] sm:$0xff]  ;;  %3237 = vmatpush.msra.mxu2 %v41_v1  ;;  %v34_v32 = vld [vmem:[%s4435_s0 + $0x8] sm:$0xff] }
   0x3   :  { %153 = vmatpush.bf16.msra.mxu1 %v3527_v0  ;;  %v3539_v3 = vld [vmem:[%s4433_s3] sm:$0xff]  ;;  %3046 = vmatmul.msk.f32.vlgmr.msra.gmra.mxu0 %vm46_vm0, %v33_v2  ;;  %s3472_s3 = smov 96  }
   0x4   :  { %265 = vmatpush.bf16.msra.mxu3 %v3527_v0  ;;  %v3550_v5 = vld [vmem:[%s4436_s4] ss:$0 sm:$0xff]  ;;  %3047 = vmatmul.msk.f32.vlgmr.msra.gmra.mxu2 %vm46_vm0, %v34_v32 }
   0x7   :  { %154 = vmatpush.bf16.msra.mxu1 %v3539_v3 }
   0x8   :  { %266 = vmatpush.bf16.msra.mxu3 %v3539_v3 }
   0xa   :  { %155 = vmatmul.bf16.vlgmr.msra.gmra.mxu1 %v3471_v4 }
   0xc   :  { %374 = vmatpush.bf16.msrb.mxu3 %v3527_v0  ;;  %3048 = vmatmul.msk.f32.gmra.mxu2 %vm46_vm0, %v35_v63 }
  0x10   :  { %375 = vmatpush.bf16.msrb.mxu3 %v3539_v3 }
  0x80   :  { %v88_v6 = vpop.f32.mrf.mxu0 }
  0x81   :  { %v89_v7 = vadd.f32 %v3550_v5, %v88_v6 }
  0x87   :  { %v156_v8 = vpop.f32.mrf.mxu1  ;;  %v91_v37 = vpop.f32.mrf.mxu2 }
  0x88   :  { %v160_v9 = vadd.f32 %v156_v8, %v89_v7  ;;  %v92_v38 = vadd.f32 %v3550_v5, %v91_v37 }
  0x8a   :  { %v3062_v10 = vmul.f32 -1.442695, %v160_v9 }
  0x8c   :  { %3251 = vpow2.f32 %v3062_v10 }
  0x8f   :  { %v158_v11 = vpop.f32.mrf.mxu1  ;;  %v94_v7 = vpop.f32.mrf.mxu2 }
  0x90   :  { %v95_v8 = vadd.f32 %v3550_v5, %v94_v7 }
  0x92   :  { %v3252_v12 = vpop.eup %3251 }
  0x93   :  { %v164_v13 = vadd.f32 1.0, %v3252_v12 }
  0x95   :  { %3253 = vrcp.f32 %v164_v13  ;;  %v176_v17 = vand.u32 2147483648, %v164_v13  ;;  %v174_v19 = vand.u32 2147483647, %v164_v13  ;;  %vm170_vm2 = vweird.f32 %v164_v13 }
  0x97   :  { %v177_v21 = vor.u32 1.1754944e-38, %v176_v17  ;;  %vm175_vm4 = vcmp.eq.f32.partialorder %v174_v19, 8.507059e+37 }
  0x9b   :  { %v3254_v14 = vpop.eup %3253 }
  0x9c   :  { %v166_v15 = vmul.f32 %v3254_v14, %v164_v13  ;;  %vm171_vm1 = vweird.f32 %v3254_v14 }
  0x9d   :  { %vm172_vm3 = vmor %vm170_vm2, %vm171_vm1 }
  0x9e   :  { %v167_v16 = vsub.f32 1.0, %v166_v15 }
  0xa0   :  { %v168_v18 = vmul.f32 %v3254_v14, %v167_v16 }
  0xa2   :  { %v169_v20 = vadd.f32 %v3254_v14, %v168_v18 }
  0xa4   :  { %v173_v22 = vsel %vm172_vm3, %v3254_v14, %v169_v20 }
  0xa5   :  { %v178_v23 = vsel %vm175_vm4, %v177_v21, %v173_v22 }
  0xa6   :  { %v180_v24 = vmul.f32 2.0, %v178_v23  ;;  %v182_v28 = vmul.f32 0.0, %v178_v23 }
  0xa8   :  { %v3063_v25 = vadd.f32 -1.0, %v180_v24 }
  0xaa   :  { %184 = vrot.lane.b32.xlu0 %v3063_v25, %s3472_s3 }
 0x11c   :  { %v185_v26 = vpop.permute.xlu0 %184 }
 0x11d   :  { %v187_v27 = vmul.f32 %v185_v26, %v178_v23 }
 0x11f   :  { %189 = vrot.lane.b32.xlu0 %v187_v27, %s3472_s3 }
 0x191   :  { %v190_v29 = vpop.permute.xlu0 %189 }
 0x192   :  { %v192_v30 = vadd.f32 %v190_v29, %v182_v28 }
 0x194   :  { %3255 = vtanh.f32 %v192_v30 }
 0x19a   :  { %v3256_v31 = vpop.eup %3255 }
 0x19b   :  { %195 = vrot.lane.b32.xlu1 %v3256_v31, %s3472_s3 }
 0x20d   :  { %v196_v33 = vpop.permute.xlu1 %195 }
 0x20e   :  { %v198_v34 = vmul.f32 %v196_v33, %v178_v23  ;;  %v36_v33 = vld [vmem:[%s4435_s0 + $0x18] sm:$0xff] }
 0x20f   :  { %3049 = vmatmul.msk.f32.gmra.mxu2 %vm46_vm0, %v36_v33 }
 0x210   :  { %v252_v35 = vpack.c.bf16 %v198_v34, %v198_v34 }
 0x212   :  { %254 = vrot.lane.b32.xlu1 %v252_v35, %s3473_s19 }
 0x284   :  { %v255_v36 = vpop.permute.xlu1 %254 }
 0x285   :  { %3068 = vmatmul.msk.bf16.vlgmr.msra.gmra.mxu3 %vm143_vm5, %v255_v36 }
 0x286   :  { %483 = vmatpush.bf16.msra.mxu3 %v3527_v0 }
 0x28a   :  { %484 = vmatpush.bf16.msra.mxu3 %v3539_v3 }
 0x308   :  { %v268_v39 = vpop.f32.mrf.mxu3 }
 0x309   :  { %v272_v40 = vadd.f32 %v268_v39, %v92_v38  ;;  %v97_v38 = vpop.f32.mrf.mxu2 }
 0x30a   :  { %v98_v39 = vadd.f32 %v3550_v5, %v97_v38  ;;  %v199_v38 = vld [vmem:[%s4438_s1] sm:$0xff] }
 0x30b   :  { %v3069_v41 = vmul.f32 -1.442695, %v272_v40 }
 0x30d   :  { %3257 = vpow2.f32 %v3069_v41 }
 0x310   :  { %v270_v42 = vpop.f32.mrf.mxu3 }
 0x313   :  { %v3258_v43 = vpop.eup %3257 }
 0x314   :  { %v276_v44 = vadd.f32 1.0, %v3258_v43 }
 0x316   :  { %3259 = vrcp.f32 %v276_v44  ;;  %v288_v48 = vand.u32 2147483648, %v276_v44  ;;  %v286_v50 = vand.u32 2147483647, %v276_v44  ;;  %vm282_vm7 = vweird.f32 %v276_v44 }
 0x318   :  { %v289_v52 = vor.u32 1.1754944e-38, %v288_v48  ;;  %vm287_vm9 = vcmp.eq.f32.partialorder %v286_v50, 8.507059e+37 }
 0x31c   :  { %v3260_v45 = vpop.eup %3259 }
 0x31d   :  { %v278_v46 = vmul.f32 %v3260_v45, %v276_v44  ;;  %vm283_vm6 = vweird.f32 %v3260_v45 }
 0x31e   :  { %vm284_vm8 = vmor %vm282_vm7, %vm283_vm6 }
 0x31f   :  { %v279_v47 = vsub.f32 1.0, %v278_v46 }
 0x321   :  { %v280_v49 = vmul.f32 %v3260_v45, %v279_v47 }
 0x323   :  { %v281_v51 = vadd.f32 %v3260_v45, %v280_v49 }
 0x325   :  { %v285_v53 = vsel %vm284_vm8, %v3260_v45, %v281_v51 }
 0x326   :  { %v290_v54 = vsel %vm287_vm9, %v289_v52, %v285_v53 }
 0x327   :  { %v292_v55 = vmul.f32 2.0, %v290_v54  ;;  %v294_v59 = vmul.f32 %v290_v54, %v192_v30 }
 0x329   :  { %v3070_v56 = vadd.f32 -1.0, %v292_v55 }
 0x32b   :  { %296 = vrot.lane.b32.xlu2 %v3070_v56, %s3472_s3 }
 0x385   :  { %v297_v57 = vpop.permute.xlu2 %296 }
 0x386   :  { %v299_v58 = vmul.f32 %v297_v57, %v290_v54 }
 0x388   :  { %301 = vrot.lane.b32.xlu2 %v299_v58, %s3472_s3 }
 0x3e2   :  { %v302_v60 = vpop.permute.xlu2 %301 }
 0x3e3   :  { %v304_v61 = vadd.f32 %v302_v60, %v294_v59 }
 0x3e5   :  { %3261 = vtanh.f32 %v304_v61 }
 0x3eb   :  { %v3262_v62 = vpop.eup %3261 }
 0x3ec   :  { %307 = vrot.lane.b32.xlu0 %v3262_v62, %s3472_s3 }
 0x45e   :  { %v308_v1 = vpop.permute.xlu0 %307 }
 0x45f   :  { %v310_v2 = vmul.f32 %v308_v1, %v290_v54  ;;  %v37_v1 = vld [vmem:[%s4435_s0 + $0x20] sm:$0xff] }
 0x460   :  { %3050 = vmatmul.msk.f32.gmra.mxu2 %vm46_vm0, %v37_v1 }
 0x461   :  { %v361_v4 = vpack.c.bf16 %v310_v2, %v310_v2 }
 0x463   :  { %363 = vrot.lane.b32.xlu1 %v361_v4, %s3473_s19 }
 0x4d5   :  { %v364_v6 = vpop.permute.xlu1 %363 }
 0x4d6   :  { %3075 = vmatmul.msk.bf16.vlgmr.msrb.gmra.mxu3 %vm143_vm5, %v364_v6 }
 0x4d7   :  { %592 = vmatpush.bf16.msrb.mxu3 %v3527_v0 }
 0x4db   :  { %593 = vmatpush.bf16.msrb.mxu3 %v3539_v3 }
 0x559   :  { %v377_v9 = vpop.f32.mrf.mxu3 }
 0x55a   :  { %v381_v10 = vadd.f32 %v377_v9, %v95_v8  ;;  %v100_v8 = vpop.f32.mrf.mxu2 }
 0x55b   :  { %v101_v9 = vadd.f32 %v3550_v5, %v100_v8 }
 0x55c   :  { %v3076_v11 = vmul.f32 -1.442695, %v381_v10 }
 0x55e   :  { %3263 = vpow2.f32 %v3076_v11 }
 0x561   :  { %v379_v12 = vpop.f32.mrf.mxu3 }
 0x564   :  { %v3264_v13 = vpop.eup %3263 }
 0x565   :  { %v385_v14 = vadd.f32 1.0, %v3264_v13 }
 0x567   :  { %3265 = vrcp.f32 %v385_v14  ;;  %v397_v18 = vand.u32 2147483648, %v385_v14  ;;  %v395_v20 = vand.u32 2147483647, %v385_v14  ;;  %vm391_vm11 = vweird.f32 %v385_v14 }
 0x569   :  { %v398_v22 = vor.u32 1.1754944e-38, %v397_v18  ;;  %vm396_vm13 = vcmp.eq.f32.partialorder %v395_v20, 8.507059e+37 }
 0x56d   :  { %v3266_v15 = vpop.eup %3265 }
 0x56e   :  { %v387_v16 = vmul.f32 %v3266_v15, %v385_v14  ;;  %vm392_vm10 = vweird.f32 %v3266_v15 }
 0x56f   :  { %vm393_vm12 = vmor %vm391_vm11, %vm392_vm10 }
 0x570   :  { %v388_v17 = vsub.f32 1.0, %v387_v16 }
 0x572   :  { %v389_v19 = vmul.f32 %v3266_v15, %v388_v17 }
 0x574   :  { %v390_v21 = vadd.f32 %v3266_v15, %v389_v19 }
 0x576   :  { %v394_v23 = vsel %vm393_vm12, %v3266_v15, %v390_v21 }
 0x577   :  { %v399_v24 = vsel %vm396_vm13, %v398_v22, %v394_v23 }
 0x578   :  { %v401_v25 = vmul.f32 2.0, %v399_v24  ;;  %v403_v29 = vmul.f32 %v399_v24, %v304_v61 }
 0x57a   :  { %v3077_v26 = vadd.f32 -1.0, %v401_v25 }
 0x57c   :  { %405 = vrot.lane.b32.xlu2 %v3077_v26, %s3472_s3 }
 0x5d6   :  { %v406_v27 = vpop.permute.xlu2 %405 }
 0x5d7   :  { %v408_v28 = vmul.f32 %v406_v27, %v399_v24 }
 0x5d9   :  { %410 = vrot.lane.b32.xlu0 %v408_v28, %s3472_s3 }
 0x64b   :  { %v411_v30 = vpop.permute.xlu0 %410 }
 0x64c   :  { %v413_v31 = vadd.f32 %v411_v30, %v403_v29  ;;  %v3602_v30 = vld [vmem:[%s4437_s5] sm:$0xff] }
 0x64d   :  { %233 = vmatpush.msrb.mxu2 %v3602_v30  ;;  %669 = vmatpush.msrb.mxu0 %v3602_v30 }
 0x64e   :  { %3267 = vtanh.f32 %v413_v31  ;;  %342 = vmatpush.msrb.mxu1 %v3602_v30 }
 0x64f   :  { %451 = vmatpush.msra.mxu2 %v3602_v30  ;;  %919 = vmatpush.bf16.msra.mxu0 %v3527_v0 }
 0x650   :  { %560 = vmatpush.msra.mxu1 %v3602_v30 }
 0x653   :  { %920 = vmatpush.bf16.msra.mxu0 %v3539_v3 }
 0x654   :  { %v3268_v32 = vpop.eup %3267 }
 0x655   :  { %416 = vrot.lane.b32.xlu1 %v3268_v32, %s3472_s3 }
 0x6c7   :  { %v417_v34 = vpop.permute.xlu1 %416 }
 0x6c8   :  { %v419_v35 = vmul.f32 %v417_v34, %v399_v24 }
 0x6ca   :  { %v470_v36 = vpack.c.bf16 %v419_v35, %v419_v35  ;;  %v38_v35 = vld [vmem:[%s4435_s0 + $0x28] sm:$0xff] }
 0x6cb   :  { %3051 = vmatmul.msk.f32.gmra.mxu2 %vm46_vm0, %v38_v35 }
 0x6cc   :  { %472 = vrot.lane.b32.xlu2 %v470_v36, %s3473_s19  ;;  %v39_v36 = vld [vmem:[%s4435_s0 + $0x30] sm:$0xff] }
 0x6d3   :  { %3052 = vmatmul.msk.f32.gmra.mxu2 %vm46_vm0, %v39_v36 }
 0x726   :  { %v473_v37 = vpop.permute.xlu2 %472 }
 0x727   :  { %3082 = vmatmul.msk.bf16.vlgmr.msra.gmra.mxu3 %vm143_vm5, %v473_v37  ;;  %v40_v37 = vld [vmem:[%s4435_s0 + $0x38] sm:$0xff] }
 0x728   :  { %778 = vmatpush.msra.mxu3 %v3602_v30  ;;  %3053 = vmatmul.msk.f32.gmra.mxu2 %vm46_vm0, %v40_v37 }
 0x730   :  { %3064 = vmatmul.msk.f32.vlgmr.msrb.gmra.mxu2 %vm46_vm0, %v199_v38 }
 0x731   :  { %701 = vmatpush.bf16.msrb.mxu2 %v3527_v0 }
 0x735   :  { %702 = vmatpush.bf16.msrb.mxu2 %v3539_v3 }
 0x7aa   :  { %v486_v40 = vpop.f32.mrf.mxu3 }
 0x7ab   :  { %v490_v41 = vadd.f32 %v486_v40, %v98_v39 }
 0x7ad   :  { %v3083_v42 = vmul.f32 -1.442695, %v490_v41 }
 0x7af   :  { %3269 = vpow2.f32 %v3083_v42  ;;  %v200_v42 = vld [vmem:[%s4438_s1 + $0x8] sm:$0xff] }
 0x7b0   :  { %3065 = vmatmul.msk.f32.gmra.mxu2 %vm46_vm0, %v200_v42 }
 0x7b2   :  { %v488_v43 = vpop.f32.mrf.mxu3 }
 0x7b3   :  { %v201_v43 = vld [vmem:[%s4438_s1 + $0x10] sm:$0xff] }
 0x7b5   :  { %v3270_v44 = vpop.eup %3269 }
 0x7b6   :  { %v494_v45 = vadd.f32 1.0, %v3270_v44  ;;  %v202_v44 = vld [vmem:[%s4438_s1 + $0x18] sm:$0xff] }
 0x7b8   :  { %3271 = vrcp.f32 %v494_v45  ;;  %v506_v49 = vand.u32 2147483648, %v494_v45  ;;  %v504_v51 = vand.u32 2147483647, %v494_v45  ;;  %vm500_vm15 = vweird.f32 %v494_v45  ;;  %3066 = vmatmul.msk.f32.gmra.mxu2 %vm46_vm0, %v201_v43 }
 0x7ba   :  { %v507_v53 = vor.u32 1.1754944e-38, %v506_v49  ;;  %vm505_vm2 = vcmp.eq.f32.partialorder %v504_v51, 8.507059e+37  ;;  %v103_v49 = vpop.f32.mrf.mxu2 }
 0x7be   :  { %v3272_v46 = vpop.eup %3271 }
 0x7bf   :  { %v496_v47 = vmul.f32 %v3272_v46, %v494_v45  ;;  %vm501_vm14 = vweird.f32 %v3272_v46  ;;  %v420_v45 = vld [vmem:[%s4438_s1 + $0x40] sm:$0xff] }
 0x7c0   :  { %vm502_vm1 = vmor %vm500_vm15, %vm501_vm14  ;;  %3067 = vmatmul.msk.f32.gmra.mxu2 %vm46_vm0, %v202_v44 }
 0x7c1   :  { %v497_v48 = vsub.f32 1.0, %v496_v47  ;;  %v422_v47 = vld [vmem:[%s4438_s1 + $0x50] sm:$0xff] }
 0x7c3   :  { %v498_v50 = vmul.f32 %v3272_v46, %v497_v48  ;;  %v423_v48 = vld [vmem:[%s4438_s1 + $0x58] sm:$0xff] }
 0x7c5   :  { %v499_v52 = vadd.f32 %v3272_v46, %v498_v50  ;;  %v106_v50 = vpop.f32.mrf.mxu2 }
 0x7c7   :  { %v503_v54 = vsel %vm502_vm1, %v3272_v46, %v499_v52  ;;  %v421_v46 = vld [vmem:[%s4438_s1 + $0x48] sm:$0xff] }
 0x7c8   :  { %v508_v55 = vsel %vm505_vm2, %v507_v53, %v503_v54  ;;  %3078 = vmatmul.msk.f32.vlgmr.msra.gmra.mxu2 %vm46_vm0, %v420_v45 }
 0x7c9   :  { %v510_v56 = vmul.f32 2.0, %v508_v55  ;;  %v512_v60 = vmul.f32 %v508_v55, %v413_v31  ;;  %810 = vmatpush.bf16.msra.mxu2 %v3527_v0 }
 0x7cb   :  { %v3084_v57 = vadd.f32 -1.0, %v510_v56 }
 0x7cd   :  { %514 = vrot.lane.b32.xlu0 %v3084_v57, %s3472_s3  ;;  %811 = vmatpush.bf16.msra.mxu2 %v3539_v3  ;;  %v3666_v3 = vpop.f32.mrf.mxu2 }
 0x7d0   :  { %3079 = vmatmul.msk.f32.gmra.mxu2 %vm46_vm0, %v421_v46 }
 0x7d5   :  { %v3668_v51 = vpop.f32.mrf.mxu2 }
 0x7d8   :  { %3080 = vmatmul.msk.f32.gmra.mxu2 %vm46_vm0, %v422_v47 }
 0x7e0   :  { %3081 = vmatmul.msk.f32.gmra.mxu2 %vm46_vm0, %v423_v48 }
 0x833   :  { %v3670_v52 = vpop.f32.mrf.mxu2 }
 0x83b   :  { %v3672_v53 = vpop.f32.mrf.mxu2 }
 0x83f   :  { %v515_v58 = vpop.permute.xlu0 %514 }
 0x840   :  { %v517_v59 = vmul.f32 %v515_v58, %v508_v55 }
 0x842   :  { %519 = vrot.lane.b32.xlu1 %v517_v59, %s3472_s3  ;;  %v104_v59 = vadd.f32 %v3550_v5, %v103_v49 }
 0x843   :  { %v3674_v54 = vpop.f32.mrf.mxu2 }
 0x8b4   :  { %v520_v61 = vpop.permute.xlu1 %519 }
 0x8b5   :  { %v522_v62 = vadd.f32 %v520_v61, %v512_v60 }
 0x8b7   :  { %3273 = vtanh.f32 %v522_v62 }
 0x8bd   :  { %v3274_v63 = vpop.eup %3273 }
 0x8be   :  { %525 = vrot.lane.b32.xlu2 %v3274_v63, %s3472_s3 }
 0x918   :  { %v526_v2 = vpop.permute.xlu2 %525 }
 0x919   :  { %v528_v4 = vmul.f32 %v526_v2, %v508_v55  ;;  %v3676_v55 = vpop.f32.mrf.mxu2 }
 0x91b   :  { %v579_v6 = vpack.c.bf16 %v528_v4, %v528_v4 }
 0x91d   :  { %581 = vrot.lane.b32.xlu0 %v579_v6, %s3473_s19 }
 0x921   :  { %v3678_v56 = vpop.f32.mrf.mxu2 }
 0x929   :  { %v3680_v57 = vpop.f32.mrf.mxu2 }
 0x931   :  { %v3682_v58 = vpop.f32.mrf.mxu2 }
 0x98f   :  { %v582_v7 = vpop.permute.xlu0 %581 }
 0x990   :  { %3089 = vmatmul.msk.bf16.vlgmr.msrb.gmra.mxu3 %vm143_vm5, %v582_v7 }
 0xa13   :  { %v595_v10 = vpop.f32.mrf.mxu3 }
 0xa14   :  { %v599_v11 = vadd.f32 %v595_v10, %v101_v9 }
 0xa16   :  { %v3090_v12 = vmul.f32 -1.442695, %v599_v11 }
 0xa18   :  { %3275 = vpow2.f32 %v3090_v12 }
 0xa1b   :  { %v597_v13 = vpop.f32.mrf.mxu3 }
 0xa1e   :  { %v3276_v14 = vpop.eup %3275 }
 0xa1f   :  { %v603_v15 = vadd.f32 1.0, %v3276_v14 }
 0xa21   :  { %3277 = vrcp.f32 %v603_v15  ;;  %v615_v19 = vand.u32 2147483648, %v603_v15  ;;  %v613_v21 = vand.u32 2147483647, %v603_v15  ;;  %vm609_vm4 = vweird.f32 %v603_v15 }
 0xa23   :  { %v616_v23 = vor.u32 1.1754944e-38, %v615_v19  ;;  %vm614_vm7 = vcmp.eq.f32.partialorder %v613_v21, 8.507059e+37 }
 0xa27   :  { %v3278_v16 = vpop.eup %3277 }
 0xa28   :  { %v605_v17 = vmul.f32 %v3278_v16, %v603_v15  ;;  %vm610_vm3 = vweird.f32 %v3278_v16 }
 0xa29   :  { %vm611_vm6 = vmor %vm609_vm4, %vm610_vm3 }
 0xa2a   :  { %v606_v18 = vsub.f32 1.0, %v605_v17 }
 0xa2c   :  { %v607_v20 = vmul.f32 %v3278_v16, %v606_v18 }
 0xa2e   :  { %v608_v22 = vadd.f32 %v3278_v16, %v607_v20 }
 0xa30   :  { %v612_v24 = vsel %vm611_vm6, %v3278_v16, %v608_v22 }
 0xa31   :  { %v617_v25 = vsel %vm614_vm7, %v616_v23, %v612_v24 }
 0xa32   :  { %v619_v26 = vmul.f32 2.0, %v617_v25  ;;  %v621_v31 = vmul.f32 %v617_v25, %v522_v62 }
 0xa34   :  { %v3091_v27 = vadd.f32 -1.0, %v619_v26 }
 0xa36   :  { %623 = vrot.lane.b32.xlu1 %v3091_v27, %s3472_s3  ;;  %v107_v27 = vadd.f32 %v3550_v5, %v106_v50 }
 0xaa8   :  { %v624_v28 = vpop.permute.xlu1 %623 }
 0xaa9   :  { %v626_v29 = vmul.f32 %v624_v28, %v617_v25 }
 0xaab   :  { %628 = vrot.lane.b32.xlu2 %v626_v29, %s3472_s3 }
 0xb05   :  { %v629_v32 = vpop.permute.xlu2 %628 }
 0xb06   :  { %v3612_v33 = vadd.f32 %v629_v32, %v621_v31 }
 0xb08   :  { %3279 = vtanh.f32 %v3612_v33 }
 0xb0e   :  { %v3280_v34 = vpop.eup %3279 }
 0xb0f   :  { %634 = vrot.lane.b32.xlu0 %v3280_v34, %s3472_s3 }
 0xb81   :  { %v635_v39 = vpop.permute.xlu0 %634 }
 0xb82   :  { %v637_v40 = vmul.f32 %v635_v39, %v617_v25 }
 0xb84   :  { %v688_v41 = vpack.c.bf16 %v637_v40, %v637_v40 }
 0xb86   :  { %690 = vrot.lane.b32.xlu1 %v688_v41, %s3473_s19 }
 0xbf8   :  { %v691_v0 = vpop.permute.xlu1 %690 }
 0xbf9   :  { %3096 = vmatmul.msk.bf16.vlgmr.msrb.gmra.mxu2 %vm143_vm5, %v691_v0 }
 0xc7c   :  { %v704_v60 = vpop.f32.mrf.mxu2 }
 0xc7d   :  { %v708_v61 = vadd.f32 %v704_v60, %v104_v59  ;;  %v638_v60 = vld [vmem:[%s4438_s1 + $0x80] sm:$0xff] }
 0xc7e   :  { %3092 = vmatmul.msk.f32.vlgmr.msrb.gmra.mxu0 %vm46_vm0, %v638_v60 }
 0xc7f   :  { %v3097_v62 = vmul.f32 -1.442695, %v708_v61  ;;  %v639_v61 = vld [vmem:[%s4438_s1 + $0x88] sm:$0xff] }
 0xc81   :  { %3281 = vpow2.f32 %v3097_v62  ;;  %v640_v62 = vld [vmem:[%s4438_s1 + $0x90] sm:$0xff] }
 0xc84   :  { %v706_v63 = vpop.f32.mrf.mxu2 }
 0xc85   :  { %v641_v63 = vld [vmem:[%s4438_s1 + $0x98] sm:$0xff] }
 0xc86   :  { %3093 = vmatmul.msk.f32.gmra.mxu0 %vm46_vm0, %v639_v61 }
 0xc87   :  { %v3282_v1 = vpop.eup %3281 }
 0xc88   :  { %v712_v2 = vadd.f32 1.0, %v3282_v1 }
 0xc8a   :  { %3283 = vrcp.f32 %v712_v2  ;;  %v724_v8 = vand.u32 2147483648, %v712_v2  ;;  %v722_v10 = vand.u32 2147483647, %v712_v2  ;;  %vm718_vm9 = vweird.f32 %v712_v2 }
 0xc8c   :  { %v725_v12 = vor.u32 1.1754944e-38, %v724_v8  ;;  %vm723_vm11 = vcmp.eq.f32.partialorder %v722_v10, 8.507059e+37 }
 0xc8e   :  { %3094 = vmatmul.msk.f32.gmra.mxu0 %vm46_vm0, %v640_v62 }
 0xc90   :  { %v3284_v4 = vpop.eup %3283 }
 0xc91   :  { %v714_v6 = vmul.f32 %v3284_v4, %v712_v2  ;;  %vm719_vm8 = vweird.f32 %v3284_v4 }
 0xc92   :  { %vm720_vm10 = vmor %vm718_vm9, %vm719_vm8 }
 0xc93   :  { %v715_v7 = vsub.f32 1.0, %v714_v6 }
 0xc95   :  { %v716_v9 = vmul.f32 %v3284_v4, %v715_v7 }
 0xc96   :  { %3095 = vmatmul.msk.f32.gmra.mxu0 %vm46_vm0, %v641_v63 }
 0xc97   :  { %v717_v11 = vadd.f32 %v3284_v4, %v716_v9 }
 0xc99   :  { %v721_v13 = vsel %vm720_vm10, %v3284_v4, %v717_v11  ;;  %v110_v11 = vadd.f32 %v3550_v5, %v3666_v3 }
 0xc9a   :  { %v726_v14 = vsel %vm723_vm11, %v725_v12, %v721_v13 }
 0xc9b   :  { %v728_v15 = vmul.f32 2.0, %v726_v14  ;;  %v730_v19 = vmul.f32 %v726_v14, %v3612_v33 }
 0xc9d   :  { %v3098_v16 = vadd.f32 -1.0, %v728_v15 }
 0xc9f   :  { %732 = vrot.lane.b32.xlu2 %v3098_v16, %s3472_s3 }
 0xcf9   :  { %v733_v17 = vpop.permute.xlu2 %732 }
 0xcfa   :  { %v735_v18 = vmul.f32 %v733_v17, %v726_v14 }
 0xcfb   :  { %v3713_v7 = vpop.f32.mrf.mxu0 }
 0xcfc   :  { %737 = vrot.lane.b32.xlu0 %v735_v18, %s3472_s3 }
 0xd03   :  { %v3715_v8 = vpop.f32.mrf.mxu0 }
 0xd0b   :  { %v3717_v9 = vpop.f32.mrf.mxu0 }
 0xd13   :  { %v3719_v10 = vpop.f32.mrf.mxu0 }
 0xd6e   :  { %v738_v20 = vpop.permute.xlu0 %737 }
 0xd6f   :  { %v740_v21 = vadd.f32 %v738_v20, %v730_v19 }
 0xd71   :  { %3285 = vtanh.f32 %v740_v21 }
 0xd77   :  { %v3286_v22 = vpop.eup %3285 }
 0xd78   :  { %743 = vrot.lane.b32.xlu1 %v3286_v22, %s3472_s3 }
 0xdea   :  { %v744_v23 = vpop.permute.xlu1 %743 }
 0xdeb   :  { %v746_v24 = vmul.f32 %v744_v23, %v726_v14 }
 0xded   :  { %v797_v25 = vpack.c.bf16 %v746_v24, %v746_v24 }
 0xdef   :  { %799 = vrot.lane.b32.xlu2 %v797_v25, %s3473_s19 }
 0xe49   :  { %v800_v26 = vpop.permute.xlu2 %799 }
 0xe4a   :  { %3103 = vmatmul.msk.bf16.vlgmr.msra.gmra.mxu2 %vm143_vm5, %v800_v26 }
 0xecd   :  { %v813_v28 = vpop.f32.mrf.mxu2 }
 0xece   :  { %v817_v29 = vadd.f32 %v813_v28, %v107_v27 }
 0xed0   :  { %v3104_v31 = vmul.f32 -1.442695, %v817_v29 }
 0xed2   :  { %3287 = vpow2.f32 %v3104_v31 }
 0xed5   :  { %v815_v32 = vpop.f32.mrf.mxu2 }
 0xed8   :  { %v3288_v33 = vpop.eup %3287 }
 0xed9   :  { %v821_v34 = vadd.f32 1.0, %v3288_v33 }
 0xedb   :  { %3289 = vrcp.f32 %v821_v34  ;;  %v833_v38 = vand.u32 2147483648, %v821_v34  ;;  %v831_v40 = vand.u32 2147483647, %v821_v34  ;;  %vm827_vm13 = vweird.f32 %v821_v34 }
 0xedd   :  { %v834_v42 = vor.u32 1.1754944e-38, %v833_v38  ;;  %vm832_vm15 = vcmp.eq.f32.partialorder %v831_v40, 8.507059e+37 }
 0xee1   :  { %v3290_v35 = vpop.eup %3289 }
 0xee2   :  { %v823_v36 = vmul.f32 %v3290_v35, %v821_v34  ;;  %vm828_vm12 = vweird.f32 %v3290_v35 }
 0xee3   :  { %vm829_vm14 = vmor %vm827_vm13, %vm828_vm12 }
 0xee4   :  { %v824_v37 = vsub.f32 1.0, %v823_v36  ;;  %v3735_v36 = vld [vmem:[%s4440_s6] sm:$0xff] }
 0xee6   :  { %v825_v39 = vmul.f32 %v3290_v35, %v824_v37 }
 0xee8   :  { %v826_v41 = vadd.f32 %v3290_v35, %v825_v39 }
 0xeea   :  { %v830_v43 = vsel %vm829_vm14, %v3290_v35, %v826_v41  ;;  %v3729_v35 = vld [vmem:[%s4440_s6 + $0x8] sm:$0xff]  ;;  %v3753_v41 = vld [vmem:[%s4439_s7] ss:$0 sm:$0xff] }
 0xeeb   :  { %v835_v44 = vsel %vm832_vm15, %v834_v42, %v830_v43  ;;  %991 = vmatpush.bf16.msrb.mxu2 %v3729_v35  ;;  %1056 = vmatpush.bf16.msrb.mxu3 %v3729_v35  ;;  %v236_v42 = vadd.f32 %v3753_v41, %v3668_v51 }
 0xeec   :  { %v837_v45 = vmul.f32 2.0, %v835_v44  ;;  %v839_v0 = vmul.f32 %v835_v44, %v740_v21  ;;  %1121 = vmatpush.bf16.msrb.mxu0 %v3729_v35 }
 0xeee   :  { %v3105_v46 = vadd.f32 -1.0, %v837_v45 }
 0xeef   :  { %992 = vmatpush.bf16.msrb.mxu2 %v3735_v36  ;;  %1057 = vmatpush.bf16.msrb.mxu3 %v3735_v36 }
 0xef0   :  { %841 = vrot.lane.b32.xlu0 %v3105_v46, %s3472_s3  ;;  %1122 = vmatpush.bf16.msrb.mxu0 %v3735_v36 }
 0xef3   :  { %1186 = vmatpush.bf16.msra.mxu2 %v3729_v35 }
 0xef7   :  { %1187 = vmatpush.bf16.msra.mxu2 %v3735_v36 }
 0xf62   :  { %v842_v47 = vpop.permute.xlu0 %841 }
 0xf63   :  { %v844_v48 = vmul.f32 %v842_v47, %v835_v44 }
 0xf65   :  { %846 = vrot.lane.b32.xlu1 %v844_v48, %s3472_s3 }
 0xfd7   :  { %v847_v49 = vpop.permute.xlu1 %846 }
 0xfd8   :  { %v849_v50 = vadd.f32 %v847_v49, %v839_v0 }
 0xfda   :  { %3291 = vtanh.f32 %v849_v50 }
 0xfe0   :  { %v3292_v59 = vpop.eup %3291 }
 0xfe1   :  { %852 = vrot.lane.b32.xlu2 %v3292_v59, %s3472_s3 }
0x103b   :  { %v853_v1 = vpop.permute.xlu2 %852 }
0x103c   :  { %v855_v2 = vmul.f32 %v853_v1, %v835_v44 }
0x103e   :  { %v906_v4 = vpack.c.bf16 %v855_v2, %v855_v2 }
0x1040   :  { %908 = vrot.lane.b32.xlu0 %v906_v4, %s3473_s19 }
0x10b2   :  { %v909_v6 = vpop.permute.xlu0 %908 }
0x10b3   :  { %3110 = vmatmul.msk.bf16.vlgmr.msra.gmra.mxu0 %vm143_vm5, %v909_v6 }
0x10b4   :  { %1381 = vmatpush.bf16.msra.mxu0 %v3729_v35 }
0x10b8   :  { %1382 = vmatpush.bf16.msra.mxu0 %v3735_v36 }
0x1130   :  { %v922_v12 = vpop.f32.mrf.mxu0 }
0x1131   :  { %v926_v13 = vadd.f32 %v922_v12, %v110_v11 }
0x1133   :  { %v3111_v14 = vmul.f32 -1.442695, %v926_v13 }
0x1135   :  { %3293 = vpow2.f32 %v3111_v14 }
0x1138   :  { %v924_v15 = vpop.f32.mrf.mxu0 }
0x113b   :  { %v3294_v16 = vpop.eup %3293 }
0x113c   :  { %v930_v17 = vadd.f32 1.0, %v3294_v16  ;;  %v747_v16 = vld [vmem:[%s4438_s1 + $0xa0] sm:$0xff] }
0x113d   :  { %3099 = vmatmul.msk.f32.vlgmr.msra.gmra.mxu3 %vm46_vm0, %v747_v16 }
0x113e   :  { %3295 = vrcp.f32 %v930_v17  ;;  %v942_v21 = vand.u32 2147483648, %v930_v17  ;;  %v940_v23 = vand.u32 2147483647, %v930_v17  ;;  %vm936_vm2 = vweird.f32 %v930_v17  ;;  %1316 = vmatpush.bf16.msra.mxu3 %v3729_v35 }
0x1140   :  { %v943_v25 = vor.u32 1.1754944e-38, %v942_v21  ;;  %vm941_vm4 = vcmp.eq.f32.partialorder %v940_v23, 8.507059e+37 }
0x1142   :  { %1317 = vmatpush.bf16.msra.mxu3 %v3735_v36 }
0x1144   :  { %v3296_v18 = vpop.eup %3295 }
0x1145   :  { %v932_v19 = vmul.f32 %v3296_v18, %v930_v17  ;;  %vm937_vm1 = vweird.f32 %v3296_v18  ;;  %v748_v17 = vld [vmem:[%s4438_s1 + $0xa8] sm:$0xff] }
0x1146   :  { %vm938_vm3 = vmor %vm936_vm2, %vm937_vm1  ;;  %3100 = vmatmul.msk.f32.gmra.mxu3 %vm46_vm0, %v748_v17 }
0x1147   :  { %v933_v20 = vsub.f32 1.0, %v932_v19  ;;  %v750_v19 = vld [vmem:[%s4438_s1 + $0xb8] sm:$0xff] }
0x1149   :  { %v934_v22 = vmul.f32 %v3296_v18, %v933_v20 }
0x114b   :  { %v935_v24 = vadd.f32 %v3296_v18, %v934_v22 }
0x114d   :  { %v939_v5 = vsel %vm938_vm3, %v3296_v18, %v935_v24  ;;  %v749_v18 = vld [vmem:[%s4438_s1 + $0xb0] sm:$0xff] }
0x114e   :  { %v944_v3 = vsel %vm941_vm4, %v943_v25, %v939_v5  ;;  %3101 = vmatmul.msk.f32.gmra.mxu3 %vm46_vm0, %v749_v18 }
0x114f   :  { %v946_v26 = vmul.f32 2.0, %v944_v3  ;;  %v948_v31 = vmul.f32 %v944_v3, %v849_v50 }
0x1151   :  { %v3112_v27 = vadd.f32 -1.0, %v946_v26  ;;  %v239_v26 = vadd.f32 %v3753_v41, %v3670_v52 }
0x1153   :  { %950 = vrot.lane.b32.xlu1 %v3112_v27, %s3472_s3 }
0x1156   :  { %3102 = vmatmul.msk.f32.gmra.mxu3 %vm46_vm0, %v750_v19 }
0x11c0   :  { %v3786_v24 = vpop.f32.mrf.mxu3 }
0x11c5   :  { %v951_v28 = vpop.permute.xlu1 %950 }
0x11c6   :  { %v953_v29 = vmul.f32 %v951_v28, %v944_v3 }
0x11c8   :  { %955 = vrot.lane.b32.xlu2 %v953_v29, %s3472_s3 }
0x11c9   :  { %v3788_v25 = vpop.f32.mrf.mxu3 }
0x11d1   :  { %v3790_v5 = vpop.f32.mrf.mxu3 }
0x1222   :  { %v956_v32 = vpop.permute.xlu2 %955 }
0x1223   :  { %v958_v33 = vadd.f32 %v956_v32, %v948_v31 }
0x1225   :  { %3297 = vtanh.f32 %v958_v33 }
0x122b   :  { %v3298_v34 = vpop.eup %3297 }
0x122c   :  { %961 = vrot.lane.b32.xlu0 %v3298_v34, %s3472_s3 }
0x129e   :  { %v962_v37 = vpop.permute.xlu0 %961 }
0x129f   :  { %v964_v38 = vmul.f32 %v962_v37, %v944_v3  ;;  %v3792_v3 = vpop.f32.mrf.mxu3 }
0x12a1   :  { %v966_v39 = vpack.c.bf16 %v964_v38, %v964_v38 }
0x12a3   :  { %968 = vrot.lane.b32.xlu1 %v966_v39, %s3473_s19 }
0x1315   :  { %v969_v40 = vpop.permute.xlu1 %968 }
0x1316   :  { %3121 = vmatmul.msk.bf16.vlgmr.msrb.gmra.mxu2 %vm143_vm5, %v969_v40 }
0x1317   :  { %1446 = vmatpush.bf16.msrb.mxu2 %v3729_v35 }
0x131b   :  { %1447 = vmatpush.bf16.msrb.mxu2 %v3735_v36 }
0x1399   :  { %v994_v43 = vpop.f32.mrf.mxu2 }
0x139a   :  { %v998_v44 = vadd.f32 %v994_v43, %v236_v42 }
0x139c   :  { %v3122_v45 = vmul.f32 -1.442695, %v998_v44 }
0x139e   :  { %3299 = vpow2.f32 %v3122_v45 }
0x13a1   :  { %v996_v46 = vpop.f32.mrf.mxu2 }
0x13a4   :  { %v3300_v47 = vpop.eup %3299 }
0x13a5   :  { %v1002_v48 = vadd.f32 1.0, %v3300_v47 }
0x13a7   :  { %3301 = vrcp.f32 %v1002_v48  ;;  %v1014_v59 = vand.u32 2147483648, %v1002_v48  ;;  %v1012_v61 = vand.u32 2147483647, %v1002_v48  ;;  %vm1008_vm7 = vweird.f32 %v1002_v48 }
0x13a9   :  { %v1015_v63 = vor.u32 1.1754944e-38, %v1014_v59  ;;  %vm1013_vm9 = vcmp.eq.f32.partialorder %v1012_v61, 8.507059e+37 }
0x13ad   :  { %v3302_v0 = vpop.eup %3301 }
0x13ae   :  { %v1004_v49 = vmul.f32 %v3302_v0, %v1002_v48  ;;  %vm1009_vm6 = vweird.f32 %v3302_v0 }
0x13af   :  { %vm1010_vm8 = vmor %vm1008_vm7, %vm1009_vm6 }
0x13b0   :  { %v1005_v50 = vsub.f32 1.0, %v1004_v49 }
0x13b2   :  { %v1006_v60 = vmul.f32 %v3302_v0, %v1005_v50 }
0x13b4   :  { %v1007_v62 = vadd.f32 %v3302_v0, %v1006_v60 }
0x13b6   :  { %v1011_v51 = vsel %vm1010_vm8, %v3302_v0, %v1007_v62 }
0x13b7   :  { %v1016_v1 = vsel %vm1013_vm9, %v1015_v63, %v1011_v51 }
0x13b8   :  { %v1018_v2 = vmul.f32 2.0, %v1016_v1  ;;  %v1020_v12 = vmul.f32 %v1016_v1, %v958_v33 }
0x13ba   :  { %v3123_v4 = vadd.f32 -1.0, %v1018_v2 }
0x13bc   :  { %1022 = vrot.lane.b32.xlu2 %v3123_v4, %s3472_s3 }
0x1416   :  { %v1023_v6 = vpop.permute.xlu2 %1022 }
0x1417   :  { %v1025_v11 = vmul.f32 %v1023_v6, %v1016_v1 }
0x1419   :  { %1027 = vrot.lane.b32.xlu0 %v1025_v11, %s3472_s3 }
0x148b   :  { %v1028_v13 = vpop.permute.xlu0 %1027 }
0x148c   :  { %v1030_v14 = vadd.f32 %v1028_v13, %v1020_v12 }
0x148e   :  { %3303 = vtanh.f32 %v1030_v14 }
0x1494   :  { %v3304_v15 = vpop.eup %3303 }
0x1495   :  { %1033 = vrot.lane.b32.xlu1 %v3304_v15, %s3472_s3 }
0x1507   :  { %v1034_v20 = vpop.permute.xlu1 %1033 }
0x1508   :  { %v3778_v21 = vmul.f32 %v1034_v20, %v1016_v1  ;;  %v242_v1 = vadd.f32 %v3753_v41, %v3672_v53 }
0x150a   :  { %v1043_v22 = vpack.c.bf16 %v3778_v21, %v3778_v21 }
0x150c   :  { %1045 = vrot.lane.b32.xlu2 %v1043_v22, %s3473_s19 }
0x1566   :  { %v1046_v23 = vpop.permute.xlu2 %1045 }
0x1567   :  { %3124 = vmatmul.msk.bf16.vlgmr.msrb.gmra.mxu3 %vm143_vm5, %v1046_v23 }
0x1568   :  { %1576 = vmatpush.bf16.msrb.mxu3 %v3729_v35 }
0x156c   :  { %1577 = vmatpush.bf16.msrb.mxu3 %v3735_v36 }
0x15ea   :  { %v1059_v27 = vpop.f32.mrf.mxu3 }
0x15eb   :  { %v1063_v28 = vadd.f32 %v1059_v27, %v239_v26 }
0x15ed   :  { %v3125_v29 = vmul.f32 -1.442695, %v1063_v28 }
0x15ef   :  { %3305 = vpow2.f32 %v3125_v29 }
0x15f2   :  { %v1061_v31 = vpop.f32.mrf.mxu3 }
0x15f5   :  { %v3306_v32 = vpop.eup %3305 }
0x15f6   :  { %v1067_v33 = vadd.f32 1.0, %v3306_v32 }
0x15f8   :  { %3307 = vrcp.f32 %v1067_v33  ;;  %v1079_v39 = vand.u32 2147483648, %v1067_v33  ;;  %v1077_v42 = vand.u32 2147483647, %v1067_v33  ;;  %vm1073_vm11 = vweird.f32 %v1067_v33 }
0x15fa   :  { %v1080_v44 = vor.u32 1.1754944e-38, %v1079_v39  ;;  %vm1078_vm13 = vcmp.eq.f32.partialorder %v1077_v42, 8.507059e+37  ;;  %v245_v42 = vadd.f32 %v3753_v41, %v3674_v54 }
0x15fe   :  { %v3308_v34 = vpop.eup %3307 }
0x15ff   :  { %v1069_v37 = vmul.f32 %v3308_v34, %v1067_v33  ;;  %vm1074_vm10 = vweird.f32 %v3308_v34 }
0x1600   :  { %vm1075_vm12 = vmor %vm1073_vm11, %vm1074_vm10 }
0x1601   :  { %v1070_v38 = vsub.f32 1.0, %v1069_v37 }
0x1603   :  { %v1071_v40 = vmul.f32 %v3308_v34, %v1070_v38 }
0x1605   :  { %v1072_v43 = vadd.f32 %v3308_v34, %v1071_v40 }
0x1607   :  { %v1076_v52 = vsel %vm1075_vm12, %v3308_v34, %v1072_v43 }
0x1608   :  { %v1081_v45 = vsel %vm1078_vm13, %v1080_v44, %v1076_v52 }
0x1609   :  { %v1083_v46 = vmul.f32 2.0, %v1081_v45  ;;  %v1085_v49 = vmul.f32 %v1081_v45, %v1030_v14 }
0x160b   :  { %v3126_v47 = vadd.f32 -1.0, %v1083_v46 }
0x160d   :  { %1087 = vrot.lane.b32.xlu0 %v3126_v47, %s3472_s3 }
0x167f   :  { %v1088_v48 = vpop.permute.xlu0 %1087 }
0x1680   :  { %v1090_v0 = vmul.f32 %v1088_v48, %v1081_v45 }
0x1682   :  { %1092 = vrot.lane.b32.xlu1 %v1090_v0, %s3472_s3 }
0x16f4   :  { %v1093_v50 = vpop.permute.xlu1 %1092 }
0x16f5   :  { %v1095_v59 = vadd.f32 %v1093_v50, %v1085_v49 }
0x16f7   :  { %3309 = vtanh.f32 %v1095_v59 }
0x16fd   :  { %v3310_v60 = vpop.eup %3309 }
0x16fe   :  { %1098 = vrot.lane.b32.xlu2 %v3310_v60, %s3472_s3 }
0x1758   :  { %v1099_v61 = vpop.permute.xlu2 %1098 }
0x1759   :  { %v3799_v62 = vmul.f32 %v1099_v61, %v1081_v45 }
0x175b   :  { %v1108_v63 = vpack.c.bf16 %v3799_v62, %v3799_v62 }
0x175d   :  { %1110 = vrot.lane.b32.xlu0 %v1108_v63, %s3473_s19 }
0x17cf   :  { %v1111_v51 = vpop.permute.xlu0 %1110 }
0x17d0   :  { %3127 = vmatmul.msk.bf16.vlgmr.msrb.gmra.mxu0 %vm143_vm5, %v1111_v51 }
0x17d1   :  { %1641 = vmatpush.bf16.msrb.mxu0 %v3729_v35 }
0x17d5   :  { %1642 = vmatpush.bf16.msrb.mxu0 %v3735_v36 }
0x184d   :  { %v1124_v2 = vpop.f32.mrf.mxu0 }
0x184e   :  { %v1128_v4 = vadd.f32 %v1124_v2, %v242_v1 }
0x1850   :  { %v3128_v6 = vmul.f32 -1.442695, %v1128_v4 }
0x1852   :  { %3311 = vpow2.f32 %v3128_v6 }
0x1855   :  { %v1126_v11 = vpop.f32.mrf.mxu0 }
0x1856   :  { %v311_v11 = vld [vmem:[%s4438_s1 + $0x20] sm:$0xff] }
0x1857   :  { %3071 = vmatmul.msk.f32.vlgmr.msrb.gmra.mxu1 %vm46_vm0, %v311_v11 }
0x1858   :  { %v3312_v12 = vpop.eup %3311  ;;  %887 = vmatpush.msrb.mxu1 %v3602_v30  ;;  %v314_v30 = vld [vmem:[%s4438_s1 + $0x38] sm:$0xff] }
0x1859   :  { %v1132_v13 = vadd.f32 1.0, %v3312_v12 }
0x185b   :  { %3313 = vrcp.f32 %v1132_v13  ;;  %v1144_v17 = vand.u32 2147483648, %v1132_v13  ;;  %v1142_v19 = vand.u32 2147483647, %v1132_v13  ;;  %vm1138_vm15 = vweird.f32 %v1132_v13 }
0x185d   :  { %v1145_v22 = vor.u32 1.1754944e-38, %v1144_v17  ;;  %vm1143_vm2 = vcmp.eq.f32.partialorder %v1142_v19, 8.507059e+37  ;;  %v313_v17 = vld [vmem:[%s4438_s1 + $0x30] sm:$0xff] }
0x1861   :  { %v3314_v14 = vpop.eup %3313 }
0x1862   :  { %v1134_v15 = vmul.f32 %v3314_v14, %v1132_v13  ;;  %vm1139_vm14 = vweird.f32 %v3314_v14 }
0x1863   :  { %vm1140_vm1 = vmor %vm1138_vm15, %vm1139_vm14 }
0x1864   :  { %v1135_v16 = vsub.f32 1.0, %v1134_v15 }
0x1866   :  { %v1136_v18 = vmul.f32 %v3314_v14, %v1135_v16  ;;  %v312_v16 = vld [vmem:[%s4438_s1 + $0x28] sm:$0xff] }
0x1867   :  { %3072 = vmatmul.msk.f32.gmra.mxu1 %vm46_vm0, %v312_v16 }
0x1868   :  { %v1137_v20 = vadd.f32 %v3314_v14, %v1136_v18  ;;  %v529_v18 = vld [vmem:[%s4438_s1 + $0x60] sm:$0xff] }
0x186a   :  { %v1141_v53 = vsel %vm1140_vm1, %v3314_v14, %v1137_v20 }
0x186b   :  { %v1146_v23 = vsel %vm1143_vm2, %v1145_v22, %v1141_v53  ;;  %v530_v53 = vld [vmem:[%s4438_s1 + $0x68] sm:$0xff] }
0x186c   :  { %v1148_v26 = vmul.f32 2.0, %v1146_v23  ;;  %v1150_v31 = vmul.f32 %v1146_v23, %v1095_v59 }
0x186e   :  { %v3129_v27 = vadd.f32 -1.0, %v1148_v26  ;;  %v532_v26 = vld [vmem:[%s4438_s1 + $0x78] sm:$0xff] }
0x186f   :  { %3073 = vmatmul.msk.f32.gmra.mxu1 %vm46_vm0, %v313_v17 }
0x1870   :  { %1152 = vrot.lane.b32.xlu1 %v3129_v27, %s3472_s3  ;;  %v856_v27 = vld [vmem:[%s4438_s1 + $0xc0] sm:$0xff] }
0x1877   :  { %3074 = vmatmul.msk.f32.gmra.mxu1 %vm46_vm0, %v314_v30 }
0x187f   :  { %3085 = vmatmul.msk.f32.vlgmr.msra.gmra.mxu1 %vm46_vm0, %v529_v18 }
0x1880   :  { %1251 = vmatpush.bf16.msra.mxu1 %v3729_v35 }
0x1884   :  { %1252 = vmatpush.bf16.msra.mxu1 %v3735_v36 }
0x1887   :  { %3086 = vmatmul.msk.f32.gmra.mxu1 %vm46_vm0, %v530_v53 }
0x18e2   :  { %v1153_v28 = vpop.permute.xlu1 %1152 }
0x18e3   :  { %v1155_v29 = vmul.f32 %v1153_v28, %v1146_v23  ;;  %v857_v28 = vld [vmem:[%s4438_s1 + $0xc8] sm:$0xff] }
0x18e5   :  { %1157 = vrot.lane.b32.xlu2 %v1155_v29, %s3472_s3  ;;  %v858_v29 = vld [vmem:[%s4438_s1 + $0xd0] sm:$0xff] }
0x193f   :  { %v1158_v32 = vpop.permute.xlu2 %1157 }
0x1940   :  { %v1160_v33 = vadd.f32 %v1158_v32, %v1150_v31  ;;  %v859_v31 = vld [vmem:[%s4438_s1 + $0xd8] sm:$0xff] }
0x1942   :  { %3315 = vtanh.f32 %v1160_v33 }
0x1948   :  { %v3316_v34 = vpop.eup %3315 }
0x1949   :  { %1163 = vrot.lane.b32.xlu0 %v3316_v34, %s3472_s3 }
0x19bb   :  { %v1164_v37 = vpop.permute.xlu0 %1163 }
0x19bc   :  { %v3812_v38 = vmul.f32 %v1164_v37, %v1146_v23  ;;  %v531_v23 = vld [vmem:[%s4438_s1 + $0x70] sm:$0xff] }
0x19bd   :  { %3087 = vmatmul.msk.f32.gmra.mxu1 %vm46_vm0, %v531_v23 }
0x19be   :  { %v1173_v39 = vpack.c.bf16 %v3812_v38, %v3812_v38 }
0x19c0   :  { %1175 = vrot.lane.b32.xlu1 %v1173_v39, %s3473_s19 }
0x19c5   :  { %3088 = vmatmul.msk.f32.gmra.mxu1 %vm46_vm0, %v532_v26 }
0x19cd   :  { %3106 = vmatmul.msk.f32.vlgmr.msrb.gmra.mxu1 %vm46_vm0, %v856_v27 }
0x19ce   :  { %1511 = vmatpush.bf16.msrb.mxu1 %v3729_v35 }
0x19d2   :  { %1512 = vmatpush.bf16.msrb.mxu1 %v3735_v36 }
0x19d5   :  { %3107 = vmatmul.msk.f32.gmra.mxu1 %vm46_vm0, %v857_v28 }
0x19dd   :  { %3108 = vmatmul.msk.f32.gmra.mxu1 %vm46_vm0, %v858_v29 }
0x19e5   :  { %3109 = vmatmul.msk.f32.gmra.mxu1 %vm46_vm0, %v859_v31 }
0x1a32   :  { %v1176_v40 = vpop.permute.xlu1 %1175 }
0x1a33   :  { %3130 = vmatmul.msk.bf16.vlgmr.msra.gmra.mxu2 %vm143_vm5, %v1176_v40 }
0x1a34   :  { %1706 = vmatpush.bf16.msra.mxu2 %v3729_v35 }
0x1a38   :  { %1707 = vmatpush.bf16.msra.mxu2 %v3735_v36 }
0x1ab6   :  { %v1189_v43 = vpop.f32.mrf.mxu2 }
0x1ab7   :  { %v1193_v44 = vadd.f32 %v1189_v43, %v245_v42 }
0x1ab9   :  { %v3131_v52 = vmul.f32 -1.442695, %v1193_v44 }
0x1abb   :  { %3317 = vpow2.f32 %v3131_v52 }
0x1abe   :  { %v1191_v45 = vpop.f32.mrf.mxu2 }
0x1ac1   :  { %v3318_v46 = vpop.eup %3317 }
0x1ac2   :  { %v1197_v47 = vadd.f32 1.0, %v3318_v46 }
0x1ac4   :  { %3319 = vrcp.f32 %v1197_v47  ;;  %v1209_v50 = vand.u32 2147483648, %v1197_v47  ;;  %v1207_v60 = vand.u32 2147483647, %v1197_v47  ;;  %vm1203_vm4 = vweird.f32 %v1197_v47 }
0x1ac6   :  { %v1210_v63 = vor.u32 1.1754944e-38, %v1209_v50  ;;  %vm1208_vm7 = vcmp.eq.f32.partialorder %v1207_v60, 8.507059e+37 }
0x1aca   :  { %v3320_v48 = vpop.eup %3319 }
0x1acb   :  { %v1199_v0 = vmul.f32 %v3320_v48, %v1197_v47  ;;  %vm1204_vm3 = vweird.f32 %v3320_v48 }
0x1acc   :  { %vm1205_vm6 = vmor %vm1203_vm4, %vm1204_vm3 }
0x1acd   :  { %v1200_v49 = vsub.f32 1.0, %v1199_v0 }
0x1acf   :  { %v1201_v59 = vmul.f32 %v3320_v48, %v1200_v49 }
0x1ad1   :  { %v1202_v61 = vadd.f32 %v3320_v48, %v1201_v59 }
0x1ad3   :  { %v1206_v54 = vsel %vm1205_vm6, %v3320_v48, %v1202_v61 }
0x1ad4   :  { %v1211_v51 = vsel %vm1208_vm7, %v1210_v63, %v1206_v54 }
0x1ad5   :  { %v1213_v1 = vmul.f32 2.0, %v1211_v51  ;;  %v1215_v12 = vmul.f32 %v1211_v51, %v1160_v33  ;;  %v344_v33 = vpop.f32.mrf.mxu1 }
0x1ad6   :  { %v345_v48 = vadd.f32 %v3753_v41, %v344_v33 }
0x1ad7   :  { %v3132_v2 = vadd.f32 -1.0, %v1213_v1 }
0x1ad9   :  { %1217 = vrot.lane.b32.xlu2 %v3132_v2, %s3472_s3 }
0x1add   :  { %v347_v34 = vpop.f32.mrf.mxu1 }
0x1ae5   :  { %v3889_v37 = vpop.f32.mrf.mxu1 }
0x1aed   :  { %v3891_v39 = vpop.f32.mrf.mxu1 }
0x1af5   :  { %v3893_v40 = vpop.f32.mrf.mxu1 }
0x1afd   :  { %v3895_v42 = vpop.f32.mrf.mxu1 }
0x1b05   :  { %v3897_v43 = vpop.f32.mrf.mxu1 }
0x1b0d   :  { %v3899_v44 = vpop.f32.mrf.mxu1 }
0x1b15   :  { %v3901_v52 = vpop.f32.mrf.mxu1 }
0x1b1d   :  { %v3903_v45 = vpop.f32.mrf.mxu1 }
0x1b25   :  { %v3905_v46 = vpop.f32.mrf.mxu1 }
0x1b2d   :  { %v3907_v47 = vpop.f32.mrf.mxu1 }
0x1b33   :  { %v1218_v4 = vpop.permute.xlu2 %1217 }
0x1b34   :  { %v1220_v6 = vmul.f32 %v1218_v4, %v1211_v51 }
0x1b36   :  { %1222 = vrot.lane.b32.xlu0 %v1220_v6, %s3472_s3 }
0x1ba8   :  { %v1223_v13 = vpop.permute.xlu0 %1222 }
0x1ba9   :  { %v3829_v14 = vadd.f32 %v1223_v13, %v1215_v12 }
0x1bab   :  { %3321 = vtanh.f32 %v3829_v14 }
0x1bb1   :  { %v3322_v15 = vpop.eup %3321 }
0x1bb2   :  { %1228 = vrot.lane.b32.xlu1 %v3322_v15, %s3472_s3 }
0x1c24   :  { %v1229_v19 = vpop.permute.xlu1 %1228 }
0x1c25   :  { %v3850_v20 = vmul.f32 %v1229_v19, %v1211_v51 }
0x1c27   :  { %v1238_v22 = vpack.c.bf16 %v3850_v20, %v3850_v20 }
0x1c29   :  { %1240 = vrot.lane.b32.xlu2 %v1238_v22, %s3473_s19 }
0x1c83   :  { %v1241_v32 = vpop.permute.xlu2 %1240 }
0x1c84   :  { %3133 = vmatmul.msk.bf16.vlgmr.msra.gmra.mxu1 %vm143_vm5, %v1241_v32 }
0x1c85   :  { %1771 = vmatpush.bf16.msra.mxu1 %v3729_v35 }
0x1c89   :  { %1772 = vmatpush.bf16.msra.mxu1 %v3735_v36 }
0x1d01   :  { %v1254_v0 = vpop.f32.mrf.mxu1 }
0x1d02   :  { %v1258_v49 = vadd.f32 %v1254_v0, %v345_v48 }
0x1d04   :  { %v3134_v50 = vmul.f32 -1.442695, %v1258_v49 }
0x1d06   :  { %3323 = vpow2.f32 %v3134_v50 }
0x1d09   :  { %v1256_v59 = vpop.f32.mrf.mxu1 }
0x1d0c   :  { %v3324_v60 = vpop.eup %3323 }
0x1d0d   :  { %v1262_v61 = vadd.f32 1.0, %v3324_v60 }
0x1d0f   :  { %3325 = vrcp.f32 %v1262_v61  ;;  %v1274_v1 = vand.u32 2147483648, %v1262_v61  ;;  %v1272_v4 = vand.u32 2147483647, %v1262_v61  ;;  %vm1268_vm8 = vweird.f32 %v1262_v61 }
0x1d11   :  { %v1275_v11 = vor.u32 1.1754944e-38, %v1274_v1  ;;  %vm1273_vm10 = vcmp.eq.f32.partialorder %v1272_v4, 8.507059e+37 }
0x1d15   :  { %v3326_v63 = vpop.eup %3325 }
0x1d16   :  { %v1264_v54 = vmul.f32 %v3326_v63, %v1262_v61  ;;  %vm1269_vm0 = vweird.f32 %v3326_v63 }
0x1d17   :  { %vm1270_vm9 = vmor %vm1268_vm8, %vm1269_vm0 }
0x1d18   :  { %v1265_v51 = vsub.f32 1.0, %v1264_v54 }
0x1d1a   :  { %v1266_v2 = vmul.f32 %v3326_v63, %v1265_v51 }
0x1d1c   :  { %v1267_v6 = vadd.f32 %v3326_v63, %v1266_v2 }
0x1d1e   :  { %v1271_v12 = vsel %vm1270_vm9, %v3326_v63, %v1267_v6 }
0x1d1f   :  { %v1276_v13 = vsel %vm1273_vm10, %v1275_v11, %v1271_v12 }
0x1d20   :  { %v1278_v15 = vmul.f32 2.0, %v1276_v13  ;;  %v1280_v18 = vmul.f32 %v1276_v13, %v3829_v14  ;;  %v348_v14 = vadd.f32 %v3753_v41, %v347_v34 }
0x1d22   :  { %v3135_v16 = vadd.f32 -1.0, %v1278_v15 }
0x1d24   :  { %1282 = vrot.lane.b32.xlu0 %v3135_v16, %s3472_s3 }
0x1d96   :  { %v1283_v17 = vpop.permute.xlu0 %1282 }
0x1d97   :  { %v1285_v30 = vmul.f32 %v1283_v17, %v1276_v13 }
0x1d99   :  { %1287 = vrot.lane.b32.xlu1 %v1285_v30, %s3472_s3 }
0x1e0b   :  { %v1288_v19 = vpop.permute.xlu1 %1287 }
0x1e0c   :  { %v1290_v22 = vadd.f32 %v1288_v19, %v1280_v18 }
0x1e0e   :  { %3327 = vtanh.f32 %v1290_v22 }
0x1e14   :  { %v3328_v53 = vpop.eup %3327 }
0x1e15   :  { %1293 = vrot.lane.b32.xlu2 %v3328_v53, %s3472_s3 }
0x1e6f   :  { %v1294_v23 = vpop.permute.xlu2 %1293 }
0x1e70   :  { %v3914_v26 = vmul.f32 %v1294_v23, %v1276_v13 }
0x1e72   :  { %v1303_v27 = vpack.c.bf16 %v3914_v26, %v3914_v26 }
0x1e74   :  { %1305 = vrot.lane.b32.xlu0 %v1303_v27, %s3473_s19 }
0x1ee6   :  { %v1306_v28 = vpop.permute.xlu0 %1305 }
0x1ee7   :  { %3136 = vmatmul.msk.bf16.vlgmr.msra.gmra.mxu3 %vm143_vm5, %v1306_v28 }
0x1ee8   :  { %1836 = vmatpush.bf16.msra.mxu3 %v3729_v35 }
0x1eec   :  { %1837 = vmatpush.bf16.msra.mxu3 %v3735_v36 }
0x1f6a   :  { %v1319_v29 = vpop.f32.mrf.mxu3 }
0x1f6b   :  { %v1323_v31 = vadd.f32 %v1319_v29, %v348_v14 }
0x1f6d   :  { %v3137_v32 = vmul.f32 -1.442695, %v1323_v31 }
0x1f6f   :  { %3329 = vpow2.f32 %v3137_v32 }
0x1f72   :  { %v1321_v33 = vpop.f32.mrf.mxu3 }
0x1f75   :  { %v3330_v48 = vpop.eup %3329 }
0x1f76   :  { %v1327_v0 = vadd.f32 1.0, %v3330_v48 }
0x1f78   :  { %3331 = vrcp.f32 %v1327_v0  ;;  %v1339_v60 = vand.u32 2147483648, %v1327_v0  ;;  %v1337_v63 = vand.u32 2147483647, %v1327_v0  ;;  %vm1333_vm12 = vweird.f32 %v1327_v0 }
0x1f7a   :  { %v1340_v51 = vor.u32 1.1754944e-38, %v1339_v60  ;;  %vm1338_vm14 = vcmp.eq.f32.partialorder %v1337_v63, 8.507059e+37 }
0x1f7e   :  { %v3332_v49 = vpop.eup %3331 }
0x1f7f   :  { %v1329_v50 = vmul.f32 %v3332_v49, %v1327_v0  ;;  %vm1334_vm11 = vweird.f32 %v3332_v49 }
0x1f80   :  { %vm1335_vm13 = vmor %vm1333_vm12, %vm1334_vm11 }
0x1f81   :  { %v1330_v59 = vsub.f32 1.0, %v1329_v50 }
0x1f83   :  { %v1331_v61 = vmul.f32 %v3332_v49, %v1330_v59 }
0x1f85   :  { %v1332_v54 = vadd.f32 %v3332_v49, %v1331_v61 }
0x1f87   :  { %v1336_v34 = vsel %vm1335_vm13, %v3332_v49, %v1332_v54 }
0x1f88   :  { %v1341_v1 = vsel %vm1338_vm14, %v1340_v51, %v1336_v34 }
0x1f89   :  { %v1343_v2 = vmul.f32 2.0, %v1341_v1  ;;  %v1345_v12 = vmul.f32 %v1341_v1, %v1290_v22  ;;  %v351_v22 = vadd.f32 %v3753_v41, %v3889_v37 }
0x1f8b   :  { %v3138_v4 = vadd.f32 -1.0, %v1343_v2 }
0x1f8d   :  { %1347 = vrot.lane.b32.xlu1 %v3138_v4, %s3472_s3 }
0x1fff   :  { %v1348_v6 = vpop.permute.xlu1 %1347 }
0x2000   :  { %v1350_v11 = vmul.f32 %v1348_v6, %v1341_v1 }
0x2002   :  { %1352 = vrot.lane.b32.xlu2 %v1350_v11, %s3472_s3 }
0x205c   :  { %v1353_v13 = vpop.permute.xlu2 %1352 }
0x205d   :  { %v1355_v15 = vadd.f32 %v1353_v13, %v1345_v12 }
0x205f   :  { %3333 = vtanh.f32 %v1355_v15 }
0x2065   :  { %v3334_v16 = vpop.eup %3333 }
0x2066   :  { %1358 = vrot.lane.b32.xlu0 %v3334_v16, %s3472_s3 }
0x20d8   :  { %v1359_v17 = vpop.permute.xlu0 %1358 }
0x20d9   :  { %v3926_v30 = vmul.f32 %v1359_v17, %v1341_v1 }
0x20db   :  { %v1368_v18 = vpack.c.bf16 %v3926_v30, %v3926_v30 }
0x20dd   :  { %1370 = vrot.lane.b32.xlu1 %v1368_v18, %s3473_s19 }
0x214f   :  { %v1371_v19 = vpop.permute.xlu1 %1370 }
0x2150   :  { %3139 = vmatmul.msk.bf16.vlgmr.msra.gmra.mxu0 %vm143_vm5, %v1371_v19 }
0x2151   :  { %1901 = vmatpush.bf16.msra.mxu0 %v3729_v35 }
0x2155   :  { %1902 = vmatpush.bf16.msra.mxu0 %v3735_v36 }
0x21cd   :  { %v1384_v53 = vpop.f32.mrf.mxu0 }
0x21ce   :  { %v1388_v23 = vadd.f32 %v1384_v53, %v351_v22 }
0x21d0   :  { %v3140_v27 = vmul.f32 -1.442695, %v1388_v23 }
0x21d2   :  { %3335 = vpow2.f32 %v3140_v27 }
0x21d5   :  { %v1386_v28 = vpop.f32.mrf.mxu0 }
0x21d8   :  { %v3336_v14 = vpop.eup %3335 }
0x21d9   :  { %v1392_v29 = vadd.f32 1.0, %v3336_v14 }
0x21db   :  { %3337 = vrcp.f32 %v1392_v29  ;;  %v1404_v48 = vand.u32 2147483648, %v1392_v29  ;;  %v1402_v49 = vand.u32 2147483647, %v1392_v29  ;;  %vm1398_vm1 = vweird.f32 %v1392_v29 }
0x21dd   :  { %v1405_v59 = vor.u32 1.1754944e-38, %v1404_v48  ;;  %vm1403_vm3 = vcmp.eq.f32.partialorder %v1402_v49, 8.507059e+37 }
0x21e1   :  { %v3338_v31 = vpop.eup %3337 }
0x21e2   :  { %v1394_v32 = vmul.f32 %v3338_v31, %v1392_v29  ;;  %vm1399_vm15 = vweird.f32 %v3338_v31 }
0x21e3   :  { %vm1400_vm2 = vmor %vm1398_vm1, %vm1399_vm15 }
0x21e4   :  { %v1395_v33 = vsub.f32 1.0, %v1394_v32 }
0x21e6   :  { %v1396_v0 = vmul.f32 %v3338_v31, %v1395_v33 }
0x21e8   :  { %v1397_v50 = vadd.f32 %v3338_v31, %v1396_v0 }
0x21ea   :  { %v1401_v37 = vsel %vm1400_vm2, %v3338_v31, %v1397_v50 }
0x21eb   :  { %v1406_v60 = vsel %vm1403_vm3, %v1405_v59, %v1401_v37 }
0x21ec   :  { %v1408_v61 = vmul.f32 2.0, %v1406_v60  ;;  %v1410_v34 = vmul.f32 %v1406_v60, %v1355_v15  ;;  %v354_v15 = vadd.f32 %v3753_v41, %v3891_v39 }
0x21ee   :  { %v3141_v63 = vadd.f32 -1.0, %v1408_v61 }
0x21f0   :  { %1412 = vrot.lane.b32.xlu2 %v3141_v63, %s3472_s3 }
0x224a   :  { %v1413_v54 = vpop.permute.xlu2 %1412 }
0x224b   :  { %v1415_v51 = vmul.f32 %v1413_v54, %v1406_v60 }
0x224d   :  { %1417 = vrot.lane.b32.xlu0 %v1415_v51, %s3472_s3 }
0x22bf   :  { %v1418_v1 = vpop.permute.xlu0 %1417 }
0x22c0   :  { %v1420_v2 = vadd.f32 %v1418_v1, %v1410_v34 }
0x22c2   :  { %3339 = vtanh.f32 %v1420_v2 }
0x22c8   :  { %v3340_v4 = vpop.eup %3339 }
0x22c9   :  { %1423 = vrot.lane.b32.xlu1 %v3340_v4, %s3472_s3 }
0x233b   :  { %v1424_v6 = vpop.permute.xlu1 %1423 }
0x233c   :  { %v3939_v11 = vmul.f32 %v1424_v6, %v1406_v60 }
0x233e   :  { %v1433_v12 = vpack.c.bf16 %v3939_v11, %v3939_v11 }
0x2340   :  { %1435 = vrot.lane.b32.xlu2 %v1433_v12, %s3473_s19 }
0x239a   :  { %v1436_v13 = vpop.permute.xlu2 %1435 }
0x239b   :  { %3142 = vmatmul.msk.bf16.vlgmr.msrb.gmra.mxu2 %vm143_vm5, %v1436_v13 }
0x239c   :  { %1966 = vmatpush.bf16.msrb.mxu2 %v3729_v35 }
0x23a0   :  { %1967 = vmatpush.bf16.msrb.mxu2 %v3735_v36 }
0x241e   :  { %v1449_v16 = vpop.f32.mrf.mxu2 }
0x241f   :  { %v1453_v17 = vadd.f32 %v1449_v16, %v354_v15 }
0x2421   :  { %v3143_v18 = vmul.f32 -1.442695, %v1453_v17 }
0x2423   :  { %3341 = vpow2.f32 %v3143_v18 }
0x2426   :  { %v1451_v19 = vpop.f32.mrf.mxu2 }
0x2429   :  { %v3342_v22 = vpop.eup %3341 }
0x242a   :  { %v1457_v53 = vadd.f32 1.0, %v3342_v22 }
0x242c   :  { %3343 = vrcp.f32 %v1457_v53  ;;  %v1469_v14 = vand.u32 2147483648, %v1457_v53  ;;  %v1467_v31 = vand.u32 2147483647, %v1457_v53  ;;  %vm1463_vm6 = vweird.f32 %v1457_v53 }
0x242e   :  { %v1470_v33 = vor.u32 1.1754944e-38, %v1469_v14  ;;  %vm1468_vm0 = vcmp.eq.f32.partialorder %v1467_v31, 8.507059e+37 }
0x2432   :  { %v3344_v23 = vpop.eup %3343 }
0x2433   :  { %v1459_v27 = vmul.f32 %v3344_v23, %v1457_v53  ;;  %vm1464_vm4 = vweird.f32 %v3344_v23 }
0x2434   :  { %vm1465_vm7 = vmor %vm1463_vm6, %vm1464_vm4 }
0x2435   :  { %v1460_v28 = vsub.f32 1.0, %v1459_v27 }
0x2437   :  { %v1461_v29 = vmul.f32 %v3344_v23, %v1460_v28 }
0x2439   :  { %v1462_v32 = vadd.f32 %v3344_v23, %v1461_v29 }
0x243b   :  { %v1466_v39 = vsel %vm1465_vm7, %v3344_v23, %v1462_v32 }
0x243c   :  { %v1471_v48 = vsel %vm1468_vm0, %v1470_v33, %v1466_v39 }
0x243d   :  { %v1473_v0 = vmul.f32 2.0, %v1471_v48  ;;  %v1475_v37 = vmul.f32 %v1471_v48, %v1420_v2  ;;  %v454_v2 = vadd.f32 %v3753_v41, %v3676_v55 }
0x243f   :  { %v3144_v49 = vadd.f32 -1.0, %v1473_v0 }
0x2441   :  { %1477 = vrot.lane.b32.xlu0 %v3144_v49, %s3472_s3 }
0x24b3   :  { %v1478_v50 = vpop.permute.xlu0 %1477 }
0x24b4   :  { %v1480_v59 = vmul.f32 %v1478_v50, %v1471_v48 }
0x24b6   :  { %1482 = vrot.lane.b32.xlu1 %v1480_v59, %s3472_s3 }
0x2528   :  { %v1483_v60 = vpop.permute.xlu1 %1482 }
0x2529   :  { %v1485_v61 = vadd.f32 %v1483_v60, %v1475_v37 }
0x252b   :  { %3345 = vtanh.f32 %v1485_v61 }
0x2531   :  { %v3346_v63 = vpop.eup %3345 }
0x2532   :  { %1488 = vrot.lane.b32.xlu2 %v3346_v63, %s3472_s3 }
0x258c   :  { %v1489_v54 = vpop.permute.xlu2 %1488 }
0x258d   :  { %v3952_v51 = vmul.f32 %v1489_v54, %v1471_v48 }
0x258f   :  { %v1498_v34 = vpack.c.bf16 %v3952_v51, %v3952_v51 }
0x2591   :  { %1500 = vrot.lane.b32.xlu0 %v1498_v34, %s3473_s19 }
0x2603   :  { %v1501_v1 = vpop.permute.xlu0 %1500 }
0x2604   :  { %3145 = vmatmul.msk.bf16.vlgmr.msrb.gmra.mxu1 %vm143_vm5, %v1501_v1 }
0x2605   :  { %2031 = vmatpush.bf16.msrb.mxu1 %v3729_v35 }
0x2609   :  { %2032 = vmatpush.bf16.msrb.mxu1 %v3735_v36 }
0x2681   :  { %v1514_v4 = vpop.f32.mrf.mxu1 }
0x2682   :  { %v1518_v6 = vadd.f32 %v1514_v4, %v454_v2 }
0x2684   :  { %v3146_v12 = vmul.f32 -1.442695, %v1518_v6 }
0x2686   :  { %3347 = vpow2.f32 %v3146_v12 }
0x2689   :  { %v1516_v13 = vpop.f32.mrf.mxu1 }
0x268c   :  { %v3348_v15 = vpop.eup %3347 }
0x268d   :  { %v1522_v16 = vadd.f32 1.0, %v3348_v15 }
0x268f   :  { %3349 = vrcp.f32 %v1522_v16  ;;  %v1534_v22 = vand.u32 2147483648, %v1522_v16  ;;  %v1532_v23 = vand.u32 2147483647, %v1522_v16  ;;  %vm1528_vm9 = vweird.f32 %v1522_v16 }
0x2691   :  { %v1535_v28 = vor.u32 1.1754944e-38, %v1534_v22  ;;  %vm1533_vm11 = vcmp.eq.f32.partialorder %v1532_v23, 8.507059e+37 }
0x2695   :  { %v3350_v17 = vpop.eup %3349 }
0x2696   :  { %v1524_v18 = vmul.f32 %v3350_v17, %v1522_v16  ;;  %vm1529_vm8 = vweird.f32 %v3350_v17 }
0x2697   :  { %vm1530_vm10 = vmor %vm1528_vm9, %vm1529_vm8 }
0x2698   :  { %v1525_v19 = vsub.f32 1.0, %v1524_v18 }
0x269a   :  { %v1526_v53 = vmul.f32 %v3350_v17, %v1525_v19 }
0x269c   :  { %v1527_v27 = vadd.f32 %v3350_v17, %v1526_v53 }
0x269e   :  { %v1531_v55 = vsel %vm1530_vm10, %v3350_v17, %v1527_v27 }
0x269f   :  { %v1536_v14 = vsel %vm1533_vm11, %v1535_v28, %v1531_v55 }
0x26a0   :  { %v1538_v29 = vmul.f32 2.0, %v1536_v14  ;;  %v1540_v39 = vmul.f32 %v1536_v14, %v1485_v61  ;;  %v457_v61 = vadd.f32 %v3753_v41, %v3678_v56 }
0x26a2   :  { %v3147_v31 = vadd.f32 -1.0, %v1538_v29 }
0x26a4   :  { %1542 = vrot.lane.b32.xlu1 %v3147_v31, %s3472_s3 }
0x2716   :  { %v1543_v32 = vpop.permute.xlu1 %1542 }
0x2717   :  { %v1545_v33 = vmul.f32 %v1543_v32, %v1536_v14 }
0x2719   :  { %1547 = vrot.lane.b32.xlu2 %v1545_v33, %s3472_s3 }
0x2773   :  { %v1548_v48 = vpop.permute.xlu2 %1547 }
0x2774   :  { %v1550_v0 = vadd.f32 %v1548_v48, %v1540_v39 }
0x2776   :  { %3351 = vtanh.f32 %v1550_v0 }
0x277c   :  { %v3352_v49 = vpop.eup %3351 }
0x277d   :  { %1553 = vrot.lane.b32.xlu0 %v3352_v49, %s3472_s3 }
0x27ef   :  { %v1554_v50 = vpop.permute.xlu0 %1553 }
0x27f0   :  { %v3965_v59 = vmul.f32 %v1554_v50, %v1536_v14 }
0x27f2   :  { %v1563_v37 = vpack.c.bf16 %v3965_v59, %v3965_v59 }
0x27f4   :  { %1565 = vrot.lane.b32.xlu1 %v1563_v37, %s3473_s19 }
0x2866   :  { %v1566_v60 = vpop.permute.xlu1 %1565 }
0x2867   :  { %3148 = vmatmul.msk.bf16.vlgmr.msrb.gmra.mxu3 %vm143_vm5, %v1566_v60 }
0x2868   :  { %2096 = vmatpush.bf16.msrb.mxu3 %v3729_v35 }
0x286c   :  { %2097 = vmatpush.bf16.msrb.mxu3 %v3735_v36 }
0x28ea   :  { %v1579_v63 = vpop.f32.mrf.mxu3 }
0x28eb   :  { %v1583_v54 = vadd.f32 %v1579_v63, %v457_v61 }
0x28ed   :  { %v3149_v34 = vmul.f32 -1.442695, %v1583_v54 }
0x28ef   :  { %3353 = vpow2.f32 %v3149_v34 }
0x28f2   :  { %v1581_v1 = vpop.f32.mrf.mxu3 }
0x28f5   :  { %v3354_v2 = vpop.eup %3353 }
0x28f6   :  { %v1587_v4 = vadd.f32 1.0, %v3354_v2 }
0x28f8   :  { %3355 = vrcp.f32 %v1587_v4  ;;  %v1599_v15 = vand.u32 2147483648, %v1587_v4  ;;  %v1597_v17 = vand.u32 2147483647, %v1587_v4  ;;  %vm1593_vm13 = vweird.f32 %v1587_v4 }
0x28fa   :  { %v1600_v19 = vor.u32 1.1754944e-38, %v1599_v15  ;;  %vm1598_vm15 = vcmp.eq.f32.partialorder %v1597_v17, 8.507059e+37 }
0x28fe   :  { %v3356_v6 = vpop.eup %3355 }
0x28ff   :  { %v1589_v12 = vmul.f32 %v3356_v6, %v1587_v4  ;;  %vm1594_vm12 = vweird.f32 %v3356_v6 }
0x2900   :  { %vm1595_vm14 = vmor %vm1593_vm13, %vm1594_vm12 }
0x2901   :  { %v1590_v13 = vsub.f32 1.0, %v1589_v12 }
0x2903   :  { %v1591_v16 = vmul.f32 %v3356_v6, %v1590_v13 }
0x2905   :  { %v1592_v18 = vadd.f32 %v3356_v6, %v1591_v16 }
0x2907   :  { %v1596_v56 = vsel %vm1595_vm14, %v3356_v6, %v1592_v18 }
0x2908   :  { %v1601_v22 = vsel %vm1598_vm15, %v1600_v19, %v1596_v56 }
0x2909   :  { %v1603_v53 = vmul.f32 2.0, %v1601_v22  ;;  %v1605_v55 = vmul.f32 %v1601_v22, %v1550_v0  ;;  %v460_v0 = vadd.f32 %v3753_v41, %v3680_v57 }
0x290b   :  { %v3150_v23 = vadd.f32 -1.0, %v1603_v53 }
0x290d   :  { %1607 = vrot.lane.b32.xlu2 %v3150_v23, %s3472_s3 }
0x2967   :  { %v1608_v27 = vpop.permute.xlu2 %1607 }
0x2968   :  { %v1610_v28 = vmul.f32 %v1608_v27, %v1601_v22 }
0x296a   :  { %1612 = vrot.lane.b32.xlu0 %v1610_v28, %s3472_s3  ;;  %v4000_v28 = vld [vmem:[%s4440_s6 + $0x8] sm:$0xff] }
0x29dc   :  { %v1613_v14 = vpop.permute.xlu0 %1612 }
0x29dd   :  { %v1615_v29 = vadd.f32 %v1613_v14, %v1605_v55  ;;  %v4006_v55 = vld [vmem:[%s4440_s6] sm:$0xff] }
0x29de   :  { %v4012_v14 = vld [vmem:[%s4439_s7] ss:$0 sm:$0xff] }
0x29df   :  { %3357 = vtanh.f32 %v1615_v29 }
0x29e5   :  { %v3358_v31 = vpop.eup %3357 }
0x29e6   :  { %1618 = vrot.lane.b32.xlu1 %v3358_v31, %s3472_s3 }
0x2a58   :  { %v1619_v32 = vpop.permute.xlu1 %1618 }
0x2a59   :  { %v3978_v33 = vmul.f32 %v1619_v32, %v1601_v22 }
0x2a5b   :  { %v1628_v39 = vpack.c.bf16 %v3978_v33, %v3978_v33 }
0x2a5d   :  { %1630 = vrot.lane.b32.xlu2 %v1628_v39, %s3473_s19 }
0x2ab7   :  { %v1631_v48 = vpop.permute.xlu2 %1630 }
0x2ab8   :  { %3151 = vmatmul.msk.bf16.vlgmr.msrb.gmra.mxu0 %vm143_vm5, %v1631_v48 }
0x2ab9   :  { %2161 = vmatpush.bf16.msrb.mxu0 %v3729_v35 }
0x2abd   :  { %2162 = vmatpush.bf16.msrb.mxu0 %v3735_v36 }
0x2b35   :  { %v1644_v49 = vpop.f32.mrf.mxu0 }
0x2b36   :  { %v1648_v50 = vadd.f32 %v1644_v49, %v460_v0 }
0x2b38   :  { %v3152_v37 = vmul.f32 -1.442695, %v1648_v50 }
0x2b3a   :  { %3359 = vpow2.f32 %v3152_v37 }
0x2b3d   :  { %v1646_v60 = vpop.f32.mrf.mxu0 }
0x2b40   :  { %v3360_v61 = vpop.eup %3359 }
0x2b41   :  { %v1652_v63 = vadd.f32 1.0, %v3360_v61 }
0x2b43   :  { %3361 = vrcp.f32 %v1652_v63  ;;  %v1664_v2 = vand.u32 2147483648, %v1652_v63  ;;  %v1662_v35 = vand.u32 2147483647, %v1652_v63  ;;  %vm1658_vm2 = vweird.f32 %v1652_v63 }
0x2b45   :  { %v1665_v36 = vor.u32 1.1754944e-38, %v1664_v2  ;;  %vm1663_vm4 = vcmp.eq.f32.partialorder %v1662_v35, 8.507059e+37 }
0x2b49   :  { %v3362_v54 = vpop.eup %3361 }
0x2b4a   :  { %v1654_v34 = vmul.f32 %v3362_v54, %v1652_v63  ;;  %vm1659_vm1 = vweird.f32 %v3362_v54 }
0x2b4b   :  { %vm1660_vm3 = vmor %vm1658_vm2, %vm1659_vm1 }
0x2b4c   :  { %v1655_v1 = vsub.f32 1.0, %v1654_v34 }
0x2b4e   :  { %v1656_v4 = vmul.f32 %v3362_v54, %v1655_v1 }
0x2b50   :  { %v1657_v6 = vadd.f32 %v3362_v54, %v1656_v4 }
0x2b52   :  { %v1661_v57 = vsel %vm1660_vm3, %v3362_v54, %v1657_v6 }
0x2b53   :  { %v1666_v41 = vsel %vm1663_vm4, %v1665_v36, %v1661_v57 }
0x2b54   :  { %v1668_v12 = vmul.f32 2.0, %v1666_v41  ;;  %v1670_v17 = vmul.f32 %v1666_v41, %v1615_v29  ;;  %v463_v29 = vadd.f32 %v4012_v14, %v3682_v58 }
0x2b56   :  { %v3153_v13 = vadd.f32 -1.0, %v1668_v12 }
0x2b58   :  { %1672 = vrot.lane.b32.xlu0 %v3153_v13, %s3472_s3 }
0x2bca   :  { %v1673_v15 = vpop.permute.xlu0 %1672 }
0x2bcb   :  { %v1675_v16 = vmul.f32 %v1673_v15, %v1666_v41 }
0x2bcd   :  { %1677 = vrot.lane.b32.xlu1 %v1675_v16, %s3472_s3 }
0x2c3f   :  { %v1678_v18 = vpop.permute.xlu1 %1677 }
0x2c40   :  { %v1680_v19 = vadd.f32 %v1678_v18, %v1670_v17 }
0x2c42   :  { %3363 = vtanh.f32 %v1680_v19 }
0x2c48   :  { %v3364_v56 = vpop.eup %3363 }
0x2c49   :  { %1683 = vrot.lane.b32.xlu2 %v3364_v56, %s3472_s3 }
0x2ca3   :  { %v1684_v22 = vpop.permute.xlu2 %1683 }
0x2ca4   :  { %v3991_v53 = vmul.f32 %v1684_v22, %v1666_v41 }
0x2ca6   :  { %v1693_v23 = vpack.c.bf16 %v3991_v53, %v3991_v53 }
0x2ca8   :  { %1695 = vrot.lane.b32.xlu0 %v1693_v23, %s3473_s19 }
0x2d1a   :  { %v1696_v27 = vpop.permute.xlu0 %1695 }
0x2d1b   :  { %3154 = vmatmul.msk.bf16.vlgmr.msra.gmra.mxu2 %vm143_vm5, %v1696_v27 }
0x2d1c   :  { %2226 = vmatpush.bf16.msra.mxu2 %v4000_v28 }
0x2d20   :  { %2227 = vmatpush.bf16.msra.mxu2 %v4006_v55 }
0x2d9e   :  { %v1709_v31 = vpop.f32.mrf.mxu2 }
0x2d9f   :  { %v1713_v32 = vadd.f32 %v1709_v31, %v463_v29 }
0x2da1   :  { %v3155_v39 = vmul.f32 -1.442695, %v1713_v32 }
0x2da3   :  { %3365 = vpow2.f32 %v3155_v39 }
0x2da6   :  { %v1711_v48 = vpop.f32.mrf.mxu2 }
0x2da9   :  { %v3366_v0 = vpop.eup %3365 }
0x2daa   :  { %v1717_v49 = vadd.f32 1.0, %v3366_v0 }
0x2dac   :  { %3367 = vrcp.f32 %v1717_v49  ;;  %v1729_v61 = vand.u32 2147483648, %v1717_v49  ;;  %v1727_v54 = vand.u32 2147483647, %v1717_v49  ;;  %vm1723_vm7 = vweird.f32 %v1717_v49 }
0x2dae   :  { %v1730_v1 = vor.u32 1.1754944e-38, %v1729_v61  ;;  %vm1728_vm8 = vcmp.eq.f32.partialorder %v1727_v54, 8.507059e+37 }
0x2db2   :  { %v3368_v50 = vpop.eup %3367 }
0x2db3   :  { %v1719_v37 = vmul.f32 %v3368_v50, %v1717_v49  ;;  %vm1724_vm6 = vweird.f32 %v3368_v50 }
0x2db4   :  { %vm1725_vm0 = vmor %vm1723_vm7, %vm1724_vm6 }
0x2db5   :  { %v1720_v60 = vsub.f32 1.0, %v1719_v37 }
0x2db7   :  { %v1721_v63 = vmul.f32 %v3368_v50, %v1720_v60 }
0x2db9   :  { %v1722_v34 = vadd.f32 %v3368_v50, %v1721_v63 }
0x2dbb   :  { %v1726_v58 = vsel %vm1725_vm0, %v3368_v50, %v1722_v34 }
0x2dbc   :  { %v1731_v2 = vsel %vm1728_vm8, %v1730_v1, %v1726_v58 }
0x2dbd   :  { %v1733_v4 = vmul.f32 2.0, %v1731_v2  ;;  %v1735_v57 = vmul.f32 %v1731_v2, %v1680_v19  ;;  %v563_v19 = vadd.f32 %v4012_v14, %v3893_v40 }
0x2dbf   :  { %v3156_v35 = vadd.f32 -1.0, %v1733_v4 }
0x2dc1   :  { %1737 = vrot.lane.b32.xlu1 %v3156_v35, %s3472_s3 }
0x2e33   :  { %v1738_v6 = vpop.permute.xlu1 %1737 }
0x2e34   :  { %v1740_v36 = vmul.f32 %v1738_v6, %v1731_v2 }
0x2e36   :  { %1742 = vrot.lane.b32.xlu2 %v1740_v36, %s3472_s3 }
0x2e90   :  { %v1743_v41 = vpop.permute.xlu2 %1742 }
0x2e91   :  { %v1745_v12 = vadd.f32 %v1743_v41, %v1735_v57 }
0x2e93   :  { %3369 = vtanh.f32 %v1745_v12 }
0x2e99   :  { %v3370_v13 = vpop.eup %3369 }
0x2e9a   :  { %1748 = vrot.lane.b32.xlu0 %v3370_v13, %s3472_s3 }
0x2f0c   :  { %v1749_v15 = vpop.permute.xlu0 %1748 }
0x2f0d   :  { %v4019_v16 = vmul.f32 %v1749_v15, %v1731_v2 }
0x2f0f   :  { %v1758_v17 = vpack.c.bf16 %v4019_v16, %v4019_v16 }
0x2f11   :  { %1760 = vrot.lane.b32.xlu1 %v1758_v17, %s3473_s19 }
0x2f83   :  { %v1761_v18 = vpop.permute.xlu1 %1760 }
0x2f84   :  { %3157 = vmatmul.msk.bf16.vlgmr.msra.gmra.mxu1 %vm143_vm5, %v1761_v18 }
0x2f85   :  { %2291 = vmatpush.bf16.msra.mxu1 %v4000_v28 }
0x2f89   :  { %2292 = vmatpush.bf16.msra.mxu1 %v4006_v55 }
0x3001   :  { %v1774_v56 = vpop.f32.mrf.mxu1 }
0x3002   :  { %v1778_v22 = vadd.f32 %v1774_v56, %v563_v19 }
0x3004   :  { %v3158_v23 = vmul.f32 -1.442695, %v1778_v22 }
0x3006   :  { %3371 = vpow2.f32 %v3158_v23 }
0x3009   :  { %v1776_v27 = vpop.f32.mrf.mxu1 }
0x300c   :  { %v3372_v29 = vpop.eup %3371 }
0x300d   :  { %v1782_v31 = vadd.f32 1.0, %v3372_v29 }
0x300f   :  { %3373 = vrcp.f32 %v1782_v31  ;;  %v1794_v0 = vand.u32 2147483648, %v1782_v31  ;;  %v1792_v50 = vand.u32 2147483647, %v1782_v31  ;;  %vm1788_vm10 = vweird.f32 %v1782_v31 }
0x3011   :  { %v1795_v60 = vor.u32 1.1754944e-38, %v1794_v0  ;;  %vm1793_vm12 = vcmp.eq.f32.partialorder %v1792_v50, 8.507059e+37 }
0x3015   :  { %v3374_v32 = vpop.eup %3373 }
0x3016   :  { %v1784_v39 = vmul.f32 %v3374_v32, %v1782_v31  ;;  %vm1789_vm9 = vweird.f32 %v3374_v32 }
0x3017   :  { %vm1790_vm11 = vmor %vm1788_vm10, %vm1789_vm9 }
0x3018   :  { %v1785_v48 = vsub.f32 1.0, %v1784_v39 }
0x301a   :  { %v1786_v49 = vmul.f32 %v3374_v32, %v1785_v48 }
0x301c   :  { %v1787_v37 = vadd.f32 %v3374_v32, %v1786_v49 }
0x301e   :  { %v1791_v40 = vsel %vm1790_vm11, %v3374_v32, %v1787_v37 }
0x301f   :  { %v1796_v61 = vsel %vm1793_vm12, %v1795_v60, %v1791_v40 }
0x3020   :  { %v1798_v63 = vmul.f32 2.0, %v1796_v61  ;;  %v1800_v58 = vmul.f32 %v1796_v61, %v1745_v12  ;;  %v566_v12 = vadd.f32 %v4012_v14, %v3895_v42 }
0x3022   :  { %v3159_v54 = vadd.f32 -1.0, %v1798_v63 }
0x3024   :  { %1802 = vrot.lane.b32.xlu2 %v3159_v54, %s3472_s3 }
0x307e   :  { %v1803_v34 = vpop.permute.xlu2 %1802 }
0x307f   :  { %v1805_v1 = vmul.f32 %v1803_v34, %v1796_v61 }
0x3081   :  { %1807 = vrot.lane.b32.xlu0 %v1805_v1, %s3472_s3 }
0x30f3   :  { %v1808_v2 = vpop.permute.xlu0 %1807 }
0x30f4   :  { %v1810_v4 = vadd.f32 %v1808_v2, %v1800_v58 }
0x30f6   :  { %3375 = vtanh.f32 %v1810_v4 }
0x30fc   :  { %v3376_v35 = vpop.eup %3375 }
0x30fd   :  { %1813 = vrot.lane.b32.xlu1 %v3376_v35, %s3472_s3 }
0x316f   :  { %v1814_v6 = vpop.permute.xlu1 %1813 }
0x3170   :  { %v4032_v36 = vmul.f32 %v1814_v6, %v1796_v61 }
0x3172   :  { %v1823_v57 = vpack.c.bf16 %v4032_v36, %v4032_v36 }
0x3174   :  { %1825 = vrot.lane.b32.xlu2 %v1823_v57, %s3473_s19 }
0x31ce   :  { %v1826_v41 = vpop.permute.xlu2 %1825 }
0x31cf   :  { %3160 = vmatmul.msk.bf16.vlgmr.msra.gmra.mxu3 %vm143_vm5, %v1826_v41 }
0x31d0   :  { %2356 = vmatpush.bf16.msra.mxu3 %v4000_v28 }
0x31d4   :  { %2357 = vmatpush.bf16.msra.mxu3 %v4006_v55 }
0x3252   :  { %v1839_v13 = vpop.f32.mrf.mxu3 }
0x3253   :  { %v1843_v15 = vadd.f32 %v1839_v13, %v566_v12 }
0x3255   :  { %v3161_v17 = vmul.f32 -1.442695, %v1843_v15 }
0x3257   :  { %3377 = vpow2.f32 %v3161_v17 }
0x325a   :  { %v1841_v18 = vpop.f32.mrf.mxu3 }
0x325d   :  { %v3378_v19 = vpop.eup %3377 }
0x325e   :  { %v1847_v56 = vadd.f32 1.0, %v3378_v19 }
0x3260   :  { %3379 = vrcp.f32 %v1847_v56  ;;  %v1859_v29 = vand.u32 2147483648, %v1847_v56  ;;  %v1857_v32 = vand.u32 2147483647, %v1847_v56  ;;  %vm1853_vm14 = vweird.f32 %v1847_v56 }
0x3262   :  { %v1860_v48 = vor.u32 1.1754944e-38, %v1859_v29  ;;  %vm1858_vm1 = vcmp.eq.f32.partialorder %v1857_v32, 8.507059e+37 }
0x3266   :  { %v3380_v22 = vpop.eup %3379 }
0x3267   :  { %v1849_v23 = vmul.f32 %v3380_v22, %v1847_v56  ;;  %vm1854_vm13 = vweird.f32 %v3380_v22 }
0x3268   :  { %vm1855_vm15 = vmor %vm1853_vm14, %vm1854_vm13 }
0x3269   :  { %v1850_v27 = vsub.f32 1.0, %v1849_v23 }
0x326b   :  { %v1851_v31 = vmul.f32 %v3380_v22, %v1850_v27 }
0x326d   :  { %v1852_v39 = vadd.f32 %v3380_v22, %v1851_v31 }
0x326f   :  { %v1856_v42 = vsel %vm1855_vm15, %v3380_v22, %v1852_v39 }
0x3270   :  { %v1861_v0 = vsel %vm1858_vm1, %v1860_v48, %v1856_v42 }
0x3271   :  { %v1863_v49 = vmul.f32 2.0, %v1861_v0  ;;  %v1865_v40 = vmul.f32 %v1861_v0, %v1810_v4  ;;  %v569_v4 = vadd.f32 %v4012_v14, %v3897_v43 }
0x3273   :  { %v3162_v50 = vadd.f32 -1.0, %v1863_v49 }
0x3275   :  { %1867 = vrot.lane.b32.xlu0 %v3162_v50, %s3472_s3 }
0x32e7   :  { %v1868_v37 = vpop.permute.xlu0 %1867 }
0x32e8   :  { %v1870_v60 = vmul.f32 %v1868_v37, %v1861_v0 }
0x32ea   :  { %1872 = vrot.lane.b32.xlu1 %v1870_v60, %s3472_s3 }
0x335c   :  { %v1873_v61 = vpop.permute.xlu1 %1872 }
0x335d   :  { %v1875_v63 = vadd.f32 %v1873_v61, %v1865_v40 }
0x335f   :  { %3381 = vtanh.f32 %v1875_v63 }
0x3365   :  { %v3382_v54 = vpop.eup %3381 }
0x3366   :  { %1878 = vrot.lane.b32.xlu2 %v3382_v54, %s3472_s3 }
0x33c0   :  { %v1879_v34 = vpop.permute.xlu2 %1878 }
0x33c1   :  { %v4045_v1 = vmul.f32 %v1879_v34, %v1861_v0 }
0x33c3   :  { %v1888_v58 = vpack.c.bf16 %v4045_v1, %v4045_v1 }
0x33c5   :  { %1890 = vrot.lane.b32.xlu0 %v1888_v58, %s3473_s19 }
0x3437   :  { %v1891_v2 = vpop.permute.xlu0 %1890 }
0x3438   :  { %3163 = vmatmul.msk.bf16.vlgmr.msra.gmra.mxu0 %vm143_vm5, %v1891_v2 }
0x3439   :  { %2421 = vmatpush.bf16.msra.mxu0 %v4000_v28 }
0x343d   :  { %2422 = vmatpush.bf16.msra.mxu0 %v4006_v55 }
0x34b5   :  { %v1904_v35 = vpop.f32.mrf.mxu0 }
0x34b6   :  { %v1908_v6 = vadd.f32 %v1904_v35, %v569_v4 }
0x34b8   :  { %v3164_v57 = vmul.f32 -1.442695, %v1908_v6 }
0x34ba   :  { %3383 = vpow2.f32 %v3164_v57 }
0x34bd   :  { %v1906_v41 = vpop.f32.mrf.mxu0 }
0x34c0   :  { %v3384_v12 = vpop.eup %3383 }
0x34c1   :  { %v1912_v13 = vadd.f32 1.0, %v3384_v12 }
0x34c3   :  { %3385 = vrcp.f32 %v1912_v13  ;;  %v1924_v19 = vand.u32 2147483648, %v1912_v13  ;;  %v1922_v22 = vand.u32 2147483647, %v1912_v13  ;;  %vm1918_vm3 = vweird.f32 %v1912_v13 }
0x34c5   :  { %v1925_v27 = vor.u32 1.1754944e-38, %v1924_v19  ;;  %vm1923_vm6 = vcmp.eq.f32.partialorder %v1922_v22, 8.507059e+37 }
0x34c9   :  { %v3386_v15 = vpop.eup %3385 }
0x34ca   :  { %v1914_v17 = vmul.f32 %v3386_v15, %v1912_v13  ;;  %vm1919_vm2 = vweird.f32 %v3386_v15 }
0x34cb   :  { %vm1920_vm4 = vmor %vm1918_vm3, %vm1919_vm2 }
0x34cc   :  { %v1915_v18 = vsub.f32 1.0, %v1914_v17 }
0x34ce   :  { %v1916_v56 = vmul.f32 %v3386_v15, %v1915_v18 }
0x34d0   :  { %v1917_v23 = vadd.f32 %v3386_v15, %v1916_v56 }
0x34d2   :  { %v1921_v43 = vsel %vm1920_vm4, %v3386_v15, %v1917_v23 }
0x34d3   :  { %v1926_v29 = vsel %vm1923_vm6, %v1925_v27, %v1921_v43 }
0x34d4   :  { %v1928_v31 = vmul.f32 2.0, %v1926_v29  ;;  %v1930_v42 = vmul.f32 %v1926_v29, %v1875_v63  ;;  %v572_v63 = vadd.f32 %v4012_v14, %v3899_v44 }
0x34d6   :  { %v3165_v32 = vadd.f32 -1.0, %v1928_v31 }
0x34d8   :  { %1932 = vrot.lane.b32.xlu1 %v3165_v32, %s3472_s3 }
0x354a   :  { %v1933_v39 = vpop.permute.xlu1 %1932 }
0x354b   :  { %v1935_v48 = vmul.f32 %v1933_v39, %v1926_v29 }
0x354d   :  { %1937 = vrot.lane.b32.xlu2 %v1935_v48, %s3472_s3 }
0x35a7   :  { %v1938_v0 = vpop.permute.xlu2 %1937 }
0x35a8   :  { %v1940_v49 = vadd.f32 %v1938_v0, %v1930_v42 }
0x35aa   :  { %3387 = vtanh.f32 %v1940_v49 }
0x35b0   :  { %v3388_v50 = vpop.eup %3387 }
0x35b1   :  { %1943 = vrot.lane.b32.xlu0 %v3388_v50, %s3472_s3 }
0x3623   :  { %v1944_v37 = vpop.permute.xlu0 %1943 }
0x3624   :  { %v4058_v60 = vmul.f32 %v1944_v37, %v1926_v29 }
0x3626   :  { %v1953_v40 = vpack.c.bf16 %v4058_v60, %v4058_v60 }
0x3628   :  { %1955 = vrot.lane.b32.xlu1 %v1953_v40, %s3473_s19 }
0x369a   :  { %v1956_v61 = vpop.permute.xlu1 %1955 }
0x369b   :  { %3166 = vmatmul.msk.bf16.vlgmr.msrb.gmra.mxu2 %vm143_vm5, %v1956_v61 }
0x369c   :  { %2486 = vmatpush.bf16.msrb.mxu2 %v4000_v28 }
0x36a0   :  { %2487 = vmatpush.bf16.msrb.mxu2 %v4006_v55 }
0x371e   :  { %v1969_v54 = vpop.f32.mrf.mxu2 }
0x371f   :  { %v1973_v34 = vadd.f32 %v1969_v54, %v572_v63 }
0x3721   :  { %v3167_v58 = vmul.f32 -1.442695, %v1973_v34 }
0x3723   :  { %3389 = vpow2.f32 %v3167_v58 }
0x3726   :  { %v1971_v2 = vpop.f32.mrf.mxu2 }
0x3729   :  { %v3390_v4 = vpop.eup %3389 }
0x372a   :  { %v1977_v35 = vadd.f32 1.0, %v3390_v4 }
0x372c   :  { %3391 = vrcp.f32 %v1977_v35  ;;  %v1989_v12 = vand.u32 2147483648, %v1977_v35  ;;  %v1987_v15 = vand.u32 2147483647, %v1977_v35  ;;  %vm1983_vm0 = vweird.f32 %v1977_v35 }
0x372e   :  { %v1990_v18 = vor.u32 1.1754944e-38, %v1989_v12  ;;  %vm1988_vm9 = vcmp.eq.f32.partialorder %v1987_v15, 8.507059e+37 }
0x3732   :  { %v3392_v6 = vpop.eup %3391 }
0x3733   :  { %v1979_v57 = vmul.f32 %v3392_v6, %v1977_v35  ;;  %vm1984_vm7 = vweird.f32 %v3392_v6 }
0x3734   :  { %vm1985_vm8 = vmor %vm1983_vm0, %vm1984_vm7 }
0x3735   :  { %v1980_v41 = vsub.f32 1.0, %v1979_v57 }
0x3737   :  { %v1981_v13 = vmul.f32 %v3392_v6, %v1980_v41 }
0x3739   :  { %v1982_v17 = vadd.f32 %v3392_v6, %v1981_v13 }
0x373b   :  { %v1986_v44 = vsel %vm1985_vm8, %v3392_v6, %v1982_v17 }
0x373c   :  { %v1991_v19 = vsel %vm1988_vm9, %v1990_v18, %v1986_v44 }
0x373d   :  { %v1993_v56 = vmul.f32 2.0, %v1991_v19  ;;  %v1995_v43 = vmul.f32 %v1991_v19, %v1940_v49  ;;  %v672_v49 = vadd.f32 %v4012_v14, %v3713_v7 }
0x373f   :  { %v3168_v22 = vadd.f32 -1.0, %v1993_v56 }
0x3741   :  { %1997 = vrot.lane.b32.xlu2 %v3168_v22, %s3472_s3 }
0x379b   :  { %v1998_v23 = vpop.permute.xlu2 %1997 }
0x379c   :  { %v2000_v27 = vmul.f32 %v1998_v23, %v1991_v19 }
0x379e   :  { %2002 = vrot.lane.b32.xlu0 %v2000_v27, %s3472_s3 }
0x3810   :  { %v2003_v29 = vpop.permute.xlu0 %2002 }
0x3811   :  { %v2005_v31 = vadd.f32 %v2003_v29, %v1995_v43 }
0x3813   :  { %3393 = vtanh.f32 %v2005_v31 }
0x3819   :  { %v3394_v32 = vpop.eup %3393 }
0x381a   :  { %2008 = vrot.lane.b32.xlu1 %v3394_v32, %s3472_s3 }
0x388c   :  { %v2009_v39 = vpop.permute.xlu1 %2008 }
0x388d   :  { %v4071_v48 = vmul.f32 %v2009_v39, %v1991_v19 }
0x388f   :  { %v2018_v42 = vpack.c.bf16 %v4071_v48, %v4071_v48 }
0x3891   :  { %2020 = vrot.lane.b32.xlu2 %v2018_v42, %s3473_s19 }
0x38eb   :  { %v2021_v0 = vpop.permute.xlu2 %2020 }
0x38ec   :  { %3169 = vmatmul.msk.bf16.vlgmr.msrb.gmra.mxu1 %vm143_vm5, %v2021_v0 }
0x38ed   :  { %2551 = vmatpush.bf16.msrb.mxu1 %v4000_v28 }
0x38f1   :  { %2552 = vmatpush.bf16.msrb.mxu1 %v4006_v55 }
0x3969   :  { %v2034_v50 = vpop.f32.mrf.mxu1 }
0x396a   :  { %v2038_v37 = vadd.f32 %v2034_v50, %v672_v49 }
0x396c   :  { %v3170_v40 = vmul.f32 -1.442695, %v2038_v37 }
0x396e   :  { %3395 = vpow2.f32 %v3170_v40 }
0x3971   :  { %v2036_v61 = vpop.f32.mrf.mxu1 }
0x3974   :  { %v3396_v63 = vpop.eup %3395 }
0x3975   :  { %v2042_v54 = vadd.f32 1.0, %v3396_v63 }
0x3977   :  { %3397 = vrcp.f32 %v2042_v54  ;;  %v2054_v4 = vand.u32 2147483648, %v2042_v54  ;;  %v2052_v6 = vand.u32 2147483647, %v2042_v54  ;;  %vm2048_vm11 = vweird.f32 %v2042_v54 }
0x3979   :  { %v2055_v41 = vor.u32 1.1754944e-38, %v2054_v4  ;;  %vm2053_vm13 = vcmp.eq.f32.partialorder %v2052_v6, 8.507059e+37 }
0x397d   :  { %v3398_v34 = vpop.eup %3397 }
0x397e   :  { %v2044_v58 = vmul.f32 %v3398_v34, %v2042_v54  ;;  %vm2049_vm10 = vweird.f32 %v3398_v34 }
0x397f   :  { %vm2050_vm12 = vmor %vm2048_vm11, %vm2049_vm10 }
0x3980   :  { %v2045_v2 = vsub.f32 1.0, %v2044_v58 }
0x3982   :  { %v2046_v35 = vmul.f32 %v3398_v34, %v2045_v2 }
0x3984   :  { %v2047_v57 = vadd.f32 %v3398_v34, %v2046_v35 }
0x3986   :  { %v2051_v7 = vsel %vm2050_vm12, %v3398_v34, %v2047_v57 }
0x3987   :  { %v2056_v12 = vsel %vm2053_vm13, %v2055_v41, %v2051_v7 }
0x3988   :  { %v2058_v13 = vmul.f32 2.0, %v2056_v12  ;;  %v2060_v44 = vmul.f32 %v2056_v12, %v2005_v31  ;;  %v675_v31 = vadd.f32 %v4012_v14, %v3715_v8 }
0x398a   :  { %v3171_v15 = vadd.f32 -1.0, %v2058_v13 }
0x398c   :  { %2062 = vrot.lane.b32.xlu0 %v3171_v15, %s3472_s3 }
0x39fe   :  { %v2063_v17 = vpop.permute.xlu0 %2062 }
0x39ff   :  { %v2065_v18 = vmul.f32 %v2063_v17, %v2056_v12 }
0x3a01   :  { %2067 = vrot.lane.b32.xlu1 %v2065_v18, %s3472_s3 }
0x3a73   :  { %v2068_v19 = vpop.permute.xlu1 %2067 }
0x3a74   :  { %v2070_v56 = vadd.f32 %v2068_v19, %v2060_v44 }
0x3a76   :  { %3399 = vtanh.f32 %v2070_v56 }
0x3a7c   :  { %v3400_v22 = vpop.eup %3399 }
0x3a7d   :  { %2073 = vrot.lane.b32.xlu2 %v3400_v22, %s3472_s3 }
0x3ad7   :  { %v2074_v23 = vpop.permute.xlu2 %2073 }
0x3ad8   :  { %v4084_v27 = vmul.f32 %v2074_v23, %v2056_v12 }
0x3ada   :  { %v2083_v43 = vpack.c.bf16 %v4084_v27, %v4084_v27 }
0x3adc   :  { %2085 = vrot.lane.b32.xlu0 %v2083_v43, %s3473_s19 }
0x3b4e   :  { %v2086_v29 = vpop.permute.xlu0 %2085 }
0x3b4f   :  { %3172 = vmatmul.msk.bf16.vlgmr.msrb.gmra.mxu3 %vm143_vm5, %v2086_v29 }
0x3b50   :  { %2616 = vmatpush.bf16.msrb.mxu3 %v4000_v28 }
0x3b54   :  { %2617 = vmatpush.bf16.msrb.mxu3 %v4006_v55 }
0x3bd2   :  { %v2099_v32 = vpop.f32.mrf.mxu3 }
0x3bd3   :  { %v2103_v39 = vadd.f32 %v2099_v32, %v675_v31 }
0x3bd5   :  { %v3173_v42 = vmul.f32 -1.442695, %v2103_v39 }
0x3bd7   :  { %3401 = vpow2.f32 %v3173_v42 }
0x3bda   :  { %v2101_v0 = vpop.f32.mrf.mxu3 }
0x3bdd   :  { %v3402_v49 = vpop.eup %3401 }
0x3bde   :  { %v2107_v50 = vadd.f32 1.0, %v3402_v49 }
0x3be0   :  { %3403 = vrcp.f32 %v2107_v50  ;;  %v2119_v63 = vand.u32 2147483648, %v2107_v50  ;;  %v2117_v34 = vand.u32 2147483647, %v2107_v50  ;;  %vm2113_vm15 = vweird.f32 %v2107_v50 }
0x3be2   :  { %v2120_v2 = vor.u32 1.1754944e-38, %v2119_v63  ;;  %vm2118_vm2 = vcmp.eq.f32.partialorder %v2117_v34, 8.507059e+37 }
0x3be6   :  { %v3404_v37 = vpop.eup %3403 }
0x3be7   :  { %v2109_v40 = vmul.f32 %v3404_v37, %v2107_v50  ;;  %vm2114_vm14 = vweird.f32 %v3404_v37 }
0x3be8   :  { %vm2115_vm1 = vmor %vm2113_vm15, %vm2114_vm14 }
0x3be9   :  { %v2110_v61 = vsub.f32 1.0, %v2109_v40 }
0x3beb   :  { %v2111_v54 = vmul.f32 %v3404_v37, %v2110_v61 }
0x3bed   :  { %v2112_v58 = vadd.f32 %v3404_v37, %v2111_v54 }
0x3bef   :  { %v2116_v8 = vsel %vm2115_vm1, %v3404_v37, %v2112_v58 }
0x3bf0   :  { %v2121_v4 = vsel %vm2118_vm2, %v2120_v2, %v2116_v8 }
0x3bf1   :  { %v2123_v35 = vmul.f32 2.0, %v2121_v4  ;;  %v2125_v7 = vmul.f32 %v2121_v4, %v2070_v56  ;;  %v678_v56 = vadd.f32 %v4012_v14, %v3717_v9 }
0x3bf3   :  { %v3174_v6 = vadd.f32 -1.0, %v2123_v35 }
0x3bf5   :  { %2127 = vrot.lane.b32.xlu1 %v3174_v6, %s3472_s3 }
0x3c67   :  { %v2128_v57 = vpop.permute.xlu1 %2127 }
0x3c68   :  { %v2130_v41 = vmul.f32 %v2128_v57, %v2121_v4 }
0x3c6a   :  { %2132 = vrot.lane.b32.xlu2 %v2130_v41, %s3472_s3 }
0x3cc4   :  { %v2133_v12 = vpop.permute.xlu2 %2132 }
0x3cc5   :  { %v2135_v13 = vadd.f32 %v2133_v12, %v2125_v7 }
0x3cc7   :  { %3405 = vtanh.f32 %v2135_v13 }
0x3ccd   :  { %v3406_v15 = vpop.eup %3405 }
0x3cce   :  { %2138 = vrot.lane.b32.xlu0 %v3406_v15, %s3472_s3 }
0x3d40   :  { %v2139_v17 = vpop.permute.xlu0 %2138 }
0x3d41   :  { %v4097_v18 = vmul.f32 %v2139_v17, %v2121_v4 }
0x3d43   :  { %v2148_v44 = vpack.c.bf16 %v4097_v18, %v4097_v18 }
0x3d45   :  { %2150 = vrot.lane.b32.xlu1 %v2148_v44, %s3473_s19 }
0x3db7   :  { %v2151_v19 = vpop.permute.xlu1 %2150 }
0x3db8   :  { %3175 = vmatmul.msk.bf16.vlgmr.msrb.gmra.mxu0 %vm143_vm5, %v2151_v19 }
0x3db9   :  { %2681 = vmatpush.bf16.msrb.mxu0 %v4000_v28 }
0x3dbd   :  { %2682 = vmatpush.bf16.msrb.mxu0 %v4006_v55 }
0x3e35   :  { %v2164_v22 = vpop.f32.mrf.mxu0 }
0x3e36   :  { %v2168_v23 = vadd.f32 %v2164_v22, %v678_v56 }
0x3e38   :  { %v3176_v43 = vmul.f32 -1.442695, %v2168_v23 }
0x3e3a   :  { %3407 = vpow2.f32 %v3176_v43 }
0x3e3d   :  { %v2166_v29 = vpop.f32.mrf.mxu0 }
0x3e40   :  { %v3408_v31 = vpop.eup %3407 }
0x3e41   :  { %v2172_v32 = vadd.f32 1.0, %v3408_v31 }
0x3e43   :  { %3409 = vrcp.f32 %v2172_v32  ;;  %v2184_v49 = vand.u32 2147483648, %v2172_v32  ;;  %v2182_v37 = vand.u32 2147483647, %v2172_v32  ;;  %vm2178_vm4 = vweird.f32 %v2172_v32 }
0x3e45   :  { %v2185_v61 = vor.u32 1.1754944e-38, %v2184_v49  ;;  %vm2183_vm7 = vcmp.eq.f32.partialorder %v2182_v37, 8.507059e+37 }
0x3e49   :  { %v3410_v39 = vpop.eup %3409 }
0x3e4a   :  { %v2174_v42 = vmul.f32 %v3410_v39, %v2172_v32  ;;  %vm2179_vm3 = vweird.f32 %v3410_v39 }
0x3e4b   :  { %vm2180_vm6 = vmor %vm2178_vm4, %vm2179_vm3 }
0x3e4c   :  { %v2175_v0 = vsub.f32 1.0, %v2174_v42 }
0x3e4e   :  { %v2176_v50 = vmul.f32 %v3410_v39, %v2175_v0 }
0x3e50   :  { %v2177_v40 = vadd.f32 %v3410_v39, %v2176_v50 }
0x3e52   :  { %v2181_v9 = vsel %vm2180_vm6, %v3410_v39, %v2177_v40 }
0x3e53   :  { %v2186_v63 = vsel %vm2183_vm7, %v2185_v61, %v2181_v9 }
0x3e54   :  { %v2188_v54 = vmul.f32 2.0, %v2186_v63  ;;  %v2190_v8 = vmul.f32 %v2186_v63, %v2135_v13  ;;  %v681_v13 = vadd.f32 %v4012_v14, %v3719_v10 }
0x3e56   :  { %v3177_v34 = vadd.f32 -1.0, %v2188_v54 }
0x3e58   :  { %2192 = vrot.lane.b32.xlu2 %v3177_v34, %s3472_s3 }
0x3eb2   :  { %v2193_v58 = vpop.permute.xlu2 %2192 }
0x3eb3   :  { %v2195_v2 = vmul.f32 %v2193_v58, %v2186_v63 }
0x3eb5   :  { %2197 = vrot.lane.b32.xlu0 %v2195_v2, %s3472_s3 }
0x3f27   :  { %v2198_v4 = vpop.permute.xlu0 %2197 }
0x3f28   :  { %v2200_v35 = vadd.f32 %v2198_v4, %v2190_v8  ;;  %v781_v8 = vadd.f32 %v4012_v14, %v3786_v24 }
0x3f2a   :  { %3411 = vtanh.f32 %v2200_v35 }
0x3f30   :  { %v3412_v6 = vpop.eup %3411 }
0x3f31   :  { %2203 = vrot.lane.b32.xlu1 %v3412_v6, %s3472_s3 }
0x3fa3   :  { %v2204_v57 = vpop.permute.xlu1 %2203 }
0x3fa4   :  { %v4110_v41 = vmul.f32 %v2204_v57, %v2186_v63 }
0x3fa6   :  { %v2213_v7 = vpack.c.bf16 %v4110_v41, %v4110_v41 }
0x3fa8   :  { %2215 = vrot.lane.b32.xlu2 %v2213_v7, %s3473_s19 }
0x4002   :  { %v2216_v12 = vpop.permute.xlu2 %2215 }
0x4003   :  { %3178 = vmatmul.msk.bf16.vlgmr.msra.gmra.mxu2 %vm143_vm5, %v2216_v12 }
0x4004   :  { %2746 = vmatpush.bf16.msra.mxu2 %v4000_v28 }
0x4008   :  { %2747 = vmatpush.bf16.msra.mxu2 %v4006_v55 }
0x4086   :  { %v2229_v15 = vpop.f32.mrf.mxu2 }
0x4087   :  { %v2233_v17 = vadd.f32 %v2229_v15, %v681_v13 }
0x4089   :  { %v3179_v44 = vmul.f32 -1.442695, %v2233_v17 }
0x408b   :  { %3413 = vpow2.f32 %v3179_v44 }
0x408e   :  { %v2231_v19 = vpop.f32.mrf.mxu2 }
0x4091   :  { %v3414_v56 = vpop.eup %3413 }
0x4092   :  { %v2237_v22 = vadd.f32 1.0, %v3414_v56 }
0x4094   :  { %3415 = vrcp.f32 %v2237_v22  ;;  %v2249_v31 = vand.u32 2147483648, %v2237_v22  ;;  %v2247_v28 = vand.u32 2147483647, %v2237_v22  ;;  %vm2243_vm8 = vweird.f32 %v2237_v22 }
0x4096   :  { %v2250_v55 = vor.u32 1.1754944e-38, %v2249_v31  ;;  %vm2248_vm10 = vcmp.eq.f32.partialorder %v2247_v28, 8.507059e+37 }
0x409a   :  { %v3416_v23 = vpop.eup %3415 }
0x409b   :  { %v2239_v43 = vmul.f32 %v3416_v23, %v2237_v22  ;;  %vm2244_vm0 = vweird.f32 %v3416_v23 }
0x409c   :  { %vm2245_vm9 = vmor %vm2243_vm8, %vm2244_vm0 }
0x409d   :  { %v2240_v29 = vsub.f32 1.0, %v2239_v43 }
0x409f   :  { %v2241_v32 = vmul.f32 %v3416_v23, %v2240_v29 }
0x40a1   :  { %v2242_v39 = vadd.f32 %v3416_v23, %v2241_v32 }
0x40a3   :  { %v2246_v10 = vsel %vm2245_vm9, %v3416_v23, %v2242_v39 }
0x40a4   :  { %v2251_v42 = vsel %vm2248_vm10, %v2250_v55, %v2246_v10 }
0x40a5   :  { %v2253_v0 = vmul.f32 2.0, %v2251_v42  ;;  %v2255_v40 = vmul.f32 %v2251_v42, %v2200_v35 }
0x40a7   :  { %v3180_v49 = vadd.f32 -1.0, %v2253_v0 }
0x40a9   :  { %2257 = vrot.lane.b32.xlu0 %v3180_v49, %s3472_s3 }
0x411b   :  { %v2258_v50 = vpop.permute.xlu0 %2257 }
0x411c   :  { %v2260_v37 = vmul.f32 %v2258_v50, %v2251_v42 }
0x411e   :  { %2262 = vrot.lane.b32.xlu1 %v2260_v37, %s3472_s3 }
0x4190   :  { %v2263_v61 = vpop.permute.xlu1 %2262 }
0x4191   :  { %v2265_v9 = vadd.f32 %v2263_v61, %v2255_v40  ;;  %v784_v40 = vadd.f32 %v4012_v14, %v3788_v25 }
0x4193   :  { %3417 = vtanh.f32 %v2265_v9 }
0x4199   :  { %v3418_v63 = vpop.eup %3417 }
0x419a   :  { %2268 = vrot.lane.b32.xlu2 %v3418_v63, %s3472_s3 }
0x41f4   :  { %v2269_v54 = vpop.permute.xlu2 %2268 }
0x41f5   :  { %v4123_v34 = vmul.f32 %v2269_v54, %v2251_v42 }
0x41f7   :  { %v2278_v58 = vpack.c.bf16 %v4123_v34, %v4123_v34 }
0x41f9   :  { %2280 = vrot.lane.b32.xlu0 %v2278_v58, %s3473_s19 }
0x426b   :  { %v2281_v2 = vpop.permute.xlu0 %2280 }
0x426c   :  { %3181 = vmatmul.msk.bf16.vlgmr.msra.gmra.mxu1 %vm143_vm5, %v2281_v2 }
0x42e9   :  { %v2294_v4 = vpop.f32.mrf.mxu1 }
0x42ea   :  { %v2298_v35 = vadd.f32 %v2294_v4, %v781_v8 }
0x42ec   :  { %v3182_v6 = vmul.f32 -1.442695, %v2298_v35 }
0x42ee   :  { %3419 = vpow2.f32 %v3182_v6 }
0x42f1   :  { %v2296_v57 = vpop.f32.mrf.mxu1 }
0x42f4   :  { %v3420_v7 = vpop.eup %3419 }
0x42f5   :  { %v2302_v12 = vadd.f32 1.0, %v3420_v7 }
0x42f7   :  { %3421 = vrcp.f32 %v2302_v12  ;;  %v2314_v44 = vand.u32 2147483648, %v2302_v12  ;;  %v2312_v56 = vand.u32 2147483647, %v2302_v12  ;;  %vm2308_vm12 = vweird.f32 %v2302_v12 }
0x42f9   :  { %v2315_v23 = vor.u32 1.1754944e-38, %v2314_v44  ;;  %vm2313_vm14 = vcmp.eq.f32.partialorder %v2312_v56, 8.507059e+37 }
0x42fd   :  { %v3422_v13 = vpop.eup %3421 }
0x42fe   :  { %v2304_v15 = vmul.f32 %v3422_v13, %v2302_v12  ;;  %vm2309_vm11 = vweird.f32 %v3422_v13 }
0x42ff   :  { %vm2310_vm13 = vmor %vm2308_vm12, %vm2309_vm11 }
0x4300   :  { %v2305_v17 = vsub.f32 1.0, %v2304_v15 }
0x4302   :  { %v2306_v19 = vmul.f32 %v3422_v13, %v2305_v17 }
0x4304   :  { %v2307_v22 = vadd.f32 %v3422_v13, %v2306_v19 }
0x4306   :  { %v2311_v24 = vsel %vm2310_vm13, %v3422_v13, %v2307_v22 }
0x4307   :  { %v2316_v43 = vsel %vm2313_vm14, %v2315_v23, %v2311_v24 }
0x4308   :  { %v2318_v29 = vmul.f32 2.0, %v2316_v43  ;;  %v2320_v39 = vmul.f32 %v2316_v43, %v2265_v9 }
0x430a   :  { %v3183_v31 = vadd.f32 -1.0, %v2318_v29 }
0x430c   :  { %2322 = vrot.lane.b32.xlu1 %v3183_v31, %s3472_s3 }
0x437e   :  { %v2323_v32 = vpop.permute.xlu1 %2322 }
0x437f   :  { %v2325_v28 = vmul.f32 %v2323_v32, %v2316_v43 }
0x4381   :  { %2327 = vrot.lane.b32.xlu2 %v2325_v28, %s3472_s3 }
0x43db   :  { %v2328_v55 = vpop.permute.xlu2 %2327 }
0x43dc   :  { %v2330_v10 = vadd.f32 %v2328_v55, %v2320_v39  ;;  %v787_v39 = vadd.f32 %v4012_v14, %v3790_v5 }
0x43de   :  { %3423 = vtanh.f32 %v2330_v10 }
0x43e4   :  { %v3424_v42 = vpop.eup %3423 }
0x43e5   :  { %2333 = vrot.lane.b32.xlu0 %v3424_v42, %s3472_s3 }
0x4457   :  { %v2334_v0 = vpop.permute.xlu0 %2333 }
0x4458   :  { %v4134_v49 = vmul.f32 %v2334_v0, %v2316_v43 }
0x445a   :  { %v2343_v50 = vpack.c.bf16 %v4134_v49, %v4134_v49 }
0x445c   :  { %2345 = vrot.lane.b32.xlu1 %v2343_v50, %s3473_s19 }
0x44ce   :  { %v2346_v37 = vpop.permute.xlu1 %2345 }
0x44cf   :  { %3184 = vmatmul.msk.bf16.vlgmr.msra.gmra.mxu3 %vm143_vm5, %v2346_v37 }
0x4552   :  { %v2359_v61 = vpop.f32.mrf.mxu3 }
0x4553   :  { %v2363_v9 = vadd.f32 %v2359_v61, %v784_v40 }
0x4555   :  { %v3185_v63 = vmul.f32 -1.442695, %v2363_v9 }
0x4557   :  { %3425 = vpow2.f32 %v3185_v63 }
0x455a   :  { %v2361_v54 = vpop.f32.mrf.mxu3 }
0x455d   :  { %v3426_v58 = vpop.eup %3425 }
0x455e   :  { %v2367_v2 = vadd.f32 1.0, %v3426_v58 }
0x4560   :  { %3427 = vrcp.f32 %v2367_v2  ;;  %v2379_v6 = vand.u32 2147483648, %v2367_v2  ;;  %v2377_v7 = vand.u32 2147483647, %v2367_v2  ;;  %vm2373_vm1 = vweird.f32 %v2367_v2 }
0x4562   :  { %v2380_v13 = vor.u32 1.1754944e-38, %v2379_v6  ;;  %vm2378_vm3 = vcmp.eq.f32.partialorder %v2377_v7, 8.507059e+37 }
0x4566   :  { %v3428_v8 = vpop.eup %3427 }
0x4567   :  { %v2369_v4 = vmul.f32 %v3428_v8, %v2367_v2  ;;  %vm2374_vm15 = vweird.f32 %v3428_v8 }
0x4568   :  { %vm2375_vm2 = vmor %vm2373_vm1, %vm2374_vm15 }
0x4569   :  { %v2370_v35 = vsub.f32 1.0, %v2369_v4 }
0x456b   :  { %v2371_v57 = vmul.f32 %v3428_v8, %v2370_v35 }
0x456d   :  { %v2372_v12 = vadd.f32 %v3428_v8, %v2371_v57 }
0x456f   :  { %v2376_v25 = vsel %vm2375_vm2, %v3428_v8, %v2372_v12 }
0x4570   :  { %v2381_v15 = vsel %vm2378_vm3, %v2380_v13, %v2376_v25 }
0x4571   :  { %v2383_v17 = vmul.f32 2.0, %v2381_v15  ;;  %v2385_v22 = vmul.f32 %v2381_v15, %v2330_v10 }
0x4573   :  { %v3186_v44 = vadd.f32 -1.0, %v2383_v17 }
0x4575   :  { %2387 = vrot.lane.b32.xlu2 %v3186_v44, %s3472_s3 }
0x45cf   :  { %v2388_v19 = vpop.permute.xlu2 %2387 }
0x45d0   :  { %v2390_v56 = vmul.f32 %v2388_v19, %v2381_v15 }
0x45d2   :  { %2392 = vrot.lane.b32.xlu0 %v2390_v56, %s3472_s3 }
0x4644   :  { %v2393_v23 = vpop.permute.xlu0 %2392 }
0x4645   :  { %v2395_v24 = vadd.f32 %v2393_v23, %v2385_v22  ;;  %v790_v22 = vadd.f32 %v4012_v14, %v3792_v3 }
0x4647   :  { %3429 = vtanh.f32 %v2395_v24 }
0x464d   :  { %v3430_v43 = vpop.eup %3429 }
0x464e   :  { %2398 = vrot.lane.b32.xlu1 %v3430_v43, %s3472_s3 }
0x46c0   :  { %v2399_v29 = vpop.permute.xlu1 %2398 }
0x46c1   :  { %v4145_v31 = vmul.f32 %v2399_v29, %v2381_v15 }
0x46c3   :  { %v2408_v32 = vpack.c.bf16 %v4145_v31, %v4145_v31 }
0x46c5   :  { %2410 = vrot.lane.b32.xlu2 %v2408_v32, %s3473_s19 }
0x471f   :  { %v2411_v28 = vpop.permute.xlu2 %2410 }
0x4720   :  { %3187 = vmatmul.msk.bf16.vlgmr.msra.gmra.mxu0 %vm143_vm5, %v2411_v28 }
0x479d   :  { %v2424_v55 = vpop.f32.mrf.mxu0 }
0x479e   :  { %v2428_v10 = vadd.f32 %v2424_v55, %v787_v39 }
0x47a0   :  { %v3188_v42 = vmul.f32 -1.442695, %v2428_v10 }
0x47a2   :  { %3431 = vpow2.f32 %v3188_v42 }
0x47a5   :  { %v2426_v0 = vpop.f32.mrf.mxu0 }
0x47a8   :  { %v3432_v50 = vpop.eup %3431 }
0x47a9   :  { %v2432_v37 = vadd.f32 1.0, %v3432_v50 }
0x47ab   :  { %3433 = vrcp.f32 %v2432_v37  ;;  %v2444_v63 = vand.u32 2147483648, %v2432_v37  ;;  %v2442_v58 = vand.u32 2147483647, %v2432_v37  ;;  %vm2438_vm6 = vweird.f32 %v2432_v37 }
0x47ad   :  { %v2445_v8 = vor.u32 1.1754944e-38, %v2444_v63  ;;  %vm2443_vm0 = vcmp.eq.f32.partialorder %v2442_v58, 8.507059e+37 }
0x47b1   :  { %v3434_v40 = vpop.eup %3433 }
0x47b2   :  { %v2434_v61 = vmul.f32 %v3434_v40, %v2432_v37  ;;  %vm2439_vm4 = vweird.f32 %v3434_v40 }
0x47b3   :  { %vm2440_vm7 = vmor %vm2438_vm6, %vm2439_vm4 }
0x47b4   :  { %v2435_v9 = vsub.f32 1.0, %v2434_v61 }
0x47b6   :  { %v2436_v54 = vmul.f32 %v3434_v40, %v2435_v9 }
0x47b8   :  { %v2437_v2 = vadd.f32 %v3434_v40, %v2436_v54 }
0x47ba   :  { %v2441_v5 = vsel %vm2440_vm7, %v3434_v40, %v2437_v2 }
0x47bb   :  { %v2446_v4 = vsel %vm2443_vm0, %v2445_v8, %v2441_v5 }
0x47bc   :  { %v2448_v35 = vmul.f32 2.0, %v2446_v4  ;;  %v2450_v12 = vmul.f32 %v2446_v4, %v2395_v24 }
0x47be   :  { %v3189_v6 = vadd.f32 -1.0, %v2448_v35 }
0x47c0   :  { %2452 = vrot.lane.b32.xlu0 %v3189_v6, %s3472_s3 }
0x4832   :  { %v2453_v57 = vpop.permute.xlu0 %2452 }
0x4833   :  { %v2455_v7 = vmul.f32 %v2453_v57, %v2446_v4 }
0x4835   :  { %2457 = vrot.lane.b32.xlu1 %v2455_v7, %s3472_s3  ;;  %v4176_v7 = vld [vmem:[%s4439_s7] ss:$0 sm:$0xff] }
0x48a7   :  { %v2458_v13 = vpop.permute.xlu1 %2457 }
0x48a8   :  { %v2460_v25 = vadd.f32 %v2458_v13, %v2450_v12  ;;  %v890_v12 = vadd.f32 %v4176_v7, %v3901_v52 }
0x48aa   :  { %3435 = vtanh.f32 %v2460_v25 }
0x48b0   :  { %v3436_v15 = vpop.eup %3435 }
0x48b1   :  { %2463 = vrot.lane.b32.xlu2 %v3436_v15, %s3472_s3 }
0x490b   :  { %v2464_v17 = vpop.permute.xlu2 %2463 }
0x490c   :  { %v4156_v44 = vmul.f32 %v2464_v17, %v2446_v4 }
0x490e   :  { %v2473_v19 = vpack.c.bf16 %v4156_v44, %v4156_v44 }
0x4910   :  { %2475 = vrot.lane.b32.xlu0 %v2473_v19, %s3473_s19 }
0x4982   :  { %v2476_v56 = vpop.permute.xlu0 %2475 }
0x4983   :  { %3190 = vmatmul.msk.bf16.vlgmr.msrb.gmra.mxu2 %vm143_vm5, %v2476_v56 }
0x4a06   :  { %v2489_v23 = vpop.f32.mrf.mxu2 }
0x4a07   :  { %v2493_v24 = vadd.f32 %v2489_v23, %v790_v22 }
0x4a09   :  { %v3191_v43 = vmul.f32 -1.442695, %v2493_v24 }
0x4a0b   :  { %3437 = vpow2.f32 %v3191_v43 }
0x4a0e   :  { %v2491_v29 = vpop.f32.mrf.mxu2 }
0x4a11   :  { %v3438_v32 = vpop.eup %3437 }
0x4a12   :  { %v2497_v28 = vadd.f32 1.0, %v3438_v32 }
0x4a14   :  { %3439 = vrcp.f32 %v2497_v28  ;;  %v2509_v42 = vand.u32 2147483648, %v2497_v28  ;;  %v2507_v50 = vand.u32 2147483647, %v2497_v28  ;;  %vm2503_vm9 = vweird.f32 %v2497_v28 }
0x4a16   :  { %v2510_v40 = vor.u32 1.1754944e-38, %v2509_v42  ;;  %vm2508_vm11 = vcmp.eq.f32.partialorder %v2507_v50, 8.507059e+37 }
0x4a1a   :  { %v3440_v39 = vpop.eup %3439 }
0x4a1b   :  { %v2499_v55 = vmul.f32 %v3440_v39, %v2497_v28  ;;  %vm2504_vm8 = vweird.f32 %v3440_v39 }
0x4a1c   :  { %vm2505_vm10 = vmor %vm2503_vm9, %vm2504_vm8 }
0x4a1d   :  { %v2500_v10 = vsub.f32 1.0, %v2499_v55 }
0x4a1f   :  { %v2501_v0 = vmul.f32 %v3440_v39, %v2500_v10 }
0x4a21   :  { %v2502_v37 = vadd.f32 %v3440_v39, %v2501_v0 }
0x4a23   :  { %v2506_v3 = vsel %vm2505_vm10, %v3440_v39, %v2502_v37 }
0x4a24   :  { %v2511_v14 = vsel %vm2508_vm11, %v2510_v40, %v2506_v3 }
0x4a25   :  { %v2513_v61 = vmul.f32 2.0, %v2511_v14  ;;  %v2515_v58 = vmul.f32 %v2511_v14, %v2460_v25 }
0x4a27   :  { %v3192_v9 = vadd.f32 -1.0, %v2513_v61 }
0x4a29   :  { %2517 = vrot.lane.b32.xlu1 %v3192_v9, %s3472_s3 }
0x4a9b   :  { %v2518_v63 = vpop.permute.xlu1 %2517 }
0x4a9c   :  { %v2520_v54 = vmul.f32 %v2518_v63, %v2511_v14 }
0x4a9e   :  { %2522 = vrot.lane.b32.xlu2 %v2520_v54, %s3472_s3 }
0x4af8   :  { %v2523_v2 = vpop.permute.xlu2 %2522 }
0x4af9   :  { %v2525_v8 = vadd.f32 %v2523_v2, %v2515_v58  ;;  %v893_v58 = vadd.f32 %v4176_v7, %v3903_v45 }
0x4afb   :  { %3441 = vtanh.f32 %v2525_v8 }
0x4b01   :  { %v3442_v5 = vpop.eup %3441 }
0x4b02   :  { %2528 = vrot.lane.b32.xlu0 %v3442_v5, %s3472_s3 }
0x4b74   :  { %v2529_v4 = vpop.permute.xlu0 %2528 }
0x4b75   :  { %v4167_v35 = vmul.f32 %v2529_v4, %v2511_v14 }
0x4b77   :  { %v2538_v6 = vpack.c.bf16 %v4167_v35, %v4167_v35 }
0x4b79   :  { %2540 = vrot.lane.b32.xlu1 %v2538_v6, %s3473_s19 }
0x4beb   :  { %v2541_v57 = vpop.permute.xlu1 %2540 }
0x4bec   :  { %3193 = vmatmul.msk.bf16.vlgmr.msrb.gmra.mxu1 %vm143_vm5, %v2541_v57 }
0x4c69   :  { %v2554_v13 = vpop.f32.mrf.mxu1 }
0x4c6a   :  { %v2558_v25 = vadd.f32 %v2554_v13, %v890_v12 }
0x4c6c   :  { %v3194_v15 = vmul.f32 -1.442695, %v2558_v25 }
0x4c6e   :  { %3443 = vpow2.f32 %v3194_v15 }
0x4c71   :  { %v2556_v17 = vpop.f32.mrf.mxu1 }
0x4c74   :  { %v3444_v19 = vpop.eup %3443 }
0x4c75   :  { %v2562_v56 = vadd.f32 1.0, %v3444_v19 }
0x4c77   :  { %3445 = vrcp.f32 %v2562_v56  ;;  %v2574_v43 = vand.u32 2147483648, %v2562_v56  ;;  %v2572_v32 = vand.u32 2147483647, %v2562_v56  ;;  %vm2568_vm13 = vweird.f32 %v2562_v56 }
0x4c79   :  { %v2575_v39 = vor.u32 1.1754944e-38, %v2574_v43  ;;  %vm2573_vm15 = vcmp.eq.f32.partialorder %v2572_v32, 8.507059e+37 }
0x4c7d   :  { %v3446_v22 = vpop.eup %3445 }
0x4c7e   :  { %v2564_v23 = vmul.f32 %v3446_v22, %v2562_v56  ;;  %vm2569_vm12 = vweird.f32 %v3446_v22 }
0x4c7f   :  { %vm2570_vm14 = vmor %vm2568_vm13, %vm2569_vm12 }
0x4c80   :  { %v2565_v24 = vsub.f32 1.0, %v2564_v23 }
0x4c82   :  { %v2566_v29 = vmul.f32 %v3446_v22, %v2565_v24 }
0x4c84   :  { %v2567_v28 = vadd.f32 %v3446_v22, %v2566_v29 }
0x4c86   :  { %v2571_v52 = vsel %vm2570_vm14, %v3446_v22, %v2567_v28 }
0x4c87   :  { %v2576_v55 = vsel %vm2573_vm15, %v2575_v39, %v2571_v52 }
0x4c88   :  { %v2578_v10 = vmul.f32 2.0, %v2576_v55  ;;  %v2580_v37 = vmul.f32 %v2576_v55, %v2525_v8 }
0x4c8a   :  { %v3195_v42 = vadd.f32 -1.0, %v2578_v10 }
0x4c8c   :  { %2582 = vrot.lane.b32.xlu2 %v3195_v42, %s3472_s3 }
0x4ce6   :  { %v2583_v0 = vpop.permute.xlu2 %2582 }
0x4ce7   :  { %v2585_v50 = vmul.f32 %v2583_v0, %v2576_v55 }
0x4ce9   :  { %2587 = vrot.lane.b32.xlu0 %v2585_v50, %s3472_s3 }
0x4d5b   :  { %v2588_v40 = vpop.permute.xlu0 %2587 }
0x4d5c   :  { %v2590_v3 = vadd.f32 %v2588_v40, %v2580_v37  ;;  %v896_v37 = vadd.f32 %v4176_v7, %v3905_v46 }
0x4d5e   :  { %3447 = vtanh.f32 %v2590_v3 }
0x4d64   :  { %v3448_v14 = vpop.eup %3447 }
0x4d65   :  { %2593 = vrot.lane.b32.xlu1 %v3448_v14, %s3472_s3 }
0x4dd7   :  { %v2594_v61 = vpop.permute.xlu1 %2593 }
0x4dd8   :  { %v4183_v9 = vmul.f32 %v2594_v61, %v2576_v55 }
0x4dda   :  { %v2603_v63 = vpack.c.bf16 %v4183_v9, %v4183_v9 }
0x4ddc   :  { %2605 = vrot.lane.b32.xlu2 %v2603_v63, %s3473_s19 }
0x4e36   :  { %v2606_v54 = vpop.permute.xlu2 %2605 }
0x4e37   :  { %3196 = vmatmul.msk.bf16.vlgmr.msrb.gmra.mxu3 %vm143_vm5, %v2606_v54 }
0x4eba   :  { %v2619_v2 = vpop.f32.mrf.mxu3 }
0x4ebb   :  { %v2623_v8 = vadd.f32 %v2619_v2, %v893_v58 }
0x4ebd   :  { %v3197_v5 = vmul.f32 -1.442695, %v2623_v8 }
0x4ebf   :  { %3449 = vpow2.f32 %v3197_v5 }
0x4ec2   :  { %v2621_v4 = vpop.f32.mrf.mxu3 }
0x4ec5   :  { %v3450_v6 = vpop.eup %3449 }
0x4ec6   :  { %v2627_v57 = vadd.f32 1.0, %v3450_v6 }
0x4ec8   :  { %3451 = vrcp.f32 %v2627_v57  ;;  %v2639_v15 = vand.u32 2147483648, %v2627_v57  ;;  %v2637_v19 = vand.u32 2147483647, %v2627_v57  ;;  %vm2633_vm2 = vweird.f32 %v2627_v57 }
0x4eca   :  { %v2640_v22 = vor.u32 1.1754944e-38, %v2639_v15  ;;  %vm2638_vm4 = vcmp.eq.f32.partialorder %v2637_v19, 8.507059e+37 }
0x4ece   :  { %v3452_v12 = vpop.eup %3451 }
0x4ecf   :  { %v2629_v13 = vmul.f32 %v3452_v12, %v2627_v57  ;;  %vm2634_vm1 = vweird.f32 %v3452_v12 }
0x4ed0   :  { %vm2635_vm3 = vmor %vm2633_vm2, %vm2634_vm1 }
0x4ed1   :  { %v2630_v25 = vsub.f32 1.0, %v2629_v13 }
0x4ed3   :  { %v2631_v17 = vmul.f32 %v3452_v12, %v2630_v25 }
0x4ed5   :  { %v2632_v56 = vadd.f32 %v3452_v12, %v2631_v17 }
0x4ed7   :  { %v2636_v45 = vsel %vm2635_vm3, %v3452_v12, %v2632_v56 }
0x4ed8   :  { %v2641_v23 = vsel %vm2638_vm4, %v2640_v22, %v2636_v45 }
0x4ed9   :  { %v2643_v24 = vmul.f32 2.0, %v2641_v23  ;;  %v2645_v28 = vmul.f32 %v2641_v23, %v2590_v3 }
0x4edb   :  { %v3198_v43 = vadd.f32 -1.0, %v2643_v24 }
0x4edd   :  { %2647 = vrot.lane.b32.xlu0 %v3198_v43, %s3472_s3 }
0x4f4f   :  { %v2648_v29 = vpop.permute.xlu0 %2647 }
0x4f50   :  { %v2650_v32 = vmul.f32 %v2648_v29, %v2641_v23 }
0x4f52   :  { %2652 = vrot.lane.b32.xlu1 %v2650_v32, %s3472_s3 }
0x4fc4   :  { %v2653_v39 = vpop.permute.xlu1 %2652 }
0x4fc5   :  { %v2655_v52 = vadd.f32 %v2653_v39, %v2645_v28 }
0x4fc7   :  { %3453 = vtanh.f32 %v2655_v52 }
0x4fcd   :  { %v3454_v55 = vpop.eup %3453 }
0x4fce   :  { %2658 = vrot.lane.b32.xlu2 %v3454_v55, %s3472_s3 }
0x5028   :  { %v2659_v10 = vpop.permute.xlu2 %2658 }
0x5029   :  { %v4194_v42 = vmul.f32 %v2659_v10, %v2641_v23 }
0x502b   :  { %v2668_v0 = vpack.c.bf16 %v4194_v42, %v4194_v42 }
0x502d   :  { %2670 = vrot.lane.b32.xlu0 %v2668_v0, %s3473_s19 }
0x509f   :  { %v2671_v50 = vpop.permute.xlu0 %2670 }
0x50a0   :  { %3199 = vmatmul.msk.bf16.vlgmr.msrb.gmra.mxu0 %vm143_vm5, %v2671_v50 }
0x511d   :  { %v2684_v40 = vpop.f32.mrf.mxu0 }
0x511e   :  { %v2688_v3 = vadd.f32 %v2684_v40, %v896_v37  ;;  %v899_v37 = vadd.f32 %v4176_v7, %v3907_v47 }
0x5120   :  { %v3200_v14 = vmul.f32 -1.442695, %v2688_v3 }
0x5122   :  { %3455 = vpow2.f32 %v3200_v14 }
0x5125   :  { %v2686_v61 = vpop.f32.mrf.mxu0 }
0x5128   :  { %v3456_v63 = vpop.eup %3455 }
0x5129   :  { %v2692_v54 = vadd.f32 1.0, %v3456_v63 }
0x512b   :  { %3457 = vrcp.f32 %v2692_v54  ;;  %v2704_v5 = vand.u32 2147483648, %v2692_v54  ;;  %v2702_v6 = vand.u32 2147483647, %v2692_v54  ;;  %vm2698_vm7 = vweird.f32 %v2692_v54 }
0x512d   :  { %v2705_v12 = vor.u32 1.1754944e-38, %v2704_v5  ;;  %vm2703_vm8 = vcmp.eq.f32.partialorder %v2702_v6, 8.507059e+37 }
0x5131   :  { %v3458_v58 = vpop.eup %3457 }
0x5132   :  { %v2694_v2 = vmul.f32 %v3458_v58, %v2692_v54  ;;  %vm2699_vm6 = vweird.f32 %v3458_v58 }
0x5133   :  { %vm2700_vm0 = vmor %vm2698_vm7, %vm2699_vm6 }
0x5134   :  { %v2695_v8 = vsub.f32 1.0, %v2694_v2 }
0x5136   :  { %v2696_v4 = vmul.f32 %v3458_v58, %v2695_v8 }
0x5138   :  { %v2697_v57 = vadd.f32 %v3458_v58, %v2696_v4 }
0x513a   :  { %v2701_v46 = vsel %vm2700_vm0, %v3458_v58, %v2697_v57 }
0x513b   :  { %v2706_v13 = vsel %vm2703_vm8, %v2705_v12, %v2701_v46 }
0x513c   :  { %v2708_v25 = vmul.f32 2.0, %v2706_v13  ;;  %v2710_v56 = vmul.f32 %v2706_v13, %v2655_v52 }
0x513e   :  { %v3201_v15 = vadd.f32 -1.0, %v2708_v25 }
0x5140   :  { %2712 = vrot.lane.b32.xlu1 %v3201_v15, %s3472_s3 }
0x51b2   :  { %v2713_v17 = vpop.permute.xlu1 %2712 }
0x51b3   :  { %v2715_v19 = vmul.f32 %v2713_v17, %v2706_v13 }
0x51b5   :  { %2717 = vrot.lane.b32.xlu2 %v2715_v19, %s3472_s3 }
0x520f   :  { %v2718_v22 = vpop.permute.xlu2 %2717 }
0x5210   :  { %v4204_v45 = vadd.f32 %v2718_v22, %v2710_v56 }
0x5212   :  { %3459 = vtanh.f32 %v4204_v45 }
0x5218   :  { %v3460_v23 = vpop.eup %3459 }
0x5219   :  { %2723 = vrot.lane.b32.xlu0 %v3460_v23, %s3472_s3 }
0x528b   :  { %v2724_v24 = vpop.permute.xlu0 %2723 }
0x528c   :  { %v4208_v43 = vmul.f32 %v2724_v24, %v2706_v13 }
0x528e   :  { %v2733_v29 = vpack.c.bf16 %v4208_v43, %v4208_v43 }
0x5290   :  { %2735 = vrot.lane.b32.xlu1 %v2733_v29, %s3473_s19 }
0x5298   :  { %1038 = vrot.lane.b32.xlu1 %v3778_v21, %s3473_s19  ;;  %v2828_v21 = vld [vmem:[%s4441_s8 + $0x18] sm:$0xff] }
0x5299   :  { %2925 = vmatpush.msra.mxu0 %v2828_v21  ;;  %3238 = vmatpush.msra.mxu1 %v2828_v21 }
0x529a   :  { %3239 = vmatpush.msra.mxu3 %v2828_v21 }
0x52a0   :  { %1233 = vrot.lane.b32.xlu1 %v3850_v20, %s3473_s19  ;;  %v2827_v20 = vld [vmem:[%s4441_s8 + $0x10] sm:$0xff] }
0x52a1   :  { %2926 = vmatpush.msra.mxu0 %v2827_v20  ;;  %3240 = vmatpush.msra.mxu1 %v2827_v20 }
0x52a2   :  { %3241 = vmatpush.msra.mxu3 %v2827_v20 }
0x52a8   :  { %1818 = vrot.lane.b32.xlu1 %v4032_v36, %s3473_s19 }
0x52b0   :  { %1883 = vrot.lane.b32.xlu1 %v4045_v1, %s3473_s19 }
0x52b8   :  { %1428 = vrot.lane.b32.xlu1 %v3939_v11, %s3473_s19  ;;  %v2826_v11 = vld [vmem:[%s4441_s8 + $0x8] sm:$0xff] }
0x52b9   :  { %2927 = vmatpush.msra.mxu0 %v2826_v11  ;;  %3242 = vmatpush.msra.mxu1 %v2826_v11 }
0x52ba   :  { %3243 = vmatpush.msra.mxu3 %v2826_v11 }
0x52c0   :  { %1493 = vrot.lane.b32.xlu1 %v3952_v51, %s3473_s19  ;;  %v2825_v51 = vld [vmem:[%s4441_s8] sm:$0xff] }
0x52c1   :  { %2928 = vmatpush.msra.mxu0 %v2825_v51  ;;  %3244 = vmatpush.msra.mxu1 %v2825_v51 }
0x52c2   :  { %3245 = vmatpush.msra.mxu3 %v2825_v51 }
0x52c8   :  { %1558 = vrot.lane.b32.xlu1 %v3965_v59, %s3473_s19 }
0x52d0   :  { %1623 = vrot.lane.b32.xlu1 %v3978_v33, %s3473_s19 }
0x52d8   :  { %1688 = vrot.lane.b32.xlu1 %v3991_v53, %s3473_s19 }
0x52e0   :  { %1753 = vrot.lane.b32.xlu1 %v4019_v16, %s3473_s19 }
0x5302   :  { %v2736_v59 = vpop.permute.xlu1 %2735 }
0x5303   :  { %3202 = vmatmul.msk.bf16.vlgmr.msra.gmra.mxu2 %vm143_vm5, %v2736_v59 }
0x530a   :  { %v1039_v33 = vpop.permute.xlu1 %1038 }
0x530b   :  { %1041 = vst.msk [vmem:[#allocation4] sm:$0xff] %vm143_vm5, %v1039_v33 }
0x5312   :  { %v1234_v53 = vpop.permute.xlu1 %1233  ;;  %v2797_v16 = vld [vmem:[#allocation4] sm:$0xff] }
0x5313   :  { %1236 = vst.msk [vmem:[#allocation4 + $0x18] sm:$0xff] %vm143_vm5, %v1234_v53  ;;  %3205 = vmatmul.msk.f32.vlgmr.msra.gmra.mxu0 %vm143_vm5, %v2797_v16 }
0x531a   :  { %v1819_v36 = vpop.permute.xlu1 %1818 }
0x531b   :  { %1821 = vst.msk [vmem:[#allocation4 + $0x60] sm:$0xff] %vm143_vm5, %v1819_v36 }
0x5322   :  { %v1884_v1 = vpop.permute.xlu1 %1883  ;;  %v2809_v32 = vld [vmem:[#allocation4 + $0x60] sm:$0xff] }
0x5323   :  { %1886 = vst.msk [vmem:[#allocation4 + $0x68] sm:$0xff] %vm143_vm5, %v1884_v1  ;;  %3217 = vmatmul.msk.f32.vlgmr.msra.gmra.mxu1 %vm143_vm5, %v2809_v32 }
0x532a   :  { %v1429_v28 = vpop.permute.xlu1 %1428  ;;  %v2810_v39 = vld [vmem:[#allocation4 + $0x68] sm:$0xff] }
0x532b   :  { %1431 = vst.msk [vmem:[#allocation4 + $0x30] sm:$0xff] %vm143_vm5, %v1429_v28  ;;  %3218 = vmatmul.msk.f32.gmra.mxu1 %vm143_vm5, %v2810_v39 }
0x5332   :  { %v1494_v52 = vpop.permute.xlu1 %1493  ;;  %v2803_v33 = vld [vmem:[#allocation4 + $0x30] sm:$0xff] }
0x5333   :  { %1496 = vst.msk [vmem:[#allocation4 + $0x38] sm:$0xff] %vm143_vm5, %v1494_v52 }
0x533a   :  { %v1559_v55 = vpop.permute.xlu1 %1558  ;;  %v2804_v36 = vld [vmem:[#allocation4 + $0x38] sm:$0xff] }
0x533b   :  { %1561 = vst.msk [vmem:[#allocation4 + $0x40] sm:$0xff] %vm143_vm5, %v1559_v55 }
0x5342   :  { %v1624_v10 = vpop.permute.xlu1 %1623  ;;  %v2805_v32 = vld [vmem:[#allocation4 + $0x40] sm:$0xff] }
0x5343   :  { %1626 = vst.msk [vmem:[#allocation4 + $0x48] sm:$0xff] %vm143_vm5, %v1624_v10 }
0x534a   :  { %v1689_v0 = vpop.permute.xlu1 %1688 }
0x534b   :  { %1691 = vst.msk [vmem:[#allocation4 + $0x50] sm:$0xff] %vm143_vm5, %v1689_v0 }
0x5352   :  { %v1754_v50 = vpop.permute.xlu1 %1753  ;;  %v2807_v52 = vld [vmem:[#allocation4 + $0x50] sm:$0xff] }
0x5353   :  { %1756 = vst.msk [vmem:[#allocation4 + $0x58] sm:$0xff] %vm143_vm5, %v1754_v50 }
0x535a   :  { %v2808_v55 = vld [vmem:[#allocation4 + $0x58] sm:$0xff] }
0x5386   :  { %v2749_v40 = vpop.f32.mrf.mxu2 }
0x5387   :  { %v2753_v3 = vadd.f32 %v2749_v40, %v899_v37 }
0x5389   :  { %v3203_v14 = vmul.f32 -1.442695, %v2753_v3 }
0x538b   :  { %3461 = vpow2.f32 %v3203_v14 }
0x538e   :  { %v2751_v61 = vpop.f32.mrf.mxu2 }
0x5390   :  { %v2930_v63 = vpop.f32.mrf.mxu0 }
0x5391   :  { %v3462_v54 = vpop.eup %3461  ;;  %3014 = vst [vmem:[%s4442_s9] sm:$0xff] %v2930_v63 }
0x5392   :  { %v2757_v58 = vadd.f32 1.0, %v3462_v54 }
0x5394   :  { %3463 = vrcp.f32 %v2757_v58  ;;  %v2769_v4 = vand.u32 2147483648, %v2757_v58  ;;  %v2767_v47 = vand.u32 2147483647, %v2757_v58  ;;  %vm2763_vm10 = vweird.f32 %v2757_v58 }
0x5396   :  { %v2770_v12 = vor.u32 1.1754944e-38, %v2769_v4  ;;  %vm2768_vm12 = vcmp.eq.f32.partialorder %v2767_v47, 8.507059e+37 }
0x539a   :  { %v3464_v2 = vpop.eup %3463 }
0x539b   :  { %v2759_v8 = vmul.f32 %v3464_v2, %v2757_v58  ;;  %vm2764_vm9 = vweird.f32 %v3464_v2 }
0x539c   :  { %vm2765_vm11 = vmor %vm2763_vm10, %vm2764_vm9 }
0x539d   :  { %v2760_v5 = vsub.f32 1.0, %v2759_v8 }
0x539f   :  { %v2761_v6 = vmul.f32 %v3464_v2, %v2760_v5 }
0x53a0   :  { %v2966_v7 = vpop.f32.mrf.mxu1 }
0x53a1   :  { %3026 = vst [vmem:[%s4442_s9 + $0x60] sm:$0xff] %v2966_v7  ;;  %v2762_v57 = vadd.f32 %v3464_v2, %v2761_v6 }
0x53a3   :  { %v2766_v46 = vsel %vm2765_vm11, %v3464_v2, %v2762_v57 }
0x53a4   :  { %v4267_v13 = vsel %vm2768_vm12, %v2770_v12, %v2766_v46 }
0x53a5   :  { %v2773_v25 = vmul.f32 2.0, %v4267_v13 }
0x53a7   :  { %v3204_v15 = vadd.f32 -1.0, %v2773_v25 }
0x53a8   :  { %v2969_v17 = vpop.f32.mrf.mxu1 }
0x53a9   :  { %3027 = vst [vmem:[%s4442_s9 + $0x68] sm:$0xff] %v2969_v17  ;;  %2777 = vrot.lane.b32.xlu2 %v3204_v15, %s3472_s3 }
0x53b1   :  { %1103 = vrot.lane.b32.xlu2 %v3799_v62, %s3473_s19 }
0x53b9   :  { %2338 = vrot.lane.b32.xlu2 %v4134_v49, %s3473_s19 }
0x53c1   :  { %2403 = vrot.lane.b32.xlu2 %v4145_v31, %s3473_s19 }
0x5403   :  { %v2778_v19 = vpop.permute.xlu2 %2777 }
0x5404   :  { %v2780_v56 = vmul.f32 %v2778_v19, %v4267_v13 }
0x5406   :  { %2782 = vrot.lane.b32.xlu0 %v2780_v56, %s3472_s3 }
0x540b   :  { %v1104_v22 = vpop.permute.xlu2 %1103 }
0x540c   :  { %1106 = vst.msk [vmem:[#allocation4 + $0x8] sm:$0xff] %vm143_vm5, %v1104_v22 }
0x540e   :  { %1168 = vrot.lane.b32.xlu0 %v3812_v38, %s3473_s19  ;;  %v2775_v38 = vmul.f32 %v4267_v13, %v4204_v45  ;;  %v2800_v45 = vld [vmem:[#allocation4 + $0x18] sm:$0xff] }
0x5413   :  { %v2339_v23 = vpop.permute.xlu2 %2338  ;;  %v2798_v24 = vld [vmem:[#allocation4 + $0x8] sm:$0xff] }
0x5414   :  { %2341 = vst.msk [vmem:[#allocation4 + $0xa0] sm:$0xff] %vm143_vm5, %v2339_v23  ;;  %3206 = vmatmul.msk.f32.gmra.mxu0 %vm143_vm5, %v2798_v24 }
0x5416   :  { %1298 = vrot.lane.b32.xlu0 %v3914_v26, %s3473_s19 }
0x541b   :  { %v2404_v62 = vpop.permute.xlu2 %2403  ;;  %v2817_v49 = vld [vmem:[#allocation4 + $0xa0] sm:$0xff] }
0x541c   :  { %2406 = vst.msk [vmem:[#allocation4 + $0xa8] sm:$0xff] %vm143_vm5, %v2404_v62  ;;  %3225 = vmatmul.msk.f32.vlgmr.msra.gmra.mxu3 %vm143_vm5, %v2817_v49 }
0x541e   :  { %1363 = vrot.lane.b32.xlu0 %v3926_v30, %s3473_s19 }
0x5423   :  { %v2818_v31 = vld [vmem:[#allocation4 + $0xa8] sm:$0xff] }
0x5424   :  { %3226 = vmatmul.msk.f32.gmra.mxu3 %vm143_vm5, %v2818_v31 }
0x5426   :  { %2468 = vrot.lane.b32.xlu0 %v4156_v44, %s3473_s19 }
0x542e   :  { %2533 = vrot.lane.b32.xlu0 %v4167_v35, %s3473_s19 }
0x5436   :  { %2598 = vrot.lane.b32.xlu0 %v4183_v9, %s3473_s19 }
0x543e   :  { %2663 = vrot.lane.b32.xlu0 %v4194_v42, %s3473_s19 }
0x5446   :  { %2728 = vrot.lane.b32.xlu0 %v4208_v43, %s3473_s19 }
0x5478   :  { %v2783_v26 = vpop.permute.xlu0 %2782 }
0x5479   :  { %v2785_v30 = vadd.f32 %v2783_v26, %v2775_v38 }
0x547b   :  { %3465 = vtanh.f32 %v2785_v30 }
0x5480   :  { %v1169_v29 = vpop.permute.xlu0 %1168 }
0x5481   :  { %v3466_v44 = vpop.eup %3465  ;;  %1171 = vst.msk [vmem:[#allocation4 + $0x10] sm:$0xff] %vm143_vm5, %v1169_v29 }
0x5482   :  { %2788 = vrot.lane.b32.xlu2 %v3466_v44, %s3472_s3 }
0x5488   :  { %v1299_v35 = vpop.permute.xlu0 %1298  ;;  %v2799_v9 = vld [vmem:[#allocation4 + $0x10] sm:$0xff] }
0x5489   :  { %1301 = vst.msk [vmem:[#allocation4 + $0x20] sm:$0xff] %vm143_vm5, %v1299_v35  ;;  %3207 = vmatmul.msk.f32.gmra.mxu0 %vm143_vm5, %v2799_v9 }
0x548a   :  { %1948 = vrot.lane.b32.xlu2 %v4058_v60, %s3473_s19 }
0x5490   :  { %v1364_v42 = vpop.permute.xlu0 %1363  ;;  %v2801_v20 = vld [vmem:[#allocation4 + $0x20] sm:$0xff] }
0x5491   :  { %1366 = vst.msk [vmem:[#allocation4 + $0x28] sm:$0xff] %vm143_vm5, %v1364_v42  ;;  %v2933_v43 = vpop.f32.mrf.mxu0  ;;  %3208 = vmatmul.msk.f32.gmra.mxu0 %vm143_vm5, %v2800_v45 }
0x5492   :  { %3015 = vst [vmem:[%s4442_s9 + $0x8] sm:$0xff] %v2933_v43  ;;  %2013 = vrot.lane.b32.xlu2 %v4071_v48, %s3473_s19 }
0x5498   :  { %v2469_v21 = vpop.permute.xlu0 %2468  ;;  %v2802_v51 = vld [vmem:[#allocation4 + $0x28] sm:$0xff] }
0x5499   :  { %2471 = vst.msk [vmem:[#allocation4 + $0xb0] sm:$0xff] %vm143_vm5, %v2469_v21  ;;  %3209 = vmatmul.msk.f32.gmra.mxu0 %vm143_vm5, %v2801_v20 }
0x549a   :  { %2078 = vrot.lane.b32.xlu2 %v4084_v27, %s3473_s19 }
0x549f   :  { %v2990_v60 = vpop.f32.mrf.mxu3 }
0x54a0   :  { %3034 = vst [vmem:[%s4442_s9 + $0xa0] sm:$0xff] %v2990_v60  ;;  %v2534_v11 = vpop.permute.xlu0 %2533  ;;  %v2819_v59 = vld [vmem:[#allocation4 + $0xb0] sm:$0xff] }
0x54a1   :  { %2536 = vst.msk [vmem:[#allocation4 + $0xb8] sm:$0xff] %vm143_vm5, %v2534_v11  ;;  %3210 = vmatmul.msk.f32.gmra.mxu0 %vm143_vm5, %v2802_v51  ;;  %3227 = vmatmul.msk.f32.gmra.mxu3 %vm143_vm5, %v2819_v59 }
0x54a2   :  { %2143 = vrot.lane.b32.xlu2 %v4097_v18, %s3473_s19 }
0x54a7   :  { %v2993_v48 = vpop.f32.mrf.mxu3 }
0x54a8   :  { %3035 = vst [vmem:[%s4442_s9 + $0xa8] sm:$0xff] %v2993_v48  ;;  %v2599_v27 = vpop.permute.xlu0 %2598  ;;  %v2820_v53 = vld [vmem:[#allocation4 + $0xb8] sm:$0xff] }
0x54a9   :  { %2601 = vst.msk [vmem:[#allocation4 + $0xc0] sm:$0xff] %vm143_vm5, %v2599_v27  ;;  %3211 = vmatmul.msk.f32.gmra.mxu0 %vm143_vm5, %v2803_v33  ;;  %3228 = vmatmul.msk.f32.gmra.mxu3 %vm143_vm5, %v2820_v53 }
0x54aa   :  { %2208 = vrot.lane.b32.xlu2 %v4110_v41, %s3473_s19  ;;  %v2806_v41 = vld [vmem:[#allocation4 + $0x48] sm:$0xff] }
0x54b0   :  { %v2664_v16 = vpop.permute.xlu0 %2663  ;;  %v2821_v18 = vld [vmem:[#allocation4 + $0xc0] sm:$0xff] }
0x54b1   :  { %2666 = vst.msk [vmem:[#allocation4 + $0xc8] sm:$0xff] %vm143_vm5, %v2664_v16  ;;  %3212 = vmatmul.msk.f32.gmra.mxu0 %vm143_vm5, %v2804_v36  ;;  %3229 = vmatmul.msk.f32.gmra.mxu3 %vm143_vm5, %v2821_v18 }
0x54b2   :  { %2273 = vrot.lane.b32.xlu2 %v4123_v34, %s3473_s19 }
0x54b8   :  { %v2729_v1 = vpop.permute.xlu0 %2728  ;;  %v2822_v28 = vld [vmem:[#allocation4 + $0xc8] sm:$0xff] }
0x54b9   :  { %2731 = vst.msk [vmem:[#allocation4 + $0xd0] sm:$0xff] %vm143_vm5, %v2729_v1  ;;  %3213 = vmatmul.msk.f32.gmra.mxu0 %vm143_vm5, %v2805_v32  ;;  %3230 = vmatmul.msk.f32.gmra.mxu3 %vm143_vm5, %v2822_v28 }
0x54c0   :  { %v2823_v39 = vld [vmem:[#allocation4 + $0xd0] sm:$0xff] }
0x54c1   :  { %3214 = vmatmul.msk.f32.gmra.mxu0 %vm143_vm5, %v2806_v41  ;;  %3231 = vmatmul.msk.f32.gmra.mxu3 %vm143_vm5, %v2823_v39 }
0x54c9   :  { %3215 = vmatmul.msk.f32.gmra.mxu0 %vm143_vm5, %v2807_v52 }
0x54d1   :  { %3216 = vmatmul.msk.f32.gmra.mxu0 %vm143_vm5, %v2808_v55 }
0x54dc   :  { %v2789_v34 = vpop.permute.xlu2 %2788 }
0x54dd   :  { %v2791_v10 = vmul.f32 %v2789_v34, %v4267_v13 }
0x54df   :  { %2793 = vrot.lane.b32.xlu0 %v2791_v10, %s3473_s19 }
0x54e4   :  { %v1949_v0 = vpop.permute.xlu2 %1948 }
0x54e5   :  { %1951 = vst.msk [vmem:[#allocation4 + $0x70] sm:$0xff] %vm143_vm5, %v1949_v0 }
0x54ec   :  { %v2014_v50 = vpop.permute.xlu2 %2013  ;;  %v2811_v37 = vld [vmem:[#allocation4 + $0x70] sm:$0xff] }
0x54ed   :  { %2016 = vst.msk [vmem:[#allocation4 + $0x78] sm:$0xff] %vm143_vm5, %v2014_v50  ;;  %3219 = vmatmul.msk.f32.gmra.mxu1 %vm143_vm5, %v2811_v37 }
0x54f4   :  { %v2079_v40 = vpop.permute.xlu2 %2078  ;;  %v2812_v3 = vld [vmem:[#allocation4 + $0x78] sm:$0xff] }
0x54f5   :  { %2081 = vst.msk [vmem:[#allocation4 + $0x80] sm:$0xff] %vm143_vm5, %v2079_v40  ;;  %3220 = vmatmul.msk.f32.gmra.mxu1 %vm143_vm5, %v2812_v3 }
0x54fc   :  { %v2144_v14 = vpop.permute.xlu2 %2143  ;;  %v2813_v61 = vld [vmem:[#allocation4 + $0x80] sm:$0xff] }
0x54fd   :  { %2146 = vst.msk [vmem:[#allocation4 + $0x88] sm:$0xff] %vm143_vm5, %v2144_v14  ;;  %3221 = vmatmul.msk.f32.gmra.mxu1 %vm143_vm5, %v2813_v61 }
0x5504   :  { %v2209_v63 = vpop.permute.xlu2 %2208  ;;  %v2814_v54 = vld [vmem:[#allocation4 + $0x88] sm:$0xff] }
0x5505   :  { %2211 = vst.msk [vmem:[#allocation4 + $0x90] sm:$0xff] %vm143_vm5, %v2209_v63  ;;  %3222 = vmatmul.msk.f32.gmra.mxu1 %vm143_vm5, %v2814_v54 }
0x5506   :  { %v2936_v58 = vpop.f32.mrf.mxu0 }
0x5507   :  { %3016 = vst [vmem:[%s4442_s9 + $0x10] sm:$0xff] %v2936_v58 }
0x550c   :  { %v2274_v2 = vpop.permute.xlu2 %2273  ;;  %v2815_v8 = vld [vmem:[#allocation4 + $0x90] sm:$0xff] }
0x550d   :  { %2276 = vst.msk [vmem:[#allocation4 + $0x98] sm:$0xff] %vm143_vm5, %v2274_v2  ;;  %3223 = vmatmul.msk.f32.gmra.mxu1 %vm143_vm5, %v2815_v8 }
0x550e   :  { %v2939_v5 = vpop.f32.mrf.mxu0 }
0x550f   :  { %3017 = vst [vmem:[%s4442_s9 + $0x18] sm:$0xff] %v2939_v5 }
0x5514   :  { %v2816_v4 = vld [vmem:[#allocation4 + $0x98] sm:$0xff] }
0x5515   :  { %3224 = vmatmul.msk.f32.gmra.mxu1 %vm143_vm5, %v2816_v4 }
0x5516   :  { %v2942_v6 = vpop.f32.mrf.mxu0 }
0x5517   :  { %3018 = vst [vmem:[%s4442_s9 + $0x20] sm:$0xff] %v2942_v6 }
0x551e   :  { %v2945_v47 = vpop.f32.mrf.mxu0 }
0x551f   :  { %3019 = vst [vmem:[%s4442_s9 + $0x28] sm:$0xff] %v2945_v47 }
0x5524   :  { %v2996_v7 = vpop.f32.mrf.mxu3 }
0x5525   :  { %3036 = vst [vmem:[%s4442_s9 + $0xb0] sm:$0xff] %v2996_v7 }
0x5526   :  { %v2948_v57 = vpop.f32.mrf.mxu0 }
0x5527   :  { %3020 = vst [vmem:[%s4442_s9 + $0x30] sm:$0xff] %v2948_v57 }
0x552c   :  { %v2999_v12 = vpop.f32.mrf.mxu3 }
0x552d   :  { %3037 = vst [vmem:[%s4442_s9 + $0xb8] sm:$0xff] %v2999_v12 }
0x552e   :  { %v2951_v46 = vpop.f32.mrf.mxu0 }
0x552f   :  { %3021 = vst [vmem:[%s4442_s9 + $0x38] sm:$0xff] %v2951_v46 }
0x5534   :  { %v3002_v13 = vpop.f32.mrf.mxu3 }
0x5535   :  { %3038 = vst [vmem:[%s4442_s9 + $0xc0] sm:$0xff] %v3002_v13 }
0x5536   :  { %v2954_v25 = vpop.f32.mrf.mxu0 }
0x5537   :  { %3022 = vst [vmem:[%s4442_s9 + $0x40] sm:$0xff] %v2954_v25 }
0x553c   :  { %v3005_v15 = vpop.f32.mrf.mxu3 }
0x553d   :  { %3039 = vst [vmem:[%s4442_s9 + $0xc8] sm:$0xff] %v3005_v15 }
0x553e   :  { %v2957_v17 = vpop.f32.mrf.mxu0 }
0x553f   :  { %3023 = vst [vmem:[%s4442_s9 + $0x48] sm:$0xff] %v2957_v17 }
0x5544   :  { %v3008_v19 = vpop.f32.mrf.mxu3 }
0x5545   :  { %3040 = vst [vmem:[%s4442_s9 + $0xd0] sm:$0xff] %v3008_v19 }
0x5546   :  { %v2960_v56 = vpop.f32.mrf.mxu0 }
0x5547   :  { %3024 = vst [vmem:[%s4442_s9 + $0x50] sm:$0xff] %v2960_v56 }
0x554e   :  { %v2963_v22 = vpop.f32.mrf.mxu0 }
0x554f   :  { %3025 = vst [vmem:[%s4442_s9 + $0x58] sm:$0xff] %v2963_v22 }
0x5551   :  { %v2794_v23 = vpop.permute.xlu0 %2793 }
0x5552   :  { %2796 = vst.msk [vmem:[#allocation4 + $0xd8] sm:$0xff] %vm143_vm5, %v2794_v23 }
0x5559   :  { %v2824_v24 = vld [vmem:[#allocation4 + $0xd8] sm:$0xff] }
0x555a   :  { %3232 = vmatmul.msk.f32.gmra.mxu3 %vm143_vm5, %v2824_v24 }
0x556a   :  { %v2972_v62 = vpop.f32.mrf.mxu1 }
0x556b   :  { %3028 = vst [vmem:[%s4442_s9 + $0x70] sm:$0xff] %v2972_v62 }
0x5572   :  { %v2975_v49 = vpop.f32.mrf.mxu1 }
0x5573   :  { %3029 = vst [vmem:[%s4442_s9 + $0x78] sm:$0xff] %v2975_v49 }
0x557a   :  { %v2978_v31 = vpop.f32.mrf.mxu1 }
0x557b   :  { %3030 = vst [vmem:[%s4442_s9 + $0x80] sm:$0xff] %v2978_v31 }
0x5582   :  { %v2981_v38 = vpop.f32.mrf.mxu1 }
0x5583   :  { %3031 = vst [vmem:[%s4442_s9 + $0x88] sm:$0xff] %v2981_v38 }
0x558a   :  { %v2984_v26 = vpop.f32.mrf.mxu1 }
0x558b   :  { %3032 = vst [vmem:[%s4442_s9 + $0x90] sm:$0xff] %v2984_v26 }
0x5592   :  { %v2987_v30 = vpop.f32.mrf.mxu1 }
0x5593   :  { %3033 = vst [vmem:[%s4442_s9 + $0x98] sm:$0xff] %v2987_v30 }
0x55dd   :  { %v3011_v29 = vpop.f32.mrf.mxu3 }
0x55de   :  { %3041 = vst [vmem:[%s4442_s9 + $0xd8] sm:$0xff] %v3011_v29 }

</bundles_post_ra>
